<compile_context>
chip_gen: v7x
topology: tpu7x:2x2x1
jax: 0.10.0
libtpu: 0.0.40
codegen_flags: <defaults>
</compile_context>

<pallas_src>
import math
import functools

import jax
import jax.numpy as jnp
from jax.experimental import pallas as pl
from jax.experimental.pallas import tpu as pltpu


# ----------------------------------------------------------------------------
# Fused Pallas kernel: pos-enc add + L transformer layers + MLP head
# (one grid step = one batch element; grid axis is "parallel")
# ----------------------------------------------------------------------------
def fused_forward_kernel(x_ref, pe_ref, w_qkv_ref, w_ff1_ref, w_of2_ref,
                         vec_ref, head_w_ref, head_b_ref, o_ref,
                         *, num_layers, num_heads):
    """x_ref:(1,S,D)  pe:(S,D)  w_qkv:(L,D,3D)bf16  w_ff1:(L,D,H)bf16
    w_of2:(L,D+H,D)bf16=[Wo;Wff2]  vec:(L,10,H)f32  head_w:(D+H,H)bf16
    head_b:(2,H)f32  o_ref:(1,1,O)."""
    _, S, D = x_ref.shape
    hd = D // num_heads
    eps = 1e-5
    bf16 = jnp.bfloat16

    # activation stays resident in VMEM, f32 elementwise path
    x = x_ref[0].astype(jnp.float32) + pe_ref[...]                  # (S, D)

    W_qkv = w_qkv_ref[...]                                          # bf16
    W_ff1 = w_ff1_ref[...]                                          # bf16
    W_of2 = w_of2_ref[...]                                          # bf16
    VEC = vec_ref[...]                                              # f32

    def layer_norm(y, g, b):
        mu = jnp.mean(y, axis=-1, keepdims=True)
        var = jnp.mean(y * y, axis=-1, keepdims=True) - mu * mu
        var = jnp.maximum(var, 0.0)                                  # rounding guard
        return (y - mu) * jax.lax.rsqrt(var + eps) * g + b

    def to_heads(t):                      # (S, D) f32 -> (nh, S, hd) bf16
        t = t.reshape(S, num_heads, hd)
        return pltpu.einshape("qhd->hqd", t).astype(bf16)

    for l in range(num_layers):                                      # static unroll
        vec = VEC[l]                                                 # (10, H)

        # fused QKV projection against the full-width (un-sliced) weight
        qkv = jnp.dot(x.astype(bf16), W_qkv[l],
                      preferred_element_type=jnp.float32)            # (S, 3D)
        q = qkv[:, 0 * D:1 * D] + vec[0:1, :D]   # 1/sqrt(hd) folded into Wq/bq
        k = qkv[:, 1 * D:2 * D] + vec[1:2, :D]
        v = qkv[:, 2 * D:3 * D] + vec[2:3, :D]

        # head-batched attention: ONE einsum pair for all heads
        qh, kh, vh = to_heads(q), to_heads(k), to_heads(v)
        s = jnp.einsum("hqd,hkd->hqk", qh, kh,
                       preferred_element_type=jnp.float32)           # (nh, S, S)
        s = s - jnp.max(s, axis=-1, keepdims=True)
        p = jnp.exp(s)
        p = p * pl.reciprocal(jnp.sum(p, axis=-1, keepdims=True), approx=True)
        o = jnp.einsum("hqk,hkd->hqd", p.astype(bf16), vh,
                       preferred_element_type=jnp.float32)           # (nh, S, hd)
        attn = pltpu.einshape("hqd->qhd", o).reshape(S, D)           # back to (S, D)

        # output projection (full-width Wo from the sublane-stacked [Wo;Wff2])
        attn = jnp.dot(attn.astype(bf16), W_of2[l, :D, :],
                       preferred_element_type=jnp.float32) + vec[3:4, :D]

        # residual + post-LayerNorm 1
        x = layer_norm(x + attn, vec[4:5, :D], vec[5:6, :D])

        # feed-forward (ReLU) + residual + post-LayerNorm 2
        hid = jnp.maximum(
            jnp.dot(x.astype(bf16), W_ff1[l],
                    preferred_element_type=jnp.float32) + vec[9:10, :], 0.0)
        ff = jnp.dot(hid.astype(bf16), W_of2[l, D:, :],
                     preferred_element_type=jnp.float32) + vec[8:9, :D]
        x = layer_norm(x + ff, vec[6:7, :D], vec[7:8, :D])

    # MLP head on the CLS row (still in VMEM)
    HW = head_w_ref[...]                                             # (D+H, H) bf16
    HB = head_b_ref[...]                                             # (2, H)   f32
    cls = x[0:1, :]                                                  # (1, D)
    h1 = jnp.maximum(
        jnp.dot(cls.astype(bf16), HW[:D, :],
                preferred_element_type=jnp.float32) + HB[0:1, :], 0.0)
    out = jnp.dot(h1.astype(bf16), HW[D:, :],
                  preferred_element_type=jnp.float32) + HB[1:2, :]   # (1, H), cols>=O are pad
    n_out = o_ref.shape[-1]
    o_ref[...] = out[:, :n_out].reshape(1, 1, n_out).astype(o_ref.dtype)


# ----------------------------------------------------------------------------
# Wrapper: one pallas_call for the whole model (post-embedding)
# ----------------------------------------------------------------------------
def aa_model_forward(x_ids, kparams, pos_enc, num_heads, num_layers, output_dim):
    B = x_ids.shape[0]
    cls_ids = jnp.zeros((B, 1), dtype=x_ids.dtype)                  # CLS = id 0
    ids = jnp.concatenate([cls_ids, x_ids], axis=1)                 # (B, S)
    # TODO(synk): for real-sized configs gather inside the kernel via scalar
    #             prefetch instead of materializing (B,S,D) in HBM here.
    x = jnp.take(kparams["embedding"], ids, axis=0)                 # (B, S, D) f32
    S, D = x.shape[1], x.shape[2]
    pe = pos_enc[0, :S]                                             # (S, D)

    w_qkv, w_ff1 = kparams["w_qkv"], kparams["w_ff1"]
    w_of2, vecs = kparams["w_o_ff2"], kparams["vecs"]
    head_w, head_b = kparams["head_w"], kparams["head_b"]

    kernel = functools.partial(fused_forward_kernel,
                               num_layers=num_layers, num_heads=num_heads)
    out = pl.pallas_call(
        kernel,
        out_shape=jax.ShapeDtypeStruct((B, 1, output_dim), jnp.float32),
        grid=(B,),
        in_specs=[
            pl.BlockSpec((1, S, D), lambda b: (b, 0, 0)),           # per-batch block
            pl.BlockSpec((S, D), lambda b: (0, 0)),                 # PE, resident
            pl.BlockSpec(w_qkv.shape, lambda b: (0, 0, 0)),         # weights resident
            pl.BlockSpec(w_ff1.shape, lambda b: (0, 0, 0)),
            pl.BlockSpec(w_of2.shape, lambda b: (0, 0, 0)),
            pl.BlockSpec(vecs.shape, lambda b: (0, 0, 0)),
            pl.BlockSpec(head_w.shape, lambda b: (0, 0)),
            pl.BlockSpec(head_b.shape, lambda b: (0, 0)),
        ],
        out_specs=pl.BlockSpec((1, 1, output_dim), lambda b: (b, 0, 0)),
        compiler_params=pltpu.CompilerParams(
            dimension_semantics=("parallel",)),                     # 2 TCs on v7x
    )(x, pe, w_qkv, w_ff1, w_of2, vecs, head_w, head_b)
    return out[:, 0, :]


# ----------------------------------------------------------------------------
# Parameter preparation: fold q-scale into Wq/bq, pack vectors, cast weights bf16
# ----------------------------------------------------------------------------
def prepare_params(raw, num_heads):
    w_attn = raw["w_attn"]                                          # (L, D, 4D)
    L, D, _ = w_attn.shape
    H = raw["w_ff1"].shape[-1]
    hd = D // num_heads
    scale = 1.0 / math.sqrt(hd)

    w_q = w_attn[:, :, 0 * D:1 * D] * scale                         # fold 1/sqrt(hd)
    w_qkv = jnp.concatenate([w_q, w_attn[:, :, 1 * D:3 * D]],
                            axis=-1).astype(jnp.bfloat16)           # (L, D, 3D)
    w_o = w_attn[:, :, 3 * D:4 * D]                                  # (L, D, D)
    w_o_ff2 = jnp.concatenate([w_o, raw["w_ff2"]],
                              axis=1).astype(jnp.bfloat16)          # (L, D+H, D)
    w_ff1 = raw["w_ff1"].astype(jnp.bfloat16)                       # (L, D, H)

    def padH(v):                                                    # (L, D) -> (L, H)
        return jnp.pad(v, ((0, 0), (0, H - D)))

    b_attn, ln = raw["b_attn"], raw["ln"]
    vecs = jnp.stack([
        padH(b_attn[:, 0] * scale), padH(b_attn[:, 1]),
        padH(b_attn[:, 2]), padH(b_attn[:, 3]),
        padH(ln[:, 0]), padH(ln[:, 1]), padH(ln[:, 2]), padH(ln[:, 3]),
        padH(raw["b_ff2"]), raw["b_ff1"],
    ], axis=1).astype(jnp.float32)                                  # (L, 10, H)

    O = raw["fw2"].shape[-1]
    fw2_p = jnp.pad(raw["fw2"], ((0, 0), (0, H - O)))               # (H, H)
    head_w = jnp.concatenate([raw["fw1"], fw2_p],
                             axis=0).astype(jnp.bfloat16)           # (D+H, H)
    head_b = jnp.stack([raw["fb1"], jnp.pad(raw["fb2"], (0, H - O))],
                       axis=0).astype(jnp.float32)                  # (2, H)

    return dict(embedding=raw["embedding"], w_qkv=w_qkv, w_ff1=w_ff1,
                w_o_ff2=w_o_ff2, vecs=vecs, head_w=head_w, head_b=head_b)


# ----------------------------------------------------------------------------
# Model glue: positional encoding, raw parameter init
# ----------------------------------------------------------------------------
def make_positional_encoding(embed_dim, max_len):
    position = jnp.arange(max_len, dtype=jnp.float32)[:, None]
    div_term = jnp.exp(jnp.arange(0, embed_dim, 2, dtype=jnp.float32)
                       * (-math.log(10000.0) / embed_dim))
    pe = jnp.zeros((max_len, embed_dim), dtype=jnp.float32)
    pe = pe.at[:, 0::2].set(jnp.sin(position * div_term))
    pe = pe.at[:, 1::2].set(jnp.cos(position * div_term))
    return pe[None]                                                 # (1, max_len, D)


def init_params(key, vocab_size, embed_dim, hidden_dim, output_dim, num_layers):
    scale = 0.05
    L, D, H, O = num_layers, embed_dim, hidden_dim, output_dim

    def rnd(shape):
        nonlocal key
        key, sub = jax.random.split(key)
        return scale * jax.random.normal(sub, shape, dtype=jnp.float32)

    emb = rnd((vocab_size, D)).at[0].set(0.0)                       # padding_idx=0
    ln = jnp.tile(jnp.array([1.0, 0.0, 1.0, 0.0], jnp.float32)[None, :, None],
                  (L, 1, D))                                        # (L, 4, D)
    return dict(
        embedding=emb,
        w_attn=rnd((L, D, 4 * D)), b_attn=rnd((L, 4, D)),
        w_ff1=rnd((L, D, H)), b_ff1=rnd((L, H)),
        w_ff2=rnd((L, H, D)), b_ff2=rnd((L, D)),
        ln=ln,
        fw1=rnd((D, H)), fb1=rnd((H,)), fw2=rnd((H, O)), fb2=rnd((O,)),
    )


# ----------------------------------------------------------------------------
# Pure-JAX reference on the RAW parameters (bf16 matmul operands to match MXU path)
# ----------------------------------------------------------------------------
def ref_forward(x_ids, raw, pos_enc, num_heads, num_layers):
    B = x_ids.shape[0]
    ids = jnp.concatenate([jnp.zeros((B, 1), x_ids.dtype), x_ids], axis=1)
    x = jnp.take(raw["embedding"], ids, axis=0)
    S, D = x.shape[1], x.shape[2]
    x = x + pos_enc[:, :S]
    hd = D // num_heads

    def bdot(a, b):
        return jnp.dot(a.astype(jnp.bfloat16), b.astype(jnp.bfloat16),
                       preferred_element_type=jnp.float32)

    def bein(eq, a, b):
        return jnp.einsum(eq, a.astype(jnp.bfloat16), b.astype(jnp.bfloat16),
                          preferred_element_type=jnp.float32)

    def ln_f(y, g, b):
        mu = y.mean(-1, keepdims=True)
        var = ((y - mu) ** 2).mean(-1, keepdims=True)
        return (y - mu) * jax.lax.rsqrt(var + 1e-5) * g + b

    for l in range(num_layers):
        Wl, bl = raw["w_attn"][l], raw["b_attn"][l]
        q = bdot(x, Wl[:, 0 * D:1 * D]) + bl[0]
        k = bdot(x, Wl[:, 1 * D:2 * D]) + bl[1]
        v = bdot(x, Wl[:, 2 * D:3 * D]) + bl[2]
        outs = []
        for h in range(num_heads):
            qs = q[..., h * hd:(h + 1) * hd] / math.sqrt(hd)
            ks = k[..., h * hd:(h + 1) * hd]
            vs = v[..., h * hd:(h + 1) * hd]
            s = bein("bqd,bkd->bqk", qs, ks)
            p = jax.nn.softmax(s, axis=-1)
            outs.append(bein("bqk,bkd->bqd", p, vs))
        attn = bdot(jnp.concatenate(outs, -1), Wl[:, 3 * D:]) + bl[3]

        g1, bt1, g2, bt2 = (raw["ln"][l, i] for i in range(4))
        x = ln_f(x + attn, g1, bt1)
        ff = jnp.maximum(bdot(x, raw["w_ff1"][l]) + raw["b_ff1"][l], 0.0)
        ff = bdot(ff, raw["w_ff2"][l]) + raw["b_ff2"][l]
        x = ln_f(x + ff, g2, bt2)

    cls_out = x[:, 0, :]
    h1 = jnp.maximum(bdot(cls_out, raw["fw1"]) + raw["fb1"], 0.0)
    return bdot(h1, raw["fw2"]) + raw["fb2"]


# ----------------------------------------------------------------------------
if __name__ == "__main__":
    vocab_size = 32
    embed_dim = 32
    hidden_dim = 64
    output_dim = 8
    max_len = 7          # S = max_len + 1 = 8 after CLS prepend
    num_layers = 3
    num_heads = 4
    batch = 2

    key = jax.random.PRNGKey(0)
    k_param, k_data = jax.random.split(key)

    raw = init_params(k_param, vocab_size, embed_dim, hidden_dim,
                      output_dim, num_layers)
    kparams = prepare_params(raw, num_heads)
    pos_enc = make_positional_encoding(embed_dim, max_len + 1)

    # token ids in [1, vocab) (0 reserved for padding / CLS, zero embedding row —
    # matches the PyTorch spec where CLS id 0 hits padding_idx=0)
    x_ids = jax.random.randint(k_data, (batch, max_len), 1, vocab_size,
                               dtype=jnp.int32)

    out = jax.block_until_ready(
        aa_model_forward(x_ids, kparams, pos_enc, num_heads, num_layers,
                         output_dim))
    ref = jax.block_until_ready(
        ref_forward(x_ids, raw, pos_enc, num_heads, num_layers))

    assert out.shape == (batch, output_dim)
    assert jnp.allclose(out, ref, rtol=2e-2, atol=2e-2), (
        f"mismatch vs reference: max abs diff = {jnp.max(jnp.abs(out - ref))}")

    print("KERNEL_OK")
</pallas_src>

<mosaic_0001>
module attributes {stable_mosaic.version = 11 : i64} {
  func.func @fused_forward_kernel(%arg0: i32, %arg1: memref<1x8x32xf32, #tpu.memory_space<vmem>>, %arg2: memref<8x32xf32, #tpu.memory_space<vmem>>, %arg3: memref<3x32x96xbf16, #tpu.memory_space<vmem>>, %arg4: memref<3x32x64xbf16, #tpu.memory_space<vmem>>, %arg5: memref<3x96x32xbf16, #tpu.memory_space<vmem>>, %arg6: memref<3x10x64xf32, #tpu.memory_space<vmem>>, %arg7: memref<96x64xbf16, #tpu.memory_space<vmem>>, %arg8: memref<2x64xf32, #tpu.memory_space<vmem>>, %arg9: memref<1x1x8xf32, #tpu.memory_space<vmem>>) attributes {dimension_semantics = [#tpu.dimension_semantics<parallel>], iteration_bounds = array<i64: 2>, scalar_prefetch = 0 : i64, scratch_operands = 0 : i64, tpu.core_type = #tpu.core_type<tc>, window_params = [{transform_indices = @transform_0, window_bounds = array<i64: 1, 8, 32>}, {pipeline_mode = #tpu.pipeline_mode<synchronous>, transform_indices = @transform_1, window_bounds = array<i64: 8, 32>}, {pipeline_mode = #tpu.pipeline_mode<synchronous>, transform_indices = @transform_2, window_bounds = array<i64: 3, 32, 96>}, {pipeline_mode = #tpu.pipeline_mode<synchronous>, transform_indices = @transform_3, window_bounds = array<i64: 3, 32, 64>}, {pipeline_mode = #tpu.pipeline_mode<synchronous>, transform_indices = @transform_4, window_bounds = array<i64: 3, 96, 32>}, {pipeline_mode = #tpu.pipeline_mode<synchronous>, transform_indices = @transform_5, window_bounds = array<i64: 3, 10, 64>}, {pipeline_mode = #tpu.pipeline_mode<synchronous>, transform_indices = @transform_6, window_bounds = array<i64: 96, 64>}, {pipeline_mode = #tpu.pipeline_mode<synchronous>, transform_indices = @transform_7, window_bounds = array<i64: 2, 64>}, {transform_indices = @transform_8, window_bounds = array<i64: 1, 1, 8>}]} {
    %c0 = arith.constant 0 : index
    %c0_0 = arith.constant 0 : index
    %c0_1 = arith.constant 0 : index
    %0 = vector.load %arg1[%c0, %c0_0, %c0_1] : memref<1x8x32xf32, #tpu.memory_space<vmem>>, vector<1x8x32xf32>
    %1 = vector.shape_cast %0 : vector<1x8x32xf32> to vector<8x32xf32>
    %c0_2 = arith.constant 0 : index
    %c0_3 = arith.constant 0 : index
    %2 = vector.load %arg2[%c0_2, %c0_3] : memref<8x32xf32, #tpu.memory_space<vmem>>, vector<8x32xf32>
    %3 = arith.addf %1, %2 : vector<8x32xf32>
    %c0_4 = arith.constant 0 : index
    %c0_5 = arith.constant 0 : index
    %c0_6 = arith.constant 0 : index
    %4 = vector.load %arg3[%c0_4, %c0_5, %c0_6] : memref<3x32x96xbf16, #tpu.memory_space<vmem>>, vector<3x32x96xbf16>
    %c0_7 = arith.constant 0 : index
    %c0_8 = arith.constant 0 : index
    %c0_9 = arith.constant 0 : index
    %5 = vector.load %arg4[%c0_7, %c0_8, %c0_9] : memref<3x32x64xbf16, #tpu.memory_space<vmem>>, vector<3x32x64xbf16>
    %c0_10 = arith.constant 0 : index
    %c0_11 = arith.constant 0 : index
    %c0_12 = arith.constant 0 : index
    %6 = vector.load %arg5[%c0_10, %c0_11, %c0_12] : memref<3x96x32xbf16, #tpu.memory_space<vmem>>, vector<3x96x32xbf16>
    %c0_13 = arith.constant 0 : index
    %c0_14 = arith.constant 0 : index
    %c0_15 = arith.constant 0 : index
    %7 = vector.load %arg6[%c0_13, %c0_14, %c0_15] : memref<3x10x64xf32, #tpu.memory_space<vmem>>, vector<3x10x64xf32>
    %8 = vector.extract_strided_slice %7 {offsets = [0, 0, 0], sizes = [1, 10, 64], strides = [1, 1, 1]} : vector<3x10x64xf32> to vector<1x10x64xf32>
    %9 = vector.shape_cast %8 : vector<1x10x64xf32> to vector<10x64xf32>
    %10 = arith.truncf %3 : vector<8x32xf32> to vector<8x32xbf16>
    %11 = vector.extract_strided_slice %4 {offsets = [0, 0, 0], sizes = [1, 32, 96], strides = [1, 1, 1]} : vector<3x32x96xbf16> to vector<1x32x96xbf16>
    %12 = vector.shape_cast %11 : vector<1x32x96xbf16> to vector<32x96xbf16>
    %cst = arith.constant dense<0.000000e+00> : vector<8x96xf32>
    %13 = tpu.matmul %10, %12, %cst {dimension_numbers = #tpu.dot_dimension_numbers<[1], [0], [0], [1], [0, 0, 1, 1], [], []>} : vector<8x32xbf16>, vector<32x96xbf16>, vector<8x96xf32> -> vector<8x96xf32>
    %14 = vector.extract_strided_slice %13 {offsets = [0, 0], sizes = [8, 32], strides = [1, 1]} : vector<8x96xf32> to vector<8x32xf32>
    %15 = vector.extract_strided_slice %9 {offsets = [0, 0], sizes = [1, 32], strides = [1, 1]} : vector<10x64xf32> to vector<1x32xf32>
    %16 = vector.broadcast %15 : vector<1x32xf32> to vector<8x32xf32>
    %17 = arith.addf %14, %16 : vector<8x32xf32>
    %18 = vector.extract_strided_slice %13 {offsets = [0, 32], sizes = [8, 32], strides = [1, 1]} : vector<8x96xf32> to vector<8x32xf32>
    %19 = vector.extract_strided_slice %9 {offsets = [1, 0], sizes = [1, 32], strides = [1, 1]} : vector<10x64xf32> to vector<1x32xf32>
    %20 = vector.broadcast %19 : vector<1x32xf32> to vector<8x32xf32>
    %21 = arith.addf %18, %20 : vector<8x32xf32>
    %22 = vector.extract_strided_slice %13 {offsets = [0, 64], sizes = [8, 32], strides = [1, 1]} : vector<8x96xf32> to vector<8x32xf32>
    %23 = vector.extract_strided_slice %9 {offsets = [2, 0], sizes = [1, 32], strides = [1, 1]} : vector<10x64xf32> to vector<1x32xf32>
    %24 = vector.broadcast %23 : vector<1x32xf32> to vector<8x32xf32>
    %25 = arith.addf %22, %24 : vector<8x32xf32>
    %26 = vector.shape_cast %17 : vector<8x32xf32> to vector<8x4x8xf32>
    %27 = tpu.transpose %26, [1, 0, 2] : vector<8x4x8xf32> -> vector<4x8x8xf32>
    %28 = arith.truncf %27 : vector<4x8x8xf32> to vector<4x8x8xbf16>
    %29 = vector.shape_cast %21 : vector<8x32xf32> to vector<8x4x8xf32>
    %30 = tpu.transpose %29, [1, 0, 2] : vector<8x4x8xf32> -> vector<4x8x8xf32>
    %31 = arith.truncf %30 : vector<4x8x8xf32> to vector<4x8x8xbf16>
    %32 = vector.shape_cast %25 : vector<8x32xf32> to vector<8x4x8xf32>
    %33 = tpu.transpose %32, [1, 0, 2] : vector<8x4x8xf32> -> vector<4x8x8xf32>
    %34 = arith.truncf %33 : vector<4x8x8xf32> to vector<4x8x8xbf16>
    "tpu.trace_start"() <{level = 10 : i32, message = "hqd,hkd->hqk"}> : () -> ()
    %cst_16 = arith.constant dense<0.000000e+00> : vector<4x8x8xf32>
    %35 = tpu.matmul %28, %31, %cst_16 {dimension_numbers = #tpu.dot_dimension_numbers<[2], [2], [1], [1], [0, 0, 0, 1, 1, 1], [0], [0]>} : vector<4x8x8xbf16>, vector<4x8x8xbf16>, vector<4x8x8xf32> -> vector<4x8x8xf32>
    "tpu.trace_stop"() : () -> ()
    %cst_17 = arith.constant dense<0xFF800000> : vector<4x8xf32>
    %36 = vector.multi_reduction <maximumf>, %35, %cst_17 [2] : vector<4x8x8xf32> to vector<4x8xf32>
    %37 = vector.shape_cast %36 : vector<4x8xf32> to vector<4x8x1xf32>
    %38 = vector.broadcast %37 : vector<4x8x1xf32> to vector<4x8x8xf32>
    %39 = arith.subf %35, %38 : vector<4x8x8xf32>
    %40 = math.exp %39 : vector<4x8x8xf32>
    %cst_18 = arith.constant dense<0.000000e+00> : vector<4x8xf32>
    %41 = vector.multi_reduction <add>, %40, %cst_18 [2] : vector<4x8x8xf32> to vector<4x8xf32>
    %42 = vector.shape_cast %41 : vector<4x8xf32> to vector<4x8x1xf32>
    %43 = tpu.reciprocal %42 {approx = true} : vector<4x8x1xf32> -> vector<4x8x1xf32>
    %44 = vector.broadcast %43 : vector<4x8x1xf32> to vector<4x8x8xf32>
    %45 = arith.mulf %40, %44 : vector<4x8x8xf32>
    %46 = arith.truncf %45 : vector<4x8x8xf32> to vector<4x8x8xbf16>
    "tpu.trace_start"() <{level = 10 : i32, message = "hqk,hkd->hqd"}> : () -> ()
    %cst_19 = arith.constant dense<0.000000e+00> : vector<4x8x8xf32>
    %47 = tpu.matmul %46, %34, %cst_19 {dimension_numbers = #tpu.dot_dimension_numbers<[2], [1], [1], [2], [0, 0, 0, 1, 1, 2], [0], [0]>} : vector<4x8x8xbf16>, vector<4x8x8xbf16>, vector<4x8x8xf32> -> vector<4x8x8xf32>
    "tpu.trace_stop"() : () -> ()
    %48 = tpu.transpose %47, [1, 0, 2] : vector<4x8x8xf32> -> vector<8x4x8xf32>
    %49 = vector.shape_cast %48 : vector<8x4x8xf32> to vector<8x32xf32>
    %50 = arith.truncf %49 : vector<8x32xf32> to vector<8x32xbf16>
    %51 = vector.extract_strided_slice %6 {offsets = [0, 0, 0], sizes = [1, 32, 32], strides = [1, 1, 1]} : vector<3x96x32xbf16> to vector<1x32x32xbf16>
    %52 = vector.shape_cast %51 : vector<1x32x32xbf16> to vector<32x32xbf16>
    %cst_20 = arith.constant dense<0.000000e+00> : vector<8x32xf32>
    %53 = tpu.matmul %50, %52, %cst_20 {dimension_numbers = #tpu.dot_dimension_numbers<[1], [0], [0], [1], [0, 0, 1, 1], [], []>} : vector<8x32xbf16>, vector<32x32xbf16>, vector<8x32xf32> -> vector<8x32xf32>
    %54 = vector.extract_strided_slice %9 {offsets = [3, 0], sizes = [1, 32], strides = [1, 1]} : vector<10x64xf32> to vector<1x32xf32>
    %55 = vector.broadcast %54 : vector<1x32xf32> to vector<8x32xf32>
    %56 = arith.addf %53, %55 : vector<8x32xf32>
    %57 = arith.addf %3, %56 : vector<8x32xf32>
    %58 = vector.extract_strided_slice %9 {offsets = [4, 0], sizes = [1, 32], strides = [1, 1]} : vector<10x64xf32> to vector<1x32xf32>
    %59 = vector.extract_strided_slice %9 {offsets = [5, 0], sizes = [1, 32], strides = [1, 1]} : vector<10x64xf32> to vector<1x32xf32>
    %cst_21 = arith.constant dense<0.000000e+00> : vector<8xf32>
    %60 = vector.multi_reduction <add>, %57, %cst_21 [1] : vector<8x32xf32> to vector<8xf32>
    %61 = vector.shape_cast %60 : vector<8xf32> to vector<8x1xf32>
    %cst_22 = arith.constant 3.200000e+01 : f32
    %62 = vector.broadcast %cst_22 : f32 to vector<8x1xf32>
    %63 = arith.divf %61, %62 : vector<8x1xf32>
    %64 = arith.mulf %57, %57 : vector<8x32xf32>
    %cst_23 = arith.constant dense<0.000000e+00> : vector<8xf32>
    %65 = vector.multi_reduction <add>, %64, %cst_23 [1] : vector<8x32xf32> to vector<8xf32>
    %66 = vector.shape_cast %65 : vector<8xf32> to vector<8x1xf32>
    %cst_24 = arith.constant 3.200000e+01 : f32
    %67 = vector.broadcast %cst_24 : f32 to vector<8x1xf32>
    %68 = arith.divf %66, %67 : vector<8x1xf32>
    %69 = arith.mulf %63, %63 : vector<8x1xf32>
    %70 = arith.subf %68, %69 : vector<8x1xf32>
    %cst_25 = arith.constant 0.000000e+00 : f32
    %71 = vector.broadcast %cst_25 : f32 to vector<8x1xf32>
    %72 = arith.maximumf %70, %71 : vector<8x1xf32>
    %73 = vector.broadcast %63 : vector<8x1xf32> to vector<8x32xf32>
    %74 = arith.subf %57, %73 : vector<8x32xf32>
    %cst_26 = arith.constant 9.99999974E-6 : f32
    %75 = vector.broadcast %cst_26 : f32 to vector<8x1xf32>
    %76 = arith.addf %72, %75 : vector<8x1xf32>
    %77 = math.rsqrt %76 : vector<8x1xf32>
    %78 = vector.broadcast %77 : vector<8x1xf32> to vector<8x32xf32>
    %79 = arith.mulf %74, %78 : vector<8x32xf32>
    %80 = vector.broadcast %58 : vector<1x32xf32> to vector<8x32xf32>
    %81 = arith.mulf %79, %80 : vector<8x32xf32>
    %82 = vector.broadcast %59 : vector<1x32xf32> to vector<8x32xf32>
    %83 = arith.addf %81, %82 : vector<8x32xf32>
    %84 = arith.truncf %83 : vector<8x32xf32> to vector<8x32xbf16>
    %85 = vector.extract_strided_slice %5 {offsets = [0, 0, 0], sizes = [1, 32, 64], strides = [1, 1, 1]} : vector<3x32x64xbf16> to vector<1x32x64xbf16>
    %86 = vector.shape_cast %85 : vector<1x32x64xbf16> to vector<32x64xbf16>
    %cst_27 = arith.constant dense<0.000000e+00> : vector<8x64xf32>
    %87 = tpu.matmul %84, %86, %cst_27 {dimension_numbers = #tpu.dot_dimension_numbers<[1], [0], [0], [1], [0, 0, 1, 1], [], []>} : vector<8x32xbf16>, vector<32x64xbf16>, vector<8x64xf32> -> vector<8x64xf32>
    %88 = vector.extract_strided_slice %9 {offsets = [9, 0], sizes = [1, 64], strides = [1, 1]} : vector<10x64xf32> to vector<1x64xf32>
    %89 = vector.broadcast %88 : vector<1x64xf32> to vector<8x64xf32>
    %90 = arith.addf %87, %89 : vector<8x64xf32>
    %cst_28 = arith.constant 0.000000e+00 : f32
    %91 = vector.broadcast %cst_28 : f32 to vector<8x64xf32>
    %92 = arith.maximumf %90, %91 : vector<8x64xf32>
    %93 = arith.truncf %92 : vector<8x64xf32> to vector<8x64xbf16>
    %94 = vector.extract_strided_slice %6 {offsets = [0, 32, 0], sizes = [1, 64, 32], strides = [1, 1, 1]} : vector<3x96x32xbf16> to vector<1x64x32xbf16>
    %95 = vector.shape_cast %94 : vector<1x64x32xbf16> to vector<64x32xbf16>
    %cst_29 = arith.constant dense<0.000000e+00> : vector<8x32xf32>
    %96 = tpu.matmul %93, %95, %cst_29 {dimension_numbers = #tpu.dot_dimension_numbers<[1], [0], [0], [1], [0, 0, 1, 1], [], []>} : vector<8x64xbf16>, vector<64x32xbf16>, vector<8x32xf32> -> vector<8x32xf32>
    %97 = vector.extract_strided_slice %9 {offsets = [8, 0], sizes = [1, 32], strides = [1, 1]} : vector<10x64xf32> to vector<1x32xf32>
    %98 = vector.broadcast %97 : vector<1x32xf32> to vector<8x32xf32>
    %99 = arith.addf %96, %98 : vector<8x32xf32>
    %100 = arith.addf %83, %99 : vector<8x32xf32>
    %101 = vector.extract_strided_slice %9 {offsets = [6, 0], sizes = [1, 32], strides = [1, 1]} : vector<10x64xf32> to vector<1x32xf32>
    %102 = vector.extract_strided_slice %9 {offsets = [7, 0], sizes = [1, 32], strides = [1, 1]} : vector<10x64xf32> to vector<1x32xf32>
    %cst_30 = arith.constant dense<0.000000e+00> : vector<8xf32>
    %103 = vector.multi_reduction <add>, %100, %cst_30 [1] : vector<8x32xf32> to vector<8xf32>
    %104 = vector.shape_cast %103 : vector<8xf32> to vector<8x1xf32>
    %cst_31 = arith.constant 3.200000e+01 : f32
    %105 = vector.broadcast %cst_31 : f32 to vector<8x1xf32>
    %106 = arith.divf %104, %105 : vector<8x1xf32>
    %107 = arith.mulf %100, %100 : vector<8x32xf32>
    %cst_32 = arith.constant dense<0.000000e+00> : vector<8xf32>
    %108 = vector.multi_reduction <add>, %107, %cst_32 [1] : vector<8x32xf32> to vector<8xf32>
    %109 = vector.shape_cast %108 : vector<8xf32> to vector<8x1xf32>
    %cst_33 = arith.constant 3.200000e+01 : f32
    %110 = vector.broadcast %cst_33 : f32 to vector<8x1xf32>
    %111 = arith.divf %109, %110 : vector<8x1xf32>
    %112 = arith.mulf %106, %106 : vector<8x1xf32>
    %113 = arith.subf %111, %112 : vector<8x1xf32>
    %cst_34 = arith.constant 0.000000e+00 : f32
    %114 = vector.broadcast %cst_34 : f32 to vector<8x1xf32>
    %115 = arith.maximumf %113, %114 : vector<8x1xf32>
    %116 = vector.broadcast %106 : vector<8x1xf32> to vector<8x32xf32>
    %117 = arith.subf %100, %116 : vector<8x32xf32>
    %cst_35 = arith.constant 9.99999974E-6 : f32
    %118 = vector.broadcast %cst_35 : f32 to vector<8x1xf32>
    %119 = arith.addf %115, %118 : vector<8x1xf32>
    %120 = math.rsqrt %119 : vector<8x1xf32>
    %121 = vector.broadcast %120 : vector<8x1xf32> to vector<8x32xf32>
    %122 = arith.mulf %117, %121 : vector<8x32xf32>
    %123 = vector.broadcast %101 : vector<1x32xf32> to vector<8x32xf32>
    %124 = arith.mulf %122, %123 : vector<8x32xf32>
    %125 = vector.broadcast %102 : vector<1x32xf32> to vector<8x32xf32>
    %126 = arith.addf %124, %125 : vector<8x32xf32>
    %127 = vector.extract_strided_slice %7 {offsets = [1, 0, 0], sizes = [1, 10, 64], strides = [1, 1, 1]} : vector<3x10x64xf32> to vector<1x10x64xf32>
    %128 = vector.shape_cast %127 : vector<1x10x64xf32> to vector<10x64xf32>
    %129 = arith.truncf %126 : vector<8x32xf32> to vector<8x32xbf16>
    %130 = vector.extract_strided_slice %4 {offsets = [1, 0, 0], sizes = [1, 32, 96], strides = [1, 1, 1]} : vector<3x32x96xbf16> to vector<1x32x96xbf16>
    %131 = vector.shape_cast %130 : vector<1x32x96xbf16> to vector<32x96xbf16>
    %cst_36 = arith.constant dense<0.000000e+00> : vector<8x96xf32>
    %132 = tpu.matmul %129, %131, %cst_36 {dimension_numbers = #tpu.dot_dimension_numbers<[1], [0], [0], [1], [0, 0, 1, 1], [], []>} : vector<8x32xbf16>, vector<32x96xbf16>, vector<8x96xf32> -> vector<8x96xf32>
    %133 = vector.extract_strided_slice %132 {offsets = [0, 0], sizes = [8, 32], strides = [1, 1]} : vector<8x96xf32> to vector<8x32xf32>
    %134 = vector.extract_strided_slice %128 {offsets = [0, 0], sizes = [1, 32], strides = [1, 1]} : vector<10x64xf32> to vector<1x32xf32>
    %135 = vector.broadcast %134 : vector<1x32xf32> to vector<8x32xf32>
    %136 = arith.addf %133, %135 : vector<8x32xf32>
    %137 = vector.extract_strided_slice %132 {offsets = [0, 32], sizes = [8, 32], strides = [1, 1]} : vector<8x96xf32> to vector<8x32xf32>
    %138 = vector.extract_strided_slice %128 {offsets = [1, 0], sizes = [1, 32], strides = [1, 1]} : vector<10x64xf32> to vector<1x32xf32>
    %139 = vector.broadcast %138 : vector<1x32xf32> to vector<8x32xf32>
    %140 = arith.addf %137, %139 : vector<8x32xf32>
    %141 = vector.extract_strided_slice %132 {offsets = [0, 64], sizes = [8, 32], strides = [1, 1]} : vector<8x96xf32> to vector<8x32xf32>
    %142 = vector.extract_strided_slice %128 {offsets = [2, 0], sizes = [1, 32], strides = [1, 1]} : vector<10x64xf32> to vector<1x32xf32>
    %143 = vector.broadcast %142 : vector<1x32xf32> to vector<8x32xf32>
    %144 = arith.addf %141, %143 : vector<8x32xf32>
    %145 = vector.shape_cast %136 : vector<8x32xf32> to vector<8x4x8xf32>
    %146 = tpu.transpose %145, [1, 0, 2] : vector<8x4x8xf32> -> vector<4x8x8xf32>
    %147 = arith.truncf %146 : vector<4x8x8xf32> to vector<4x8x8xbf16>
    %148 = vector.shape_cast %140 : vector<8x32xf32> to vector<8x4x8xf32>
    %149 = tpu.transpose %148, [1, 0, 2] : vector<8x4x8xf32> -> vector<4x8x8xf32>
    %150 = arith.truncf %149 : vector<4x8x8xf32> to vector<4x8x8xbf16>
    %151 = vector.shape_cast %144 : vector<8x32xf32> to vector<8x4x8xf32>
    %152 = tpu.transpose %151, [1, 0, 2] : vector<8x4x8xf32> -> vector<4x8x8xf32>
    %153 = arith.truncf %152 : vector<4x8x8xf32> to vector<4x8x8xbf16>
    "tpu.trace_start"() <{level = 10 : i32, message = "hqd,hkd->hqk"}> : () -> ()
    %cst_37 = arith.constant dense<0.000000e+00> : vector<4x8x8xf32>
    %154 = tpu.matmul %147, %150, %cst_37 {dimension_numbers = #tpu.dot_dimension_numbers<[2], [2], [1], [1], [0, 0, 0, 1, 1, 1], [0], [0]>} : vector<4x8x8xbf16>, vector<4x8x8xbf16>, vector<4x8x8xf32> -> vector<4x8x8xf32>
    "tpu.trace_stop"() : () -> ()
    %cst_38 = arith.constant dense<0xFF800000> : vector<4x8xf32>
    %155 = vector.multi_reduction <maximumf>, %154, %cst_38 [2] : vector<4x8x8xf32> to vector<4x8xf32>
    %156 = vector.shape_cast %155 : vector<4x8xf32> to vector<4x8x1xf32>
    %157 = vector.broadcast %156 : vector<4x8x1xf32> to vector<4x8x8xf32>
    %158 = arith.subf %154, %157 : vector<4x8x8xf32>
    %159 = math.exp %158 : vector<4x8x8xf32>
    %cst_39 = arith.constant dense<0.000000e+00> : vector<4x8xf32>
    %160 = vector.multi_reduction <add>, %159, %cst_39 [2] : vector<4x8x8xf32> to vector<4x8xf32>
    %161 = vector.shape_cast %160 : vector<4x8xf32> to vector<4x8x1xf32>
    %162 = tpu.reciprocal %161 {approx = true} : vector<4x8x1xf32> -> vector<4x8x1xf32>
    %163 = vector.broadcast %162 : vector<4x8x1xf32> to vector<4x8x8xf32>
    %164 = arith.mulf %159, %163 : vector<4x8x8xf32>
    %165 = arith.truncf %164 : vector<4x8x8xf32> to vector<4x8x8xbf16>
    "tpu.trace_start"() <{level = 10 : i32, message = "hqk,hkd->hqd"}> : () -> ()
    %cst_40 = arith.constant dense<0.000000e+00> : vector<4x8x8xf32>
    %166 = tpu.matmul %165, %153, %cst_40 {dimension_numbers = #tpu.dot_dimension_numbers<[2], [1], [1], [2], [0, 0, 0, 1, 1, 2], [0], [0]>} : vector<4x8x8xbf16>, vector<4x8x8xbf16>, vector<4x8x8xf32> -> vector<4x8x8xf32>
    "tpu.trace_stop"() : () -> ()
    %167 = tpu.transpose %166, [1, 0, 2] : vector<4x8x8xf32> -> vector<8x4x8xf32>
    %168 = vector.shape_cast %167 : vector<8x4x8xf32> to vector<8x32xf32>
    %169 = arith.truncf %168 : vector<8x32xf32> to vector<8x32xbf16>
    %170 = vector.extract_strided_slice %6 {offsets = [1, 0, 0], sizes = [1, 32, 32], strides = [1, 1, 1]} : vector<3x96x32xbf16> to vector<1x32x32xbf16>
    %171 = vector.shape_cast %170 : vector<1x32x32xbf16> to vector<32x32xbf16>
    %cst_41 = arith.constant dense<0.000000e+00> : vector<8x32xf32>
    %172 = tpu.matmul %169, %171, %cst_41 {dimension_numbers = #tpu.dot_dimension_numbers<[1], [0], [0], [1], [0, 0, 1, 1], [], []>} : vector<8x32xbf16>, vector<32x32xbf16>, vector<8x32xf32> -> vector<8x32xf32>
    %173 = vector.extract_strided_slice %128 {offsets = [3, 0], sizes = [1, 32], strides = [1, 1]} : vector<10x64xf32> to vector<1x32xf32>
    %174 = vector.broadcast %173 : vector<1x32xf32> to vector<8x32xf32>
    %175 = arith.addf %172, %174 : vector<8x32xf32>
    %176 = arith.addf %126, %175 : vector<8x32xf32>
    %177 = vector.extract_strided_slice %128 {offsets = [4, 0], sizes = [1, 32], strides = [1, 1]} : vector<10x64xf32> to vector<1x32xf32>
    %178 = vector.extract_strided_slice %128 {offsets = [5, 0], sizes = [1, 32], strides = [1, 1]} : vector<10x64xf32> to vector<1x32xf32>
    %cst_42 = arith.constant dense<0.000000e+00> : vector<8xf32>
    %179 = vector.multi_reduction <add>, %176, %cst_42 [1] : vector<8x32xf32> to vector<8xf32>
    %180 = vector.shape_cast %179 : vector<8xf32> to vector<8x1xf32>
    %cst_43 = arith.constant 3.200000e+01 : f32
    %181 = vector.broadcast %cst_43 : f32 to vector<8x1xf32>
    %182 = arith.divf %180, %181 : vector<8x1xf32>
    %183 = arith.mulf %176, %176 : vector<8x32xf32>
    %cst_44 = arith.constant dense<0.000000e+00> : vector<8xf32>
    %184 = vector.multi_reduction <add>, %183, %cst_44 [1] : vector<8x32xf32> to vector<8xf32>
    %185 = vector.shape_cast %184 : vector<8xf32> to vector<8x1xf32>
    %cst_45 = arith.constant 3.200000e+01 : f32
    %186 = vector.broadcast %cst_45 : f32 to vector<8x1xf32>
    %187 = arith.divf %185, %186 : vector<8x1xf32>
    %188 = arith.mulf %182, %182 : vector<8x1xf32>
    %189 = arith.subf %187, %188 : vector<8x1xf32>
    %cst_46 = arith.constant 0.000000e+00 : f32
    %190 = vector.broadcast %cst_46 : f32 to vector<8x1xf32>
    %191 = arith.maximumf %189, %190 : vector<8x1xf32>
    %192 = vector.broadcast %182 : vector<8x1xf32> to vector<8x32xf32>
    %193 = arith.subf %176, %192 : vector<8x32xf32>
    %cst_47 = arith.constant 9.99999974E-6 : f32
    %194 = vector.broadcast %cst_47 : f32 to vector<8x1xf32>
    %195 = arith.addf %191, %194 : vector<8x1xf32>
    %196 = math.rsqrt %195 : vector<8x1xf32>
    %197 = vector.broadcast %196 : vector<8x1xf32> to vector<8x32xf32>
    %198 = arith.mulf %193, %197 : vector<8x32xf32>
    %199 = vector.broadcast %177 : vector<1x32xf32> to vector<8x32xf32>
    %200 = arith.mulf %198, %199 : vector<8x32xf32>
    %201 = vector.broadcast %178 : vector<1x32xf32> to vector<8x32xf32>
    %202 = arith.addf %200, %201 : vector<8x32xf32>
    %203 = arith.truncf %202 : vector<8x32xf32> to vector<8x32xbf16>
    %204 = vector.extract_strided_slice %5 {offsets = [1, 0, 0], sizes = [1, 32, 64], strides = [1, 1, 1]} : vector<3x32x64xbf16> to vector<1x32x64xbf16>
    %205 = vector.shape_cast %204 : vector<1x32x64xbf16> to vector<32x64xbf16>
    %cst_48 = arith.constant dense<0.000000e+00> : vector<8x64xf32>
    %206 = tpu.matmul %203, %205, %cst_48 {dimension_numbers = #tpu.dot_dimension_numbers<[1], [0], [0], [1], [0, 0, 1, 1], [], []>} : vector<8x32xbf16>, vector<32x64xbf16>, vector<8x64xf32> -> vector<8x64xf32>
    %207 = vector.extract_strided_slice %128 {offsets = [9, 0], sizes = [1, 64], strides = [1, 1]} : vector<10x64xf32> to vector<1x64xf32>
    %208 = vector.broadcast %207 : vector<1x64xf32> to vector<8x64xf32>
    %209 = arith.addf %206, %208 : vector<8x64xf32>
    %cst_49 = arith.constant 0.000000e+00 : f32
    %210 = vector.broadcast %cst_49 : f32 to vector<8x64xf32>
    %211 = arith.maximumf %209, %210 : vector<8x64xf32>
    %212 = arith.truncf %211 : vector<8x64xf32> to vector<8x64xbf16>
    %213 = vector.extract_strided_slice %6 {offsets = [1, 32, 0], sizes = [1, 64, 32], strides = [1, 1, 1]} : vector<3x96x32xbf16> to vector<1x64x32xbf16>
    %214 = vector.shape_cast %213 : vector<1x64x32xbf16> to vector<64x32xbf16>
    %cst_50 = arith.constant dense<0.000000e+00> : vector<8x32xf32>
    %215 = tpu.matmul %212, %214, %cst_50 {dimension_numbers = #tpu.dot_dimension_numbers<[1], [0], [0], [1], [0, 0, 1, 1], [], []>} : vector<8x64xbf16>, vector<64x32xbf16>, vector<8x32xf32> -> vector<8x32xf32>
    %216 = vector.extract_strided_slice %128 {offsets = [8, 0], sizes = [1, 32], strides = [1, 1]} : vector<10x64xf32> to vector<1x32xf32>
    %217 = vector.broadcast %216 : vector<1x32xf32> to vector<8x32xf32>
    %218 = arith.addf %215, %217 : vector<8x32xf32>
    %219 = arith.addf %202, %218 : vector<8x32xf32>
    %220 = vector.extract_strided_slice %128 {offsets = [6, 0], sizes = [1, 32], strides = [1, 1]} : vector<10x64xf32> to vector<1x32xf32>
    %221 = vector.extract_strided_slice %128 {offsets = [7, 0], sizes = [1, 32], strides = [1, 1]} : vector<10x64xf32> to vector<1x32xf32>
    %cst_51 = arith.constant dense<0.000000e+00> : vector<8xf32>
    %222 = vector.multi_reduction <add>, %219, %cst_51 [1] : vector<8x32xf32> to vector<8xf32>
    %223 = vector.shape_cast %222 : vector<8xf32> to vector<8x1xf32>
    %cst_52 = arith.constant 3.200000e+01 : f32
    %224 = vector.broadcast %cst_52 : f32 to vector<8x1xf32>
    %225 = arith.divf %223, %224 : vector<8x1xf32>
    %226 = arith.mulf %219, %219 : vector<8x32xf32>
    %cst_53 = arith.constant dense<0.000000e+00> : vector<8xf32>
    %227 = vector.multi_reduction <add>, %226, %cst_53 [1] : vector<8x32xf32> to vector<8xf32>
    %228 = vector.shape_cast %227 : vector<8xf32> to vector<8x1xf32>
    %cst_54 = arith.constant 3.200000e+01 : f32
    %229 = vector.broadcast %cst_54 : f32 to vector<8x1xf32>
    %230 = arith.divf %228, %229 : vector<8x1xf32>
    %231 = arith.mulf %225, %225 : vector<8x1xf32>
    %232 = arith.subf %230, %231 : vector<8x1xf32>
    %cst_55 = arith.constant 0.000000e+00 : f32
    %233 = vector.broadcast %cst_55 : f32 to vector<8x1xf32>
    %234 = arith.maximumf %232, %233 : vector<8x1xf32>
    %235 = vector.broadcast %225 : vector<8x1xf32> to vector<8x32xf32>
    %236 = arith.subf %219, %235 : vector<8x32xf32>
    %cst_56 = arith.constant 9.99999974E-6 : f32
    %237 = vector.broadcast %cst_56 : f32 to vector<8x1xf32>
    %238 = arith.addf %234, %237 : vector<8x1xf32>
    %239 = math.rsqrt %238 : vector<8x1xf32>
    %240 = vector.broadcast %239 : vector<8x1xf32> to vector<8x32xf32>
    %241 = arith.mulf %236, %240 : vector<8x32xf32>
    %242 = vector.broadcast %220 : vector<1x32xf32> to vector<8x32xf32>
    %243 = arith.mulf %241, %242 : vector<8x32xf32>
    %244 = vector.broadcast %221 : vector<1x32xf32> to vector<8x32xf32>
    %245 = arith.addf %243, %244 : vector<8x32xf32>
    %246 = vector.extract_strided_slice %7 {offsets = [2, 0, 0], sizes = [1, 10, 64], strides = [1, 1, 1]} : vector<3x10x64xf32> to vector<1x10x64xf32>
    %247 = vector.shape_cast %246 : vector<1x10x64xf32> to vector<10x64xf32>
    %248 = arith.truncf %245 : vector<8x32xf32> to vector<8x32xbf16>
    %249 = vector.extract_strided_slice %4 {offsets = [2, 0, 0], sizes = [1, 32, 96], strides = [1, 1, 1]} : vector<3x32x96xbf16> to vector<1x32x96xbf16>
    %250 = vector.shape_cast %249 : vector<1x32x96xbf16> to vector<32x96xbf16>
    %cst_57 = arith.constant dense<0.000000e+00> : vector<8x96xf32>
    %251 = tpu.matmul %248, %250, %cst_57 {dimension_numbers = #tpu.dot_dimension_numbers<[1], [0], [0], [1], [0, 0, 1, 1], [], []>} : vector<8x32xbf16>, vector<32x96xbf16>, vector<8x96xf32> -> vector<8x96xf32>
    %252 = vector.extract_strided_slice %251 {offsets = [0, 0], sizes = [8, 32], strides = [1, 1]} : vector<8x96xf32> to vector<8x32xf32>
    %253 = vector.extract_strided_slice %247 {offsets = [0, 0], sizes = [1, 32], strides = [1, 1]} : vector<10x64xf32> to vector<1x32xf32>
    %254 = vector.broadcast %253 : vector<1x32xf32> to vector<8x32xf32>
    %255 = arith.addf %252, %254 : vector<8x32xf32>
    %256 = vector.extract_strided_slice %251 {offsets = [0, 32], sizes = [8, 32], strides = [1, 1]} : vector<8x96xf32> to vector<8x32xf32>
    %257 = vector.extract_strided_slice %247 {offsets = [1, 0], sizes = [1, 32], strides = [1, 1]} : vector<10x64xf32> to vector<1x32xf32>
    %258 = vector.broadcast %257 : vector<1x32xf32> to vector<8x32xf32>
    %259 = arith.addf %256, %258 : vector<8x32xf32>
    %260 = vector.extract_strided_slice %251 {offsets = [0, 64], sizes = [8, 32], strides = [1, 1]} : vector<8x96xf32> to vector<8x32xf32>
    %261 = vector.extract_strided_slice %247 {offsets = [2, 0], sizes = [1, 32], strides = [1, 1]} : vector<10x64xf32> to vector<1x32xf32>
    %262 = vector.broadcast %261 : vector<1x32xf32> to vector<8x32xf32>
    %263 = arith.addf %260, %262 : vector<8x32xf32>
    %264 = vector.shape_cast %255 : vector<8x32xf32> to vector<8x4x8xf32>
    %265 = tpu.transpose %264, [1, 0, 2] : vector<8x4x8xf32> -> vector<4x8x8xf32>
    %266 = arith.truncf %265 : vector<4x8x8xf32> to vector<4x8x8xbf16>
    %267 = vector.shape_cast %259 : vector<8x32xf32> to vector<8x4x8xf32>
    %268 = tpu.transpose %267, [1, 0, 2] : vector<8x4x8xf32> -> vector<4x8x8xf32>
    %269 = arith.truncf %268 : vector<4x8x8xf32> to vector<4x8x8xbf16>
    %270 = vector.shape_cast %263 : vector<8x32xf32> to vector<8x4x8xf32>
    %271 = tpu.transpose %270, [1, 0, 2] : vector<8x4x8xf32> -> vector<4x8x8xf32>
    %272 = arith.truncf %271 : vector<4x8x8xf32> to vector<4x8x8xbf16>
    "tpu.trace_start"() <{level = 10 : i32, message = "hqd,hkd->hqk"}> : () -> ()
    %cst_58 = arith.constant dense<0.000000e+00> : vector<4x8x8xf32>
    %273 = tpu.matmul %266, %269, %cst_58 {dimension_numbers = #tpu.dot_dimension_numbers<[2], [2], [1], [1], [0, 0, 0, 1, 1, 1], [0], [0]>} : vector<4x8x8xbf16>, vector<4x8x8xbf16>, vector<4x8x8xf32> -> vector<4x8x8xf32>
    "tpu.trace_stop"() : () -> ()
    %cst_59 = arith.constant dense<0xFF800000> : vector<4x8xf32>
    %274 = vector.multi_reduction <maximumf>, %273, %cst_59 [2] : vector<4x8x8xf32> to vector<4x8xf32>
    %275 = vector.shape_cast %274 : vector<4x8xf32> to vector<4x8x1xf32>
    %276 = vector.broadcast %275 : vector<4x8x1xf32> to vector<4x8x8xf32>
    %277 = arith.subf %273, %276 : vector<4x8x8xf32>
    %278 = math.exp %277 : vector<4x8x8xf32>
    %cst_60 = arith.constant dense<0.000000e+00> : vector<4x8xf32>
    %279 = vector.multi_reduction <add>, %278, %cst_60 [2] : vector<4x8x8xf32> to vector<4x8xf32>
    %280 = vector.shape_cast %279 : vector<4x8xf32> to vector<4x8x1xf32>
    %281 = tpu.reciprocal %280 {approx = true} : vector<4x8x1xf32> -> vector<4x8x1xf32>
    %282 = vector.broadcast %281 : vector<4x8x1xf32> to vector<4x8x8xf32>
    %283 = arith.mulf %278, %282 : vector<4x8x8xf32>
    %284 = arith.truncf %283 : vector<4x8x8xf32> to vector<4x8x8xbf16>
    "tpu.trace_start"() <{level = 10 : i32, message = "hqk,hkd->hqd"}> : () -> ()
    %cst_61 = arith.constant dense<0.000000e+00> : vector<4x8x8xf32>
    %285 = tpu.matmul %284, %272, %cst_61 {dimension_numbers = #tpu.dot_dimension_numbers<[2], [1], [1], [2], [0, 0, 0, 1, 1, 2], [0], [0]>} : vector<4x8x8xbf16>, vector<4x8x8xbf16>, vector<4x8x8xf32> -> vector<4x8x8xf32>
    "tpu.trace_stop"() : () -> ()
    %286 = tpu.transpose %285, [1, 0, 2] : vector<4x8x8xf32> -> vector<8x4x8xf32>
    %287 = vector.shape_cast %286 : vector<8x4x8xf32> to vector<8x32xf32>
    %288 = arith.truncf %287 : vector<8x32xf32> to vector<8x32xbf16>
    %289 = vector.extract_strided_slice %6 {offsets = [2, 0, 0], sizes = [1, 32, 32], strides = [1, 1, 1]} : vector<3x96x32xbf16> to vector<1x32x32xbf16>
    %290 = vector.shape_cast %289 : vector<1x32x32xbf16> to vector<32x32xbf16>
    %cst_62 = arith.constant dense<0.000000e+00> : vector<8x32xf32>
    %291 = tpu.matmul %288, %290, %cst_62 {dimension_numbers = #tpu.dot_dimension_numbers<[1], [0], [0], [1], [0, 0, 1, 1], [], []>} : vector<8x32xbf16>, vector<32x32xbf16>, vector<8x32xf32> -> vector<8x32xf32>
    %292 = vector.extract_strided_slice %247 {offsets = [3, 0], sizes = [1, 32], strides = [1, 1]} : vector<10x64xf32> to vector<1x32xf32>
    %293 = vector.broadcast %292 : vector<1x32xf32> to vector<8x32xf32>
    %294 = arith.addf %291, %293 : vector<8x32xf32>
    %295 = arith.addf %245, %294 : vector<8x32xf32>
    %296 = vector.extract_strided_slice %247 {offsets = [4, 0], sizes = [1, 32], strides = [1, 1]} : vector<10x64xf32> to vector<1x32xf32>
    %297 = vector.extract_strided_slice %247 {offsets = [5, 0], sizes = [1, 32], strides = [1, 1]} : vector<10x64xf32> to vector<1x32xf32>
    %cst_63 = arith.constant dense<0.000000e+00> : vector<8xf32>
    %298 = vector.multi_reduction <add>, %295, %cst_63 [1] : vector<8x32xf32> to vector<8xf32>
    %299 = vector.shape_cast %298 : vector<8xf32> to vector<8x1xf32>
    %cst_64 = arith.constant 3.200000e+01 : f32
    %300 = vector.broadcast %cst_64 : f32 to vector<8x1xf32>
    %301 = arith.divf %299, %300 : vector<8x1xf32>
    %302 = arith.mulf %295, %295 : vector<8x32xf32>
    %cst_65 = arith.constant dense<0.000000e+00> : vector<8xf32>
    %303 = vector.multi_reduction <add>, %302, %cst_65 [1] : vector<8x32xf32> to vector<8xf32>
    %304 = vector.shape_cast %303 : vector<8xf32> to vector<8x1xf32>
    %cst_66 = arith.constant 3.200000e+01 : f32
    %305 = vector.broadcast %cst_66 : f32 to vector<8x1xf32>
    %306 = arith.divf %304, %305 : vector<8x1xf32>
    %307 = arith.mulf %301, %301 : vector<8x1xf32>
    %308 = arith.subf %306, %307 : vector<8x1xf32>
    %cst_67 = arith.constant 0.000000e+00 : f32
    %309 = vector.broadcast %cst_67 : f32 to vector<8x1xf32>
    %310 = arith.maximumf %308, %309 : vector<8x1xf32>
    %311 = vector.broadcast %301 : vector<8x1xf32> to vector<8x32xf32>
    %312 = arith.subf %295, %311 : vector<8x32xf32>
    %cst_68 = arith.constant 9.99999974E-6 : f32
    %313 = vector.broadcast %cst_68 : f32 to vector<8x1xf32>
    %314 = arith.addf %310, %313 : vector<8x1xf32>
    %315 = math.rsqrt %314 : vector<8x1xf32>
    %316 = vector.broadcast %315 : vector<8x1xf32> to vector<8x32xf32>
    %317 = arith.mulf %312, %316 : vector<8x32xf32>
    %318 = vector.broadcast %296 : vector<1x32xf32> to vector<8x32xf32>
    %319 = arith.mulf %317, %318 : vector<8x32xf32>
    %320 = vector.broadcast %297 : vector<1x32xf32> to vector<8x32xf32>
    %321 = arith.addf %319, %320 : vector<8x32xf32>
    %322 = arith.truncf %321 : vector<8x32xf32> to vector<8x32xbf16>
    %323 = vector.extract_strided_slice %5 {offsets = [2, 0, 0], sizes = [1, 32, 64], strides = [1, 1, 1]} : vector<3x32x64xbf16> to vector<1x32x64xbf16>
    %324 = vector.shape_cast %323 : vector<1x32x64xbf16> to vector<32x64xbf16>
    %cst_69 = arith.constant dense<0.000000e+00> : vector<8x64xf32>
    %325 = tpu.matmul %322, %324, %cst_69 {dimension_numbers = #tpu.dot_dimension_numbers<[1], [0], [0], [1], [0, 0, 1, 1], [], []>} : vector<8x32xbf16>, vector<32x64xbf16>, vector<8x64xf32> -> vector<8x64xf32>
    %326 = vector.extract_strided_slice %247 {offsets = [9, 0], sizes = [1, 64], strides = [1, 1]} : vector<10x64xf32> to vector<1x64xf32>
    %327 = vector.broadcast %326 : vector<1x64xf32> to vector<8x64xf32>
    %328 = arith.addf %325, %327 : vector<8x64xf32>
    %cst_70 = arith.constant 0.000000e+00 : f32
    %329 = vector.broadcast %cst_70 : f32 to vector<8x64xf32>
    %330 = arith.maximumf %328, %329 : vector<8x64xf32>
    %331 = arith.truncf %330 : vector<8x64xf32> to vector<8x64xbf16>
    %332 = vector.extract_strided_slice %6 {offsets = [2, 32, 0], sizes = [1, 64, 32], strides = [1, 1, 1]} : vector<3x96x32xbf16> to vector<1x64x32xbf16>
    %333 = vector.shape_cast %332 : vector<1x64x32xbf16> to vector<64x32xbf16>
    %cst_71 = arith.constant dense<0.000000e+00> : vector<8x32xf32>
    %334 = tpu.matmul %331, %333, %cst_71 {dimension_numbers = #tpu.dot_dimension_numbers<[1], [0], [0], [1], [0, 0, 1, 1], [], []>} : vector<8x64xbf16>, vector<64x32xbf16>, vector<8x32xf32> -> vector<8x32xf32>
    %335 = vector.extract_strided_slice %247 {offsets = [8, 0], sizes = [1, 32], strides = [1, 1]} : vector<10x64xf32> to vector<1x32xf32>
    %336 = vector.broadcast %335 : vector<1x32xf32> to vector<8x32xf32>
    %337 = arith.addf %334, %336 : vector<8x32xf32>
    %338 = arith.addf %321, %337 : vector<8x32xf32>
    %339 = vector.extract_strided_slice %247 {offsets = [6, 0], sizes = [1, 32], strides = [1, 1]} : vector<10x64xf32> to vector<1x32xf32>
    %340 = vector.extract_strided_slice %247 {offsets = [7, 0], sizes = [1, 32], strides = [1, 1]} : vector<10x64xf32> to vector<1x32xf32>
    %cst_72 = arith.constant dense<0.000000e+00> : vector<8xf32>
    %341 = vector.multi_reduction <add>, %338, %cst_72 [1] : vector<8x32xf32> to vector<8xf32>
    %342 = vector.shape_cast %341 : vector<8xf32> to vector<8x1xf32>
    %cst_73 = arith.constant 3.200000e+01 : f32
    %343 = vector.broadcast %cst_73 : f32 to vector<8x1xf32>
    %344 = arith.divf %342, %343 : vector<8x1xf32>
    %345 = arith.mulf %338, %338 : vector<8x32xf32>
    %cst_74 = arith.constant dense<0.000000e+00> : vector<8xf32>
    %346 = vector.multi_reduction <add>, %345, %cst_74 [1] : vector<8x32xf32> to vector<8xf32>
    %347 = vector.shape_cast %346 : vector<8xf32> to vector<8x1xf32>
    %cst_75 = arith.constant 3.200000e+01 : f32
    %348 = vector.broadcast %cst_75 : f32 to vector<8x1xf32>
    %349 = arith.divf %347, %348 : vector<8x1xf32>
    %350 = arith.mulf %344, %344 : vector<8x1xf32>
    %351 = arith.subf %349, %350 : vector<8x1xf32>
    %cst_76 = arith.constant 0.000000e+00 : f32
    %352 = vector.broadcast %cst_76 : f32 to vector<8x1xf32>
    %353 = arith.maximumf %351, %352 : vector<8x1xf32>
    %354 = vector.broadcast %344 : vector<8x1xf32> to vector<8x32xf32>
    %355 = arith.subf %338, %354 : vector<8x32xf32>
    %cst_77 = arith.constant 9.99999974E-6 : f32
    %356 = vector.broadcast %cst_77 : f32 to vector<8x1xf32>
    %357 = arith.addf %353, %356 : vector<8x1xf32>
    %358 = math.rsqrt %357 : vector<8x1xf32>
    %359 = vector.broadcast %358 : vector<8x1xf32> to vector<8x32xf32>
    %360 = arith.mulf %355, %359 : vector<8x32xf32>
    %361 = vector.broadcast %339 : vector<1x32xf32> to vector<8x32xf32>
    %362 = arith.mulf %360, %361 : vector<8x32xf32>
    %363 = vector.broadcast %340 : vector<1x32xf32> to vector<8x32xf32>
    %364 = arith.addf %362, %363 : vector<8x32xf32>
    %c0_78 = arith.constant 0 : index
    %c0_79 = arith.constant 0 : index
    %365 = vector.load %arg7[%c0_78, %c0_79] : memref<96x64xbf16, #tpu.memory_space<vmem>>, vector<96x64xbf16>
    %c0_80 = arith.constant 0 : index
    %c0_81 = arith.constant 0 : index
    %366 = vector.load %arg8[%c0_80, %c0_81] : memref<2x64xf32, #tpu.memory_space<vmem>>, vector<2x64xf32>
    %367 = vector.extract_strided_slice %364 {offsets = [0, 0], sizes = [1, 32], strides = [1, 1]} : vector<8x32xf32> to vector<1x32xf32>
    %368 = arith.truncf %367 : vector<1x32xf32> to vector<1x32xbf16>
    %369 = vector.extract_strided_slice %365 {offsets = [0, 0], sizes = [32, 64], strides = [1, 1]} : vector<96x64xbf16> to vector<32x64xbf16>
    %cst_82 = arith.constant dense<0.000000e+00> : vector<1x64xf32>
    %370 = tpu.matmul %368, %369, %cst_82 {dimension_numbers = #tpu.dot_dimension_numbers<[1], [0], [0], [1], [0, 0, 1, 1], [], []>} : vector<1x32xbf16>, vector<32x64xbf16>, vector<1x64xf32> -> vector<1x64xf32>
    %371 = vector.extract_strided_slice %366 {offsets = [0, 0], sizes = [1, 64], strides = [1, 1]} : vector<2x64xf32> to vector<1x64xf32>
    %372 = arith.addf %370, %371 : vector<1x64xf32>
    %cst_83 = arith.constant 0.000000e+00 : f32
    %373 = vector.broadcast %cst_83 : f32 to vector<1x64xf32>
    %374 = arith.maximumf %372, %373 : vector<1x64xf32>
    %375 = arith.truncf %374 : vector<1x64xf32> to vector<1x64xbf16>
    %376 = vector.extract_strided_slice %365 {offsets = [32, 0], sizes = [64, 64], strides = [1, 1]} : vector<96x64xbf16> to vector<64x64xbf16>
    %cst_84 = arith.constant dense<0.000000e+00> : vector<1x64xf32>
    %377 = tpu.matmul %375, %376, %cst_84 {dimension_numbers = #tpu.dot_dimension_numbers<[1], [0], [0], [1], [0, 0, 1, 1], [], []>} : vector<1x64xbf16>, vector<64x64xbf16>, vector<1x64xf32> -> vector<1x64xf32>
    %378 = vector.extract_strided_slice %366 {offsets = [1, 0], sizes = [1, 64], strides = [1, 1]} : vector<2x64xf32> to vector<1x64xf32>
    %379 = arith.addf %377, %378 : vector<1x64xf32>
    %380 = vector.extract_strided_slice %379 {offsets = [0, 0], sizes = [1, 8], strides = [1, 1]} : vector<1x64xf32> to vector<1x8xf32>
    %381 = vector.shape_cast %380 : vector<1x8xf32> to vector<1x1x8xf32>
    %c0_85 = arith.constant 0 : index
    %c0_86 = arith.constant 0 : index
    %c0_87 = arith.constant 0 : index
    %382 = vector.load %arg9[%c0_85, %c0_86, %c0_87] : memref<1x1x8xf32, #tpu.memory_space<vmem>>, vector<1x1x8xf32>
    tpu.vector_store %arg9[%c0_85, %c0_86, %c0_87], %381 {strides = array<i32>} : memref<1x1x8xf32, #tpu.memory_space<vmem>>, vector<1x1x8xf32>,
    return
  }
  func.func @transform_0(%arg0: i32) -> (i32, i32, i32) {
    %c0_i32 = arith.constant 0 : i32
    %c0_i32_0 = arith.constant 0 : i32
    %c0_i32_1 = arith.constant 0 : i32
    return %arg0, %c0_i32, %c0_i32_0 : i32, i32, i32
  }
  func.func @transform_1(%arg0: i32) -> (i32, i32) {
    %c0_i32 = arith.constant 0 : i32
    %c0_i32_0 = arith.constant 0 : i32
    %c0_i32_1 = arith.constant 0 : i32
    return %c0_i32, %c0_i32_0 : i32, i32
  }
  func.func @transform_2(%arg0: i32) -> (i32, i32, i32) {
    %c0_i32 = arith.constant 0 : i32
    %c0_i32_0 = arith.constant 0 : i32
    %c0_i32_1 = arith.constant 0 : i32
    %c0_i32_2 = arith.constant 0 : i32
    return %c0_i32, %c0_i32_0, %c0_i32_1 : i32, i32, i32
  }
  func.func @transform_3(%arg0: i32) -> (i32, i32, i32) {
    %c0_i32 = arith.constant 0 : i32
    %c0_i32_0 = arith.constant 0 : i32
    %c0_i32_1 = arith.constant 0 : i32
    %c0_i32_2 = arith.constant 0 : i32
    return %c0_i32, %c0_i32_0, %c0_i32_1 : i32, i32, i32
  }
  func.func @transform_4(%arg0: i32) -> (i32, i32, i32) {
    %c0_i32 = arith.constant 0 : i32
    %c0_i32_0 = arith.constant 0 : i32
    %c0_i32_1 = arith.constant 0 : i32
    %c0_i32_2 = arith.constant 0 : i32
    return %c0_i32, %c0_i32_0, %c0_i32_1 : i32, i32, i32
  }
  func.func @transform_5(%arg0: i32) -> (i32, i32, i32) {
    %c0_i32 = arith.constant 0 : i32
    %c0_i32_0 = arith.constant 0 : i32
    %c0_i32_1 = arith.constant 0 : i32
    %c0_i32_2 = arith.constant 0 : i32
    return %c0_i32, %c0_i32_0, %c0_i32_1 : i32, i32, i32
  }
  func.func @transform_6(%arg0: i32) -> (i32, i32) {
    %c0_i32 = arith.constant 0 : i32
    %c0_i32_0 = arith.constant 0 : i32
    %c0_i32_1 = arith.constant 0 : i32
    return %c0_i32, %c0_i32_0 : i32, i32
  }
  func.func @transform_7(%arg0: i32) -> (i32, i32) {
    %c0_i32 = arith.constant 0 : i32
    %c0_i32_0 = arith.constant 0 : i32
    %c0_i32_1 = arith.constant 0 : i32
    return %c0_i32, %c0_i32_0 : i32, i32
  }
  func.func @transform_8(%arg0: i32) -> (i32, i32, i32) {
    %c0_i32 = arith.constant 0 : i32
    %c0_i32_0 = arith.constant 0 : i32
    %c0_i32_1 = arith.constant 0 : i32
    return %arg0, %c0_i32, %c0_i32_0 : i32, i32, i32
  }
}

</mosaic_0001>

<bundles_post_ra>
// kernel: tpu_custom_call.1
= control target key start
LH: loop header
LB: loop body
LE: loop exit
PB: predicated region body
PF: predicated region fallthrough
CT: control target
= control target key end

     0   :  { %13 = vsyncpa [#allocation3], 0  ;;  %s6341_s0 = inlined_call_operand.vmem [shape: f32[2,8,32], index: 0, kind: input, shape index: {}]   ;;  %s6342_s1 = inlined_call_operand.vmem [shape: f32[8,32], index: 1, kind: input, shape index: {}]   ;;  %s6343_s2 = inlined_call_operand.vmem [shape: bf16[3,32,96], index: 2, kind: input, shape index: {}]   ;;  %s6344_s3 = inlined_call_operand.vmem [shape: bf16[3,32,64], index: 3, kind: input, shape index: {}]   ;;  %s6345_s4 = inlined_call_operand.vmem [shape: bf16[3,96,32], index: 4, kind: input, shape index: {}]   ;;  %s6346_s5 = inlined_call_operand.vmem [shape: f32[3,10,64], index: 5, kind: input, shape index: {}]   ;;  %s6347_s6 = inlined_call_operand.vmem [shape: bf16[96,64], index: 6, kind: input, shape index: {}]   ;;  %s6348_s7 = inlined_call_operand.vmem [shape: f32[2,64], index: 7, kind: input, shape index: {}]   ;;  %s6349_s8 = inlined_call_operand.hbm [shape: f32[2,1,8], index: 8, kind: output, shape index: {}]  }
   0x1   :  { %15 = vsyncpa [#allocation3 + $0x1], 0  ;;  %s5419_s27 = smov 0   ;;  %s5421_s28 = smov 0  }
   0x2   :  { %s5423_s29 = smov 0   ;;  %s5425_s30 = smov 0  }
   0x3 LB: > { %s5440_s9 = sadd.s32 4294967295, %s5358_s30   ;;  %s4671_s10 = sadd.s32 4294967294, %s5358_s30   ;;  %s5358_s30 = sphi %s5425_s30, %s6379_s30   ;;  %s5354_s29 = sphi %s5423_s29, %s6378_s29   ;;  %s5350_s28 = sphi %s5421_s28, %s6377_s28   ;;  %s5346_s27 = sphi %s5419_s27, %s6376_s27  }
   0x4   : > { %s5444_s11 = sadd.s32 1, %s5358_s30   ;;  %s201_s12 = sadd.s32 1, %s5354_s29 }
   0x5   : > { %s198_s13 = ssub.s32 %s5358_s30, %s5444_s11  ;;  %p211_p0 = scmp.ne.s32.totalorder %s5354_s29, %s5350_s28 }
   0x6   : > { %p199_p1 = scmp.eq.s32.totalorder %s198_s13, 0  ;;  %p212_p2 = scmp.eq.s32.totalorder %s5440_s9, 1 }
   0x7   : > { %p217_p3 = scmp.ne.s32.totalorder %s5350_s28, %s5346_s27  ;;  %p218_p4 = scmp.eq.s32.totalorder %s4671_s10, 1 }
   0x8   : > { %s5455_s14 = scalar_select %p199_p1, %s5354_s29, %s201_s12  }
   0x9   : > { %p5457_p5 = por %p212_p2, %p211_p0  ;;  %p5461_p6 = por %p218_p4, %p217_p3 }
   0xa   : > { %p4674_p7 = scmp.ge.s32.totalorder %s5358_s30, 1  ;;  %p264_p8 = scmp.lt.s32.totalorder %s5358_s30, 3 }
   0xc   : > { %p265_p9 = pnand %p4674_p7, %p264_p8 }
   0xd   : > { %v5199_v0 = vld [vmem:[%s6343_s2] sm:$0xff] (!%p265_p9)   ;;  %v427_v1 = vlaneseq (!%p265_p9)  ;;  %v5360_v2 = vmov (!%p265_p9), 0.0   ;;  %v5200_v3 = vld [vmem:[%s6343_s2 + $0x8] sm:$0xff] (!%p265_p9)   ;;  %vm5361_vm0 = vmmov (!%p265_p9), 0   ;;  %p296_p10 = scmp.lt.s32.totalorder (!%p265_p9), %s5440_s9, 1  ;;  %vm383_vm1 = vcmask (!%p265_p9), 261120  }
   0xe   : > { %268 = sbr.rel (%p265_p9) target bundleno = 7694 (0x1e0e), region = 52  ;;  %4875 = vmatprep.subr.bf16.mxu1 (!%p265_p9), %v5360_v2  ;;  %4889 = vmatprep.subr.bf16.mxu0 (!%p265_p9), %v5360_v2  ;;  %v5484_v5 = vld [vmem:[%s6346_s5] sm:$0xff] (!%p265_p9)  ;;  %s5362_s17 = smov (!%p265_p9), 32   ;;  %v5368_v26 = vmov (!%p265_p9), 1983009808   ;;  %vm918_vm2 = vcmask (!%p265_p9), 64512  }
   0xf   : > { %4876 = vmatpush3.bf16.msra.mxu1 (!%p265_p9), %v5199_v0  ;;  %4879 = vmatprep.mubr.msk.bf16.mxu1 (!%p265_p9), %vm5361_vm0, %v5360_v2  ;;  %v5478_v4 = vshrl.u32 (!%p265_p9), %v427_v1, 7  ;;  %v302_v7 = vld [vmem:[%s6342_s1] sm:$0xff] (!%p265_p9)  ;;  %s6364_s18 = smov (!%p265_p9), 112   ;;  %s6362_s19 = smov (!%p265_p9), 120   ;;  %v463_v27 = vunpack.c.l.s4 (!%p265_p9), %v5368_v26  ;;  %v5369_v29 = vmov (!%p265_p9), 1934713408  }
  0x10   : > { %4877 = vmatprep.subr.bf16.mxu1 (!%p265_p9), %v5360_v2  ;;  %4891 = vmatprep.mubr.msk.bf16.mxu0 (!%p265_p9), %vm5361_vm0, %v5360_v2  ;;  %s6360_s20 = smov (!%p265_p9), 104   ;;  %s6358_s21 = smov (!%p265_p9), 96   ;;  %v495_v30 = vunpack.c.l.s4 (!%p265_p9), %v5369_v29  ;;  %vm1154_vm3 = vcmask (!%p265_p9), 1043456   ;;  %vm1485_vm4 = vcmask (!%p265_p9), 130048   ;;  %vm1487_vm5 = vcmask (!%p265_p9), 195584  }
  0x11   : > { %v5490_v6 = vsub.s32 (!%p265_p9), 1, %v5478_v4  ;;  %v5517_v18 = vsub.s32 (!%p265_p9), 0, %v5478_v4  ;;  %v5527_v24 = vsub.s32 (!%p265_p9), 2, %v5478_v4  ;;  %s6356_s22 = smov (!%p265_p9), 64   ;;  %v464_v31 = vunpack.c.0.s8 (!%p265_p9), %v463_v27  ;;  %s6354_s10 = smov (!%p265_p9), 16  }
  0x12   : > { %v496_v34 = vunpack.c.0.s8 (!%p265_p9), %v495_v30  ;;  %s6352_s12 = smov (!%p265_p9), 8   ;;  %vm1667_vm6 = vcmask (!%p265_p9), 523264   ;;  %s6368_s25 = smov (!%p265_p9), 64   ;;  %vm4601_vm7 = vcmask (!%p265_p9), 57344  }
  0x13   : > { %4878 = vmatpush3.bf16.msra.mxu1 (!%p265_p9), %v5200_v3  ;;  %v435_v8 = vrot.slane (!%p265_p9), %v5484_v5, %v5490_v6  ;;  %v430_v19 = vrot.slane (!%p265_p9), %v5484_v5, %v5517_v18  ;;  %v444_v25 = vrot.slane (!%p265_p9), %v5484_v5, %v5527_v24  ;;  %v5535_v35 = vsub.s32 (!%p265_p9), %v464_v31, %v5478_v4  ;;  %s6373_s26 = smov (!%p265_p9), 120  }
  0x14   : > { %4883 = vmatprep.subr.bf16.mxu1 (!%p265_p9), %v5360_v2  ;;  %v5538_v42 = vsub.s32 (!%p265_p9), %v496_v34, %v5478_v4 }
  0x15   : > { %s297_s23 = scalar_select %p296_p10, %s5440_s9, 1  ;;  %437 = vrot.lane.b32.xlu0 %v435_v8, %s5362_s17 }
  0x17   : > { %s4675_s24 = sshll.u32 %s297_s23, 3  ;;  %s6370_s23 = smov 8  }
  0x18   : > { %s299_s13 = scalar_lea.vmem %s6341_s0, %s4675_s24  ;;  %s6371_s24 = smov 24  }
  0x19   : > { %v301_v9 = vld [vmem:[%s299_s13] sm:$0xff]  ;;  %s6350_s13 = smov 24  }
  0x1a   : > { %v5502_v10 = vadd.f32 %v302_v7, %v301_v9 }
  0x1c   : > { %v370_v11 = vpack.c.bf16 %v5502_v10, %v5502_v10 }
  0x1e   : > { %4880 = vmatmul.mubr.msk.bf16.vlgmr.msra.gmra.mrb[0].mxu1 %vm383_vm1, %v370_v11 }
  0x1f   : > { %4885 = vmatprep.mubr.msk.bf16.mxu1 %vm5361_vm0, %v5360_v2 }
  0x87   : > { %v438_v12 = vpop.permute.xlu0 %437 }
  0xf1   : > { %v5509_v13 = vpop.f32.mrb[0].mxu1 }
  0xf2   : > { %v440_v14 = vadd.f32 %v438_v12, %v5509_v13  ;;  %v4881_v15 = vpop.f32.mrb[1].mxu1  ;;  %v431_v22 = vadd.f32 %v430_v19, %v5509_v13 }
  0xf3   : > { %v424_v16 = vpop.f32.mrb[2].mxu1 }
  0xf4   : > { %603 = vrot.lane.b32.xlu1 %v440_v14, %s6364_s18  ;;  %601 = vrot.lane.b32.xlu0 %v440_v14, %s6362_s19  ;;  %v4882_v17 = vpop.f32.mrb[3].mxu1 }
  0xf8   : > { %605 = vrot.lane.b32.xlu1 %v440_v14, %s6360_s20  ;;  %607 = vrot.lane.b32.xlu0 %v440_v14, %s6358_s21 }
 0x166   : > { %v604_v20 = vpop.permute.xlu1 %603  ;;  %v602_v21 = vpop.permute.xlu0 %601 }
 0x167   : > { %611 = vrot.lane.b32.xlu0 %v604_v20, %s6358_s21  ;;  %609 = vrot.lane.b32.xlu1 %v602_v21, %s6358_s21 }
 0x16a   : > { %v606_v23 = vpop.permute.xlu1 %605  ;;  %v608_v28 = vpop.permute.xlu0 %607 }
 0x16b   : > { %613 = vrot.lane.b32.xlu1 %v606_v23, %s6358_s21  ;;  %451 = vrot.lane.b32.xlu0 %v431_v22, %s6362_s19 }
 0x16f   : > { %454 = vrot.lane.b32.xlu1 %v431_v22, %s6364_s18  ;;  %457 = vrot.lane.b32.xlu0 %v431_v22, %s6360_s20 }
 0x173   : > { %446 = vrot.lane.b32.xlu1 %v444_v25, %s6356_s22 }
 0x1d9   : > { %v610_v32 = vpop.permute.xlu1 %609  ;;  %v612_v33 = vpop.permute.xlu0 %611 }
 0x1da   : > { %v619_v36 = vcombine.low %v608_v28, %v612_v33  ;;  %v620_v37 = vcombine.high %v608_v28, %v612_v33 }
 0x1dc   : > { %v627_v43 = vrot.slane %v619_v36, %v5535_v35  ;;  %v634_v44 = vrot.slane %v620_v37, %v5535_v35 }
 0x1dd   : > { %v614_v38 = vpop.permute.xlu1 %613  ;;  %v452_v39 = vpop.permute.xlu0 %451 }
 0x1de   : > { %v635_v40 = vcombine.low %v610_v32, %v614_v38  ;;  %v636_v41 = vcombine.high %v610_v32, %v614_v38 }
 0x1e0   : > { %v643_v45 = vrot.slane %v635_v40, %v5535_v35  ;;  %v650_v46 = vrot.slane %v636_v41, %v5535_v35 }
 0x1e1   : > { %v455_v47 = vpop.permute.xlu1 %454  ;;  %v458_v48 = vpop.permute.xlu0 %457 }
 0x1e2   : > { %v651_v49 = vcombine.low %v627_v43, %v643_v45  ;;  %v652_v50 = vcombine.high %v627_v43, %v643_v45  ;;  %v667_v51 = vcombine.low %v634_v44, %v650_v46  ;;  %v668_v52 = vcombine.high %v634_v44, %v650_v46 }
 0x1e3   : > { %v460_v53 = vcombine.low %v431_v22, %v455_v47  ;;  %v461_v54 = vcombine.high %v431_v22, %v455_v47  ;;  %v476_v55 = vcombine.low %v452_v39, %v458_v48  ;;  %v477_v56 = vcombine.high %v452_v39, %v458_v48 }
 0x1e4   : > { %v659_v57 = vrot.slane %v651_v49, %v5538_v42  ;;  %v666_v58 = vrot.slane %v652_v50, %v5538_v42  ;;  %v675_v59 = vrot.slane %v667_v51, %v5538_v42  ;;  %v682_v60 = vrot.slane %v668_v52, %v5538_v42 }
 0x1e5   : > { %v468_v61 = vrot.slane %v460_v53, %v5535_v35  ;;  %v475_v62 = vrot.slane %v461_v54, %v5535_v35  ;;  %v484_v63 = vrot.slane %v476_v55, %v5535_v35  ;;  %v491_v0 = vrot.slane %v477_v56, %v5535_v35  ;;  %v447_v15 = vpop.permute.xlu1 %446 }
 0x1e6   : > { %v687_v1 = vcombine.low %v659_v57, %v666_v58  ;;  %v4681_v3 = vcombine.high %v659_v57, %v666_v58  ;;  %v703_v7 = vcombine.low %v675_v59, %v682_v60  ;;  %v4682_v8 = vcombine.high %v675_v59, %v682_v60 }
 0x1e7   : > { %v492_v9 = vcombine.low %v468_v61, %v484_v63  ;;  %v493_v11 = vcombine.high %v468_v61, %v484_v63  ;;  %v508_v12 = vcombine.low %v475_v62, %v491_v0  ;;  %v509_v14 = vcombine.high %v475_v62, %v491_v0 }
 0x1e8   : > { %v694_v16 = vrot.slane %v687_v1, %v5535_v35  ;;  %v702_v17 = vrot.slane %v4681_v3, %v5535_v35  ;;  %v710_v19 = vrot.slane %v703_v7, %v5535_v35  ;;  %v718_v20 = vrot.slane %v4682_v8, %v5535_v35 }
 0x1e9   : > { %v500_v21 = vrot.slane %v492_v9, %v5538_v42  ;;  %v507_v22 = vrot.slane %v493_v11, %v5538_v42  ;;  %v516_v23 = vrot.slane %v508_v12, %v5538_v42  ;;  %v523_v25 = vrot.slane %v509_v14, %v5538_v42 }
 0x1ea   : > { %v5561_v26 = vadd.f32 %v447_v15, %v5509_v13  ;;  %v719_v27 = vcombine.low %v694_v16, %v702_v17  ;;  %v735_v28 = vcombine.low %v710_v19, %v718_v20  ;;  %v720_v29 = vcombine.high %v694_v16, %v702_v17 }
 0x1eb   : > { %v528_v30 = vcombine.low %v500_v21, %v507_v22  ;;  %v4679_v31 = vcombine.high %v500_v21, %v507_v22  ;;  %v544_v32 = vcombine.low %v516_v23, %v523_v25  ;;  %v4680_v33 = vcombine.high %v516_v23, %v523_v25 }
 0x1ec   : > { %760 = vrot.lane.b32.xlu1 %v5561_v26, %s6362_s19  ;;  %762 = vrot.lane.b32.xlu0 %v5561_v26, %s6364_s18  ;;  %v727_v34 = vrot.slane %v719_v27, %v5538_v42  ;;  %v743_v36 = vrot.slane %v735_v28, %v5538_v42  ;;  %v734_v43 = vrot.slane %v720_v29, %v5538_v42 }
 0x1ed   : > { %v535_v13 = vrot.slane %v528_v30, %v5535_v35  ;;  %v543_v37 = vrot.slane %v4679_v31, %v5535_v35  ;;  %v551_v38 = vrot.slane %v544_v32, %v5535_v35  ;;  %v559_v39 = vrot.slane %v4680_v33, %v5535_v35 }
 0x1ee   : > { %v751_v40 = vcombine.low %v727_v34, %v743_v36  ;;  %v752_v41 = vcombine.high %v727_v34, %v743_v36  ;;  %v736_v44 = vcombine.high %v710_v19, %v718_v20 }
 0x1ef   : > { %v560_v45 = vcombine.low %v535_v13, %v543_v37  ;;  %v576_v46 = vcombine.low %v551_v38, %v559_v39  ;;  %v561_v56 = vcombine.high %v535_v13, %v543_v37  ;;  %v577_v57 = vcombine.high %v551_v38, %v559_v39 }
 0x1f0   : > { %764 = vrot.lane.b32.xlu1 %v5561_v26, %s6360_s20  ;;  %v755_v47 = vpack.c.bf16 %v751_v40, %v751_v40  ;;  %v756_v48 = vpack.c.bf16 %v752_v41, %v752_v41  ;;  %v750_v49 = vrot.slane %v736_v44, %v5538_v42 }
 0x1f1   : > { %v568_v50 = vrot.slane %v560_v45, %v5538_v42  ;;  %v584_v51 = vrot.slane %v576_v46, %v5538_v42  ;;  %v575_v0 = vrot.slane %v561_v56, %v5538_v42  ;;  %v591_v1 = vrot.slane %v577_v57, %v5538_v42 }
 0x1f2   : > { %v923_v52 = vsel %vm918_vm2, %v755_v47, 0  ;;  %v969_v53 = vsel %vm918_vm2, %v756_v48, 0  ;;  %v753_v54 = vcombine.low %v734_v43, %v750_v49  ;;  %v754_v55 = vcombine.high %v734_v43, %v750_v49 }
 0x1f3   : > { %4884 = vmatpush3.bf16.xpose.msra.mxu1 %v923_v52  ;;  %4890 = vmatpush3.bf16.xpose.msra.mxu0 %v969_v53  ;;  %v592_v58 = vcombine.low %v568_v50, %v584_v51  ;;  %v593_v59 = vcombine.high %v568_v50, %v584_v51  ;;  %v594_v8 = vcombine.low %v575_v0, %v591_v1 }
 0x1f4   : > { %4895 = vmatprep.subr.bf16.mxu1 %v5360_v2  ;;  %4901 = vmatprep.subr.bf16.mxu0 %v5360_v2  ;;  %v757_v60 = vpack.c.bf16 %v753_v54, %v753_v54  ;;  %v758_v61 = vpack.c.bf16 %v754_v55, %v754_v55  ;;  %v595_v9 = vcombine.high %v575_v0, %v591_v1 }
 0x1f5   : > { %v596_v62 = vpack.c.bf16 %v592_v58, %v592_v58  ;;  %v597_v63 = vpack.c.bf16 %v593_v59, %v593_v59  ;;  %v598_v11 = vpack.c.bf16 %v594_v8, %v594_v8 }
 0x1f6   : > { %v1015_v3 = vsel %vm918_vm2, %v757_v60, 0  ;;  %v1061_v7 = vsel %vm918_vm2, %v758_v61, 0  ;;  %v599_v12 = vpack.c.bf16 %v595_v9, %v595_v9 }
 0x1fa   : > { %4886 = vmatmul.mubr.msk.bf16.vlgmr.msra.gmra.mrb[4].mxu1 %vm918_vm2, %v596_v62  ;;  %4892 = vmatmul.mubr.msk.bf16.vlgmr.msra.gmra.mrb[0].mxu0 %vm918_vm2, %v597_v63 }
 0x1fb   : > { %4896 = vmatpush3.bf16.xpose.msra.mxu1 %v1015_v3  ;;  %4902 = vmatpush3.bf16.xpose.msra.mxu0 %v1061_v7 }
 0x1fc   : > { %4897 = vmatprep.mubr.msk.bf16.mxu1 %vm5361_vm0, %v5360_v2  ;;  %4903 = vmatprep.mubr.msk.bf16.mxu0 %vm5361_vm0, %v5360_v2 }
 0x1fd   : > { %4907 = vmatprep.subr.bf16.mxu1 %v5360_v2  ;;  %4913 = vmatprep.subr.bf16.mxu0 %v5360_v2 }
 0x202   : > { %4898 = vmatmul.mubr.msk.bf16.vlgmr.msra.gmra.mrb[8].mxu1 %vm918_vm2, %v598_v11  ;;  %4904 = vmatmul.mubr.msk.bf16.vlgmr.msra.gmra.mrb[4].mxu0 %vm918_vm2, %v599_v12 }
 0x203   : > { %4909 = vmatprep.mubr.msk.bf16.mxu1 %vm5361_vm0, %v5360_v2  ;;  %4915 = vmatprep.mubr.msk.bf16.mxu0 %vm5361_vm0, %v5360_v2 }
 0x25e   : > { %v761_v37 = vpop.permute.xlu1 %760  ;;  %v763_v38 = vpop.permute.xlu0 %762 }
 0x262   : > { %v765_v39 = vpop.permute.xlu1 %764 }
 0x2cd   : > { %v959_v14 = vpop.f32.mrb[4].mxu1  ;;  %v1005_v15 = vpop.f32.mrb[0].mxu0 }
 0x2ce   : > { %v4887_v16 = vpop.f32.mrb[5].mxu1  ;;  %v4893_v17 = vpop.f32.mrb[1].mxu0  ;;  %v1106_v19 = vsel %vm918_vm2, %v1005_v15, -inf  ;;  %v1103_v20 = vsel %vm918_vm2, %v959_v14, -inf }
 0x2cf   : > { %1107 = vmax.xlane.f32.xlu1 %v1106_v19  ;;  %v1008_v21 = vpop.f32.mrb[2].mxu0  ;;  %1104 = vmax.xlane.f32.xlu0 %v1103_v20  ;;  %v962_v22 = vpop.f32.mrb[6].mxu1 }
 0x2d0   : > { %v4888_v23 = vpop.f32.mrb[7].mxu1  ;;  %v4894_v25 = vpop.f32.mrb[3].mxu0 }
 0x2d5   : > { %v1051_v27 = vpop.f32.mrb[8].mxu1  ;;  %v1097_v28 = vpop.f32.mrb[4].mxu0 }
 0x2d6   : > { %v4899_v29 = vpop.f32.mrb[9].mxu1  ;;  %v4905_v30 = vpop.f32.mrb[5].mxu0  ;;  %v1109_v31 = vsel %vm918_vm2, %v1051_v27, -inf  ;;  %v1112_v13 = vsel %vm918_vm2, %v1097_v28, -inf }
 0x2d7   : > { %v1100_v32 = vpop.f32.mrb[6].mxu0  ;;  %1110 = vmax.xlane.f32.xlu0 %v1109_v31  ;;  %v1054_v33 = vpop.f32.mrb[10].mxu1 }
 0x2d8   : > { %v4900_v34 = vpop.f32.mrb[11].mxu1  ;;  %v4906_v36 = vpop.f32.mrb[7].mxu0 }
 0x2db   : > { %1113 = vmax.xlane.f32.xlu0 %v1112_v13 }
 0x2e0   : > { %768 = vrot.lane.b32.xlu1 %v761_v37, %s6356_s22 }
 0x2f1   : > { %766 = vrot.lane.b32.xlu0 %v5561_v26, %s6356_s22 }
 0x35c   : > { %v1108_v40 = vpop.xlane.xlu1 %1107  ;;  %v1105_v41 = vpop.xlane.xlu0 %1104 }
 0x35d   : > { %v1116_v43 = vsub.f32 %v1005_v15, %v1108_v40  ;;  %v1115_v44 = vsub.f32 %v959_v14, %v1105_v41 }
 0x35f   : > { %v1121_v45 = vmul.f32 1.442695, %v1116_v43  ;;  %v1119_v46 = vmul.f32 1.442695, %v1115_v44 }
 0x360   : > { %v769_v61 = vpop.permute.xlu1 %768 }
 0x361   : > { %5235 = vpow2.f32 %v1121_v45 }
 0x362   : > { %5237 = vpow2.f32 %v1119_v46 }
 0x364   : > { %v1111_v50 = vpop.xlane.xlu0 %1110 }
 0x365   : > { %v1117_v53 = vsub.f32 %v1051_v27, %v1111_v50 }
 0x367   : > { %v1123_v55 = vmul.f32 1.442695, %v1117_v53 }
 0x368   : > { %v1114_v51 = vpop.xlane.xlu0 %1113 }
 0x369   : > { %v1118_v52 = vsub.f32 %v1097_v28, %v1114_v51 }
 0x36b   : > { %v5608_v47 = vpop.eup %5235  ;;  %v1125_v54 = vmul.f32 1.442695, %v1118_v52 }
 0x36c   : > { %v5610_v48 = vpop.eup %5237  ;;  %v1130_v49 = vsel %vm918_vm2, %v5608_v47, 0.0  ;;  %v767_v60 = vpop.permute.xlu0 %766 }
 0x36d   : > { %v1127_v26 = vsel %vm918_vm2, %v5610_v48, 0.0  ;;  %1131 = vadd.xlane.f32.xlu0 %v1130_v49  ;;  %5239 = vpow2.f32 %v1125_v54 }
 0x36e   : > { %1128 = vadd.xlane.f32.xlu1 %v1127_v26  ;;  %5241 = vpow2.f32 %v1123_v55 }
 0x377   : > { %v5618_v56 = vpop.eup %5239 }
 0x378   : > { %v5620_v57 = vpop.eup %5241  ;;  %v1136_v58 = vsel %vm918_vm2, %v5618_v56, 0.0 }
 0x379   : > { %v1133_v59 = vsel %vm918_vm2, %v5620_v57, 0.0 }
 0x37f   : > { %770 = vrot.lane.b32.xlu1 %v763_v38, %s6356_s22 }
 0x383   : > { %772 = vrot.lane.b32.xlu0 %v765_v39, %s6356_s22  ;;  %s6374_s22 = smov 104  }
 0x3a2   : > { %1137 = vadd.xlane.f32.xlu0 %v1136_v58 }
 0x3a3   : > { %1134 = vadd.xlane.f32.xlu1 %v1133_v59 }
 0x3fa   : > { %v1132_v62 = vpop.xlane.xlu0 %1131 }
 0x3fb   : > { %v1129_v63 = vpop.xlane.xlu1 %1128  ;;  %5243 = vrcp.f32 %v1132_v62 }
 0x3fc   : > { %5245 = vrcp.f32 %v1129_v63 }
 0x3fe   : > { %v773_v0 = vpop.permute.xlu0 %772 }
 0x3ff   : > { %v771_v1 = vpop.permute.xlu1 %770  ;;  %v794_v3 = vcombine.low %v769_v61, %v773_v0  ;;  %v795_v7 = vcombine.high %v769_v61, %v773_v0 }
 0x400   : > { %v778_v8 = vcombine.low %v767_v60, %v771_v1  ;;  %v779_v9 = vcombine.high %v767_v60, %v771_v1 }
 0x401   : > { %v802_v11 = vrot.slane %v794_v3, %v5535_v35  ;;  %v809_v12 = vrot.slane %v795_v7, %v5535_v35 }
 0x402   : > { %v786_v14 = vrot.slane %v778_v8, %v5535_v35  ;;  %v793_v15 = vrot.slane %v779_v9, %v5535_v35 }
 0x404   : > { %v810_v16 = vcombine.low %v786_v14, %v802_v11  ;;  %v811_v17 = vcombine.high %v786_v14, %v802_v11  ;;  %v826_v19 = vcombine.low %v793_v15, %v809_v12  ;;  %v827_v20 = vcombine.high %v793_v15, %v809_v12 }
 0x405   : > { %v5244_v41 = vpop.eup %5243 }
 0x406   : > { %v818_v21 = vrot.slane %v810_v16, %v5538_v42  ;;  %v825_v22 = vrot.slane %v811_v17, %v5538_v42  ;;  %v834_v23 = vrot.slane %v826_v19, %v5538_v42  ;;  %v841_v25 = vrot.slane %v827_v20, %v5538_v42  ;;  %v5246_v45 = vpop.eup %5245 }
 0x407   : > { %v1143_v51 = vmul.f32 %v5246_v45, %v5610_v48  ;;  %v1144_v52 = vmul.f32 %v5244_v41, %v5608_v47 }
 0x408   : > { %v846_v27 = vcombine.low %v818_v21, %v825_v22  ;;  %v4683_v28 = vcombine.high %v818_v21, %v825_v22  ;;  %v862_v29 = vcombine.low %v834_v23, %v841_v25  ;;  %v4684_v30 = vcombine.high %v834_v23, %v841_v25 }
 0x409   : > { %v1147_v61 = vpack.c.bf16 %v1143_v51, %v1143_v51  ;;  %v1148_v62 = vpack.c.bf16 %v1144_v52, %v1144_v52 }
 0x40a   : > { %v853_v31 = vrot.slane %v846_v27, %v5535_v35  ;;  %v861_v32 = vrot.slane %v4683_v28, %v5535_v35  ;;  %v869_v33 = vrot.slane %v862_v29, %v5535_v35  ;;  %v877_v34 = vrot.slane %v4684_v30, %v5535_v35 }
 0x40c   : > { %v878_v36 = vcombine.low %v853_v31, %v861_v32  ;;  %v879_v13 = vcombine.high %v853_v31, %v861_v32  ;;  %v894_v37 = vcombine.low %v869_v33, %v877_v34  ;;  %v895_v38 = vcombine.high %v869_v33, %v877_v34 }
 0x40e   : > { %v886_v39 = vrot.slane %v878_v36, %v5538_v42  ;;  %v893_v40 = vrot.slane %v879_v13, %v5538_v42  ;;  %v902_v43 = vrot.slane %v894_v37, %v5538_v42  ;;  %v909_v44 = vrot.slane %v895_v38, %v5538_v42 }
 0x410   : > { %v910_v46 = vcombine.low %v886_v39, %v902_v43  ;;  %v911_v49 = vcombine.high %v886_v39, %v902_v43  ;;  %v912_v26 = vcombine.low %v893_v40, %v909_v44  ;;  %v913_v50 = vcombine.high %v893_v40, %v909_v44  ;;  %v5201_v43 = vld [vmem:[%s6345_s4] sm:$0xff]  }
 0x412   : > { %v914_v53 = vpack.c.bf16 %v910_v46, %v910_v46  ;;  %v915_v54 = vpack.c.bf16 %v911_v49, %v911_v49  ;;  %v916_v59 = vpack.c.bf16 %v912_v26, %v912_v26  ;;  %v917_v60 = vpack.c.bf16 %v913_v50, %v913_v50 }
 0x414   : > { %v1156_v55 = vsel %vm1154_vm3, %v914_v53, 0  ;;  %v1202_v58 = vsel %vm1154_vm3, %v915_v54, 0  ;;  %v1248_v47 = vsel %vm1154_vm3, %v916_v59, 0  ;;  %v1294_v48 = vsel %vm1154_vm3, %v917_v60, 0  ;;  %v5202_v59 = vld [vmem:[%s6345_s4 + $0x8] sm:$0xff]  }
 0x415   : > { %4908 = vmatpush3.bf16.msra.mxu1 %v1156_v55  ;;  %4914 = vmatpush3.bf16.msra.mxu0 %v1202_v58 }
 0x416   : > { %4919 = vmatprep.subr.bf16.mxu1 %v5360_v2  ;;  %4925 = vmatprep.subr.bf16.mxu0 %v5360_v2 }
 0x418   : > { %4910 = vmatmul.mubr.msk.bf16.vlgmr.msra.gmra.mrb[12].mxu1 %vm918_vm2, %v1147_v61  ;;  %4916 = vmatmul.mubr.msk.bf16.vlgmr.msra.gmra.mrb[8].mxu0 %vm918_vm2, %v1148_v62 }
 0x419   : > { %4920 = vmatpush3.bf16.msra.mxu1 %v1248_v47  ;;  %4926 = vmatpush3.bf16.msra.mxu0 %v1294_v48 }
 0x41a   : > { %4921 = vmatprep.mubr.msk.bf16.mxu1 %vm5361_vm0, %v5360_v2  ;;  %4927 = vmatprep.mubr.msk.bf16.mxu0 %vm5361_vm0, %v5360_v2 }
 0x41b   : > { %4931 = vmatprep.subr.bf16.mxu1 %v5360_v2  ;;  %4939 = vmatprep.subr.bf16.mxu0 %v5360_v2 }
 0x42f   : > { %v1138_v63 = vpop.xlane.xlu0 %1137 }
 0x430   : > { %v1135_v0 = vpop.xlane.xlu1 %1134  ;;  %5247 = vrcp.f32 %v1138_v63 }
 0x431   : > { %5249 = vrcp.f32 %v1135_v0 }
 0x43a   : > { %v5248_v1 = vpop.eup %5247 }
 0x43b   : > { %v5250_v3 = vpop.eup %5249  ;;  %v1146_v7 = vmul.f32 %v5248_v1, %v5618_v56 }
 0x43c   : > { %v1145_v8 = vmul.f32 %v5250_v3, %v5620_v57 }
 0x43d   : > { %v1150_v9 = vpack.c.bf16 %v1146_v7, %v1146_v7 }
 0x43e   : > { %v1149_v11 = vpack.c.bf16 %v1145_v8, %v1145_v8 }
 0x43f   : > { %4928 = vmatmul.mubr.msk.bf16.vlgmr.msra.gmra.mrb[12].mxu0 %vm918_vm2, %v1150_v9 }
 0x440   : > { %4922 = vmatmul.mubr.msk.bf16.vlgmr.msra.gmra.mrb[16].mxu1 %vm918_vm2, %v1149_v11  ;;  %4943 = vmatprep.mubr.msk.bf16.mxu0 %vm5361_vm0, %v5360_v2 }
 0x441   : > { %4935 = vmatprep.mubr.msk.bf16.mxu1 %vm5361_vm0, %v5360_v2  ;;  %4932 = vmatpush3.bf16.msra.mxu1 %v5201_v43  ;;  %v5724_v43 = vsub.s32 4, %v5478_v4 }
 0x442   : > { %4933 = vmatprep.subr.bf16.mxu1 %v5360_v2 }
 0x445   : > { %4934 = vmatpush3.bf16.msra.mxu1 %v5202_v59 }
 0x446   : > { %4947 = vmatprep.subr.bf16.mxu1 %v5360_v2 }
 0x4eb   : > { %v1192_v12 = vpop.f32.mrb[12].mxu1  ;;  %v1238_v14 = vpop.f32.mrb[8].mxu0 }
 0x4ec   : > { %v4911_v15 = vpop.f32.mrb[13].mxu1  ;;  %v4917_v16 = vpop.f32.mrb[9].mxu0 }
 0x4ed   : > { %v1195_v17 = vpop.f32.mrb[14].mxu1  ;;  %v1241_v56 = vpop.f32.mrb[10].mxu0 }
 0x4ee   : > { %v4912_v19 = vpop.f32.mrb[15].mxu1  ;;  %v4918_v57 = vpop.f32.mrb[11].mxu0 }
 0x4ef   : > { %v5700_v19 = vsub.s32 3, %v5478_v4 }
 0x4f1   : > { %v1493_v57 = vrot.slane %v5484_v5, %v5700_v19 }
 0x512   : > { %v1330_v20 = vpop.f32.mrb[12].mxu0 }
 0x513   : > { %v1284_v21 = vpop.f32.mrb[16].mxu1  ;;  %v1352_v22 = vcombine.low %v1238_v14, %v1330_v20  ;;  %v1353_v23 = vcombine.high %v1238_v14, %v1330_v20  ;;  %v4929_v25 = vpop.f32.mrb[13].mxu0 }
 0x514   : > { %v1336_v27 = vcombine.low %v1192_v12, %v1284_v21  ;;  %v1337_v28 = vcombine.high %v1192_v12, %v1284_v21  ;;  %v4923_v29 = vpop.f32.mrb[17].mxu1  ;;  %v1333_v30 = vpop.f32.mrb[14].mxu0 }
 0x515   : > { %v1360_v31 = vrot.slane %v1352_v22, %v5535_v35  ;;  %v1367_v32 = vrot.slane %v1353_v23, %v5535_v35  ;;  %v1287_v33 = vpop.f32.mrb[18].mxu1  ;;  %v4930_v34 = vpop.f32.mrb[15].mxu0 }
 0x516   : > { %v1344_v36 = vrot.slane %v1336_v27, %v5535_v35  ;;  %v1351_v13 = vrot.slane %v1337_v28, %v5535_v35  ;;  %v4924_v37 = vpop.f32.mrb[19].mxu1  ;;  %v5206_v33 = vld [vmem:[%s6345_s4 + $0x18] sm:$0xff]  }
 0x518   : > { %v1368_v38 = vcombine.low %v1344_v36, %v1360_v31  ;;  %v1369_v39 = vcombine.high %v1344_v36, %v1360_v31  ;;  %v1384_v40 = vcombine.low %v1351_v13, %v1367_v32  ;;  %v1385_v41 = vcombine.high %v1351_v13, %v1367_v32  ;;  %v5203_v31 = vld [vmem:[%s6344_s3] sm:$0xff]   ;;  %v5204_v32 = vld [vmem:[%s6344_s3 + $0x8] sm:$0xff]  }
 0x519   : > { %4940 = vmatpush3.bf16.msra.mxu0 %v5203_v31  ;;  %v5774_v31 = vsub.s32 7, %v5478_v4 }
 0x51a   : > { %v1376_v44 = vrot.slane %v1368_v38, %v5538_v42  ;;  %v1383_v45 = vrot.slane %v1369_v39, %v5538_v42  ;;  %v1392_v46 = vrot.slane %v1384_v40, %v5538_v42  ;;  %v1399_v49 = vrot.slane %v1385_v41, %v5538_v42  ;;  %4941 = vmatprep.subr.bf16.mxu0 %v5360_v2 }
 0x51c   : > { %v1404_v26 = vcombine.low %v1376_v44, %v1383_v45  ;;  %v4693_v50 = vcombine.high %v1376_v44, %v1383_v45  ;;  %v1420_v51 = vcombine.low %v1392_v46, %v1399_v49  ;;  %v4694_v52 = vcombine.high %v1392_v46, %v1399_v49 }
 0x51d   : > { %4942 = vmatpush3.bf16.msra.mxu0 %v5204_v32  ;;  %v5727_v44 = vsub.s32 5, %v5478_v4  ;;  %v1570_v46 = vrot.slane %v5484_v5, %v5724_v43 }
 0x51e   : > { %v1411_v53 = vrot.slane %v1404_v26, %v5535_v35  ;;  %v1419_v54 = vrot.slane %v4693_v50, %v5535_v35  ;;  %v1427_v55 = vrot.slane %v1420_v51, %v5535_v35  ;;  %v1435_v58 = vrot.slane %v4694_v52, %v5535_v35  ;;  %4959 = vmatprep.subr.bf16.mxu0 %v5360_v2 }
 0x51f   : > { %v1575_v50 = vrot.slane %v5484_v5, %v5727_v44  ;;  %v365_v5 = vld [vmem:[%s6346_s5 + $0x8] sm:$0x3] }
 0x520   : > { %v1437_v60 = vcombine.high %v1411_v53, %v1419_v54  ;;  %v1453_v61 = vcombine.high %v1427_v55, %v1435_v58  ;;  %v1436_v62 = vcombine.low %v1411_v53, %v1419_v54  ;;  %v1452_v47 = vcombine.low %v1427_v55, %v1435_v58  ;;  %v5207_v54 = vld [vmem:[%s6345_s4 + $0x20] sm:$0xff]   ;;  %v5208_v55 = vld [vmem:[%s6345_s4 + $0x28] sm:$0xff]  }
 0x521   : > { %v1581_v58 = vrot.slane %v365_v5, %v5490_v6 }
 0x522   : > { %v1451_v48 = vrot.slane %v1437_v60, %v5538_v42  ;;  %v1467_v63 = vrot.slane %v1453_v61, %v5538_v42  ;;  %v1444_v0 = vrot.slane %v1436_v62, %v5538_v42  ;;  %v1460_v1 = vrot.slane %v1452_v47, %v5538_v42 }
 0x524   : > { %v1470_v3 = vcombine.low %v1451_v48, %v1467_v63  ;;  %v1469_v7 = vcombine.high %v1444_v0, %v1460_v1  ;;  %v1471_v8 = vcombine.high %v1451_v48, %v1467_v63  ;;  %v1468_v9 = vcombine.low %v1444_v0, %v1460_v1 }
 0x525   : > { %v1642_v0 = vrot.slane %v365_v5, %v5517_v18 }
 0x526   : > { %1477 = vrot.lane.b32.xlu1 %v1470_v3, %s6354_s10  ;;  %1473 = vrot.lane.b32.xlu0 %v1469_v7, %s6352_s12  ;;  %s6375_s10 = smov 96   ;;  %s5373_s12 = smov [#allocation2]  }
 0x52a   : > { %1481 = vrot.lane.b32.xlu1 %v1471_v8, %s6350_s13  ;;  %s6369_s13 = smov 16  }
 0x598   : > { %v1478_v11 = vpop.permute.xlu1 %1477  ;;  %v1474_v12 = vpop.permute.xlu0 %1473 }
 0x599   : > { %v1484_v14 = vsel %vm918_vm2, %v1468_v9, %v1474_v12 }
 0x59a   : > { %v1486_v16 = vsel %vm1485_vm4, %v1484_v14, %v1478_v11 }
 0x59c   : > { %v1482_v15 = vpop.permute.xlu1 %1481 }
 0x59d   : > { %v1488_v17 = vsel %vm1487_vm5, %v1486_v16, %v1482_v15  ;;  %v5209_v16 = vld [vmem:[%s6343_s2 + $0x10] sm:$0xff]  }
 0x59e   : > { %v1489_v56 = vpack.c.bf16 %v1488_v17, %v1488_v17  ;;  %v5210_v17 = vld [vmem:[%s6343_s2 + $0x18] sm:$0xff]  }
 0x5a0   : > { %4936 = vmatmul.mubr.msk.bf16.vlgmr.msra.gmra.mrb[20].mxu1 %vm383_vm1, %v1489_v56  ;;  %v5765_v56 = vld [vmem:[%s6346_s5 + $0x10] sm:$0xff] }
 0x5a1   : > { %4955 = vmatprep.mubr.msk.bf16.mxu1 %vm5361_vm0, %v5360_v2 }
 0x673   : > { %v1543_v20 = vpop.f32.mrb[20].mxu1 }
 0x674   : > { %v1544_v21 = vadd.f32 %v1543_v20, %v1493_v57  ;;  %v4937_v22 = vpop.f32.mrb[21].mxu1  ;;  %v1802_v57 = vrot.slane %v5765_v56, %v5490_v6 }
 0x675   : > { %v1546_v23 = vpop.f32.mrb[22].mxu1 }
 0x676   : > { %v1549_v25 = vadd.f32 %v1544_v21, %v5502_v10  ;;  %v4938_v27 = vpop.f32.mrb[23].mxu1  ;;  %v5205_v10 = vld [vmem:[%s6345_s4 + $0x10] sm:$0xff]  }
 0x677   : > { %4948 = vmatpush3.bf16.msra.mxu1 %v5205_v10  ;;  %v5295_v10 = vld [vmem:[%s6346_s5] sm:$0xff] }
 0x678   : > { %v1550_v28 = vsel %vm383_vm1, %v1549_v25, 0.0  ;;  %v1555_v29 = vmul.f32 %v1549_v25, %v1549_v25  ;;  %4949 = vmatprep.subr.bf16.mxu1 %v5360_v2 }
 0x679   : > { %1551 = vadd.xlane.f32.xlu0 %v1550_v28 }
 0x67a   : > { %v1556_v30 = vsel %vm383_vm1, %v1555_v29, 0.0 }
 0x67b   : > { %1557 = vadd.xlane.f32.xlu1 %v1556_v30  ;;  %4950 = vmatpush3.bf16.msra.mxu1 %v5206_v33  ;;  %v5771_v30 = vsub.s32 6, %v5478_v4 }
 0x67c   : > { %4951 = vmatprep.subr.bf16.mxu1 %v5360_v2 }
 0x67d   : > { %v1731_v33 = vrot.slane %v5295_v10, %v5771_v30 }
 0x67f   : > { %4952 = vmatpush3.bf16.msra.mxu1 %v5207_v54  ;;  %v1811_v54 = vrot.slane %v5765_v56, %v5527_v24 }
 0x680   : > { %4953 = vmatprep.subr.bf16.mxu1 %v5360_v2 }
 0x683   : > { %4954 = vmatpush3.bf16.msra.mxu1 %v5208_v55 }
 0x684   : > { %4973 = vmatprep.subr.bf16.mxu1 %v5360_v2 }
 0x68c   : > { %1804 = vrot.lane.b32.xlu1 %v1802_v57, %s5362_s17 }
 0x706   : > { %v1552_v34 = vpop.xlane.xlu0 %1551 }
 0x707   : > { %v1554_v36 = vmul.f32 0.03125, %v1552_v34 }
 0x708   : > { %v1558_v13 = vpop.xlane.xlu1 %1557 }
 0x709   : > { %v1560_v37 = vmul.f32 %v1554_v36, %v1554_v36  ;;  %v1559_v38 = vmul.f32 0.03125, %v1558_v13  ;;  %v1563_v45 = vsub.f32 %v1549_v25, %v1554_v36  ;;  %v1736_v13 = vrot.slane %v5295_v10, %v5774_v31 }
 0x70b   : > { %v1561_v39 = vsub.f32 %v1559_v38, %v1560_v37 }
 0x70c   : > { %v1805_v4 = vpop.permute.xlu1 %1804 }
 0x70d   : > { %v1562_v40 = vmax.f32 %v1561_v39, 0.0 }
 0x70f   : > { %v1564_v41 = vadd.f32 1e-05, %v1562_v40 }
 0x711   : > { %5251 = vrsqrt.f32 %v1564_v41 }
 0x71b   : > { %v5252_v49 = vpop.eup %5251 }
 0x71c   : > { %v1566_v26 = vmul.f32 %v5252_v49, %v1563_v45 }
 0x71e   : > { %v1571_v51 = vmul.f32 %v1570_v46, %v1566_v26  ;;  %v1797_v26 = vrot.slane %v5765_v56, %v5517_v18 }
 0x720   : > { %v1576_v52 = vadd.f32 %v1575_v50, %v1571_v51 }
 0x722   : > { %v1577_v53 = vpack.c.bf16 %v1576_v52, %v1576_v52 }
 0x724   : > { %4944 = vmatmul.mubr.msk.bf16.vlgmr.msra.gmra.mrb[16].mxu0 %vm383_vm1, %v1577_v53 }
 0x725   : > { %4963 = vmatprep.mubr.msk.bf16.mxu0 %vm5361_vm0, %v5360_v2  ;;  %4960 = vmatpush3.bf16.msra.mxu0 %v5209_v16 }
 0x726   : > { %4961 = vmatprep.subr.bf16.mxu0 %v5360_v2 }
 0x729   : > { %4962 = vmatpush3.bf16.msra.mxu0 %v5210_v17 }
 0x72a   : > { %4967 = vmatprep.subr.bf16.mxu0 %v5360_v2 }
 0x7f7   : > { %v1631_v59 = vpop.f32.mrb[16].mxu0 }
 0x7f8   : > { %v1632_v60 = vadd.f32 %v1631_v59, %v1581_v58  ;;  %v4945_v61 = vpop.f32.mrb[17].mxu0 }
 0x7f9   : > { %v1634_v62 = vpop.f32.mrb[18].mxu0 }
 0x7fa   : > { %v1637_v47 = vmax.f32 %v1632_v60, 0.0  ;;  %v4946_v48 = vpop.f32.mrb[19].mxu0 }
 0x7fc   : > { %v1638_v63 = vpack.c.bf16 %v1637_v47, %v1637_v47 }
 0x7fe   : > { %4956 = vmatmul.mubr.msk.bf16.vlgmr.msra.gmra.mrb[24].mxu1 %vm1667_vm6, %v1638_v63 }
 0x7ff   : > { %4975 = vmatprep.mubr.msk.bf16.mxu1 %vm5361_vm0, %v5360_v2 }
 0x8d1   : > { %v1705_v1 = vpop.f32.mrb[24].mxu1 }
 0x8d2   : > { %v1706_v3 = vadd.f32 %v1705_v1, %v1642_v0  ;;  %v4957_v7 = vpop.f32.mrb[25].mxu1 }
 0x8d3   : > { %v1708_v8 = vpop.f32.mrb[26].mxu1 }
 0x8d4   : > { %v1711_v9 = vadd.f32 %v1706_v3, %v1576_v52  ;;  %v4958_v11 = vpop.f32.mrb[27].mxu1 }
 0x8d6   : > { %v1712_v12 = vsel %vm383_vm1, %v1711_v9, 0.0  ;;  %v1716_v14 = vmul.f32 %v1711_v9, %v1711_v9 }
 0x8d7   : > { %1713 = vadd.xlane.f32.xlu0 %v1712_v12 }
 0x8d8   : > { %v1717_v15 = vsel %vm383_vm1, %v1716_v14, 0.0 }
 0x8db   : > { %1718 = vadd.xlane.f32.xlu0 %v1717_v15 }
 0x964   : > { %v1714_v20 = vpop.xlane.xlu0 %1713 }
 0x965   : > { %v1715_v21 = vmul.f32 0.03125, %v1714_v20 }
 0x967   : > { %v1721_v23 = vmul.f32 %v1715_v21, %v1715_v21  ;;  %v1724_v32 = vsub.f32 %v1711_v9, %v1715_v21 }
 0x968   : > { %v1719_v22 = vpop.xlane.xlu0 %1718 }
 0x969   : > { %v1720_v25 = vmul.f32 0.03125, %v1719_v22 }
 0x96b   : > { %v1722_v27 = vsub.f32 %v1720_v25, %v1721_v23 }
 0x96d   : > { %v1723_v28 = vmax.f32 %v1722_v27, 0.0 }
 0x96f   : > { %v1725_v29 = vadd.f32 1e-05, %v1723_v28 }
 0x971   : > { %5253 = vrsqrt.f32 %v1725_v29 }
 0x97b   : > { %v5254_v34 = vpop.eup %5253 }
 0x97c   : > { %v1727_v36 = vmul.f32 %v5254_v34, %v1724_v32 }
 0x97e   : > { %v1732_v37 = vmul.f32 %v1731_v33, %v1727_v36 }
 0x980   : > { %v5781_v38 = vadd.f32 %v1736_v13, %v1732_v37 }
 0x982   : > { %v1738_v39 = vpack.c.bf16 %v5781_v38, %v5781_v38 }
 0x984   : > { %4964 = vmatmul.mubr.msk.bf16.vlgmr.msra.gmra.mrb[20].mxu0 %vm383_vm1, %v1738_v39 }
 0x985   : > { %4969 = vmatprep.mubr.msk.bf16.mxu0 %vm5361_vm0, %v5360_v2 }
 0xa57   : > { %v5788_v40 = vpop.f32.mrb[20].mxu0 }
 0xa58   : > { %v1807_v41 = vadd.f32 %v1805_v4, %v5788_v40  ;;  %v4965_v45 = vpop.f32.mrb[21].mxu0  ;;  %v1798_v52 = vadd.f32 %v1797_v26, %v5788_v40 }
 0xa59   : > { %v1791_v46 = vpop.f32.mrb[22].mxu0 }
 0xa5a   : > { %1970 = vrot.lane.b32.xlu1 %v1807_v41, %s6364_s18  ;;  %1968 = vrot.lane.b32.xlu0 %v1807_v41, %s6362_s19  ;;  %v4966_v49 = vpop.f32.mrb[23].mxu0 }
 0xa5e   : > { %1972 = vrot.lane.b32.xlu1 %v1807_v41, %s6360_s20  ;;  %1974 = vrot.lane.b32.xlu0 %v1807_v41, %s6358_s21 }
 0xacc   : > { %v1971_v50 = vpop.permute.xlu1 %1970  ;;  %v1969_v51 = vpop.permute.xlu0 %1968 }
 0xacd   : > { %1978 = vrot.lane.b32.xlu0 %v1971_v50, %s6358_s21  ;;  %1976 = vrot.lane.b32.xlu1 %v1969_v51, %s6358_s21 }
 0xad0   : > { %v1973_v53 = vpop.permute.xlu1 %1972  ;;  %v1975_v55 = vpop.permute.xlu0 %1974 }
 0xad1   : > { %1980 = vrot.lane.b32.xlu1 %v1973_v53, %s6358_s21  ;;  %1818 = vrot.lane.b32.xlu0 %v1798_v52, %s6362_s19 }
 0xad5   : > { %1821 = vrot.lane.b32.xlu1 %v1798_v52, %s6364_s18  ;;  %1824 = vrot.lane.b32.xlu0 %v1798_v52, %s6360_s20 }
 0xad9   : > { %1813 = vrot.lane.b32.xlu1 %v1811_v54, %s6368_s25 }
 0xb3f   : > { %v1977_v5 = vpop.permute.xlu1 %1976  ;;  %v1979_v58 = vpop.permute.xlu0 %1978 }
 0xb40   : > { %v1986_v59 = vcombine.low %v1975_v55, %v1979_v58  ;;  %v1987_v60 = vcombine.high %v1975_v55, %v1979_v58 }
 0xb42   : > { %v1994_v63 = vrot.slane %v1986_v59, %v5535_v35  ;;  %v2001_v0 = vrot.slane %v1987_v60, %v5535_v35 }
 0xb43   : > { %v1981_v61 = vpop.permute.xlu1 %1980  ;;  %v1819_v62 = vpop.permute.xlu0 %1818 }
 0xb44   : > { %v2002_v47 = vcombine.low %v1977_v5, %v1981_v61  ;;  %v2003_v48 = vcombine.high %v1977_v5, %v1981_v61 }
 0xb46   : > { %v2010_v1 = vrot.slane %v2002_v47, %v5535_v35  ;;  %v2017_v3 = vrot.slane %v2003_v48, %v5535_v35 }
 0xb47   : > { %v1822_v7 = vpop.permute.xlu1 %1821  ;;  %v1825_v8 = vpop.permute.xlu0 %1824 }
 0xb48   : > { %v2018_v9 = vcombine.low %v1994_v63, %v2010_v1  ;;  %v2019_v11 = vcombine.high %v1994_v63, %v2010_v1  ;;  %v2034_v12 = vcombine.low %v2001_v0, %v2017_v3  ;;  %v2035_v14 = vcombine.high %v2001_v0, %v2017_v3 }
 0xb49   : > { %v1827_v15 = vcombine.low %v1798_v52, %v1822_v7  ;;  %v1828_v16 = vcombine.high %v1798_v52, %v1822_v7  ;;  %v1843_v17 = vcombine.low %v1819_v62, %v1825_v8  ;;  %v1844_v57 = vcombine.high %v1819_v62, %v1825_v8 }
 0xb4a   : > { %v2026_v20 = vrot.slane %v2018_v9, %v5538_v42  ;;  %v2033_v21 = vrot.slane %v2019_v11, %v5538_v42  ;;  %v2042_v22 = vrot.slane %v2034_v12, %v5538_v42  ;;  %v2049_v23 = vrot.slane %v2035_v14, %v5538_v42 }
 0xb4b   : > { %v1835_v25 = vrot.slane %v1827_v15, %v5535_v35  ;;  %v1842_v27 = vrot.slane %v1828_v16, %v5535_v35  ;;  %v1851_v28 = vrot.slane %v1843_v17, %v5535_v35  ;;  %v1858_v29 = vrot.slane %v1844_v57, %v5535_v35  ;;  %v1814_v4 = vpop.permute.xlu1 %1813 }
 0xb4c   : > { %v2054_v32 = vcombine.low %v2026_v20, %v2033_v21  ;;  %v4711_v10 = vcombine.high %v2026_v20, %v2033_v21  ;;  %v2070_v33 = vcombine.low %v2042_v22, %v2049_v23  ;;  %v4712_v34 = vcombine.high %v2042_v22, %v2049_v23 }
 0xb4d   : > { %v1859_v36 = vcombine.low %v1835_v25, %v1851_v28  ;;  %v1860_v13 = vcombine.high %v1835_v25, %v1851_v28  ;;  %v1875_v37 = vcombine.low %v1842_v27, %v1858_v29  ;;  %v1876_v39 = vcombine.high %v1842_v27, %v1858_v29 }
 0xb4e   : > { %v2061_v41 = vrot.slane %v2054_v32, %v5535_v35  ;;  %v2069_v45 = vrot.slane %v4711_v10, %v5535_v35  ;;  %v2077_v46 = vrot.slane %v2070_v33, %v5535_v35  ;;  %v2085_v49 = vrot.slane %v4712_v34, %v5535_v35 }
 0xb4f   : > { %v1867_v26 = vrot.slane %v1859_v36, %v5538_v42  ;;  %v1874_v50 = vrot.slane %v1860_v13, %v5538_v42  ;;  %v1883_v51 = vrot.slane %v1875_v37, %v5538_v42  ;;  %v1890_v52 = vrot.slane %v1876_v39, %v5538_v42 }
 0xb50   : > { %v5828_v53 = vadd.f32 %v1814_v4, %v5788_v40  ;;  %v2086_v54 = vcombine.low %v2061_v41, %v2069_v45  ;;  %v2102_v55 = vcombine.low %v2077_v46, %v2085_v49  ;;  %v2087_v5 = vcombine.high %v2061_v41, %v2069_v45 }
 0xb51   : > { %v1895_v58 = vcombine.low %v1867_v26, %v1874_v50  ;;  %v4709_v59 = vcombine.high %v1867_v26, %v1874_v50  ;;  %v1911_v60 = vcombine.low %v1883_v51, %v1890_v52  ;;  %v4710_v61 = vcombine.high %v1883_v51, %v1890_v52 }
 0xb52   : > { %2127 = vrot.lane.b32.xlu1 %v5828_v53, %s6362_s19  ;;  %2129 = vrot.lane.b32.xlu0 %v5828_v53, %s6364_s18  ;;  %v2094_v62 = vrot.slane %v2086_v54, %v5538_v42  ;;  %v2110_v47 = vrot.slane %v2102_v55, %v5538_v42  ;;  %v2101_v7 = vrot.slane %v2087_v5, %v5538_v42  ;;  %s5300_s18 = sshll.u32 %s5373_s12, 4  ;;  %s5301_s18 = int_to_ptr.vmem [resolvable:$false] %s5300_s18 }
 0xb53   : > { %v1902_v40 = vrot.slane %v1895_v58, %v5535_v35  ;;  %v1910_v48 = vrot.slane %v4709_v59, %v5535_v35  ;;  %v1918_v63 = vrot.slane %v1911_v60, %v5535_v35  ;;  %v1926_v0 = vrot.slane %v4710_v61, %v5535_v35  ;;  %s5302_s19 = scalar_lea.vmem %s5301_s18, 32 }
 0xb54   : > { %v2118_v1 = vcombine.low %v2094_v62, %v2110_v47  ;;  %v2119_v3 = vcombine.high %v2094_v62, %v2110_v47  ;;  %v2103_v8 = vcombine.high %v2077_v46, %v2085_v49 }
 0xb55   : > { %v1927_v9 = vcombine.low %v1902_v40, %v1910_v48  ;;  %v1943_v11 = vcombine.low %v1918_v63, %v1926_v0  ;;  %v1928_v23 = vcombine.high %v1902_v40, %v1910_v48  ;;  %v1944_v25 = vcombine.high %v1918_v63, %v1926_v0 }
 0xb56   : > { %2131 = vrot.lane.b32.xlu1 %v5828_v53, %s6360_s20  ;;  %v2122_v12 = vpack.c.bf16 %v2118_v1, %v2118_v1  ;;  %v2123_v14 = vpack.c.bf16 %v2119_v3, %v2119_v3  ;;  %v2117_v15 = vrot.slane %v2103_v8, %v5538_v42  ;;  %s4774_s20 = sshll.u32 %s5440_s9, 4 }
 0xb57   : > { %v1935_v16 = vrot.slane %v1927_v9, %v5538_v42  ;;  %v1951_v17 = vrot.slane %v1943_v11, %v5538_v42  ;;  %v1942_v34 = vrot.slane %v1928_v23, %v5538_v42  ;;  %v1958_v36 = vrot.slane %v1944_v25, %v5538_v42 }
 0xb58   : > { %v2289_v57 = vsel %vm918_vm2, %v2122_v12, 0  ;;  %v2335_v20 = vsel %vm918_vm2, %v2123_v14, 0  ;;  %v2120_v21 = vcombine.low %v2101_v7, %v2117_v15  ;;  %v2121_v22 = vcombine.high %v2101_v7, %v2117_v15 }
 0xb59   : > { %4968 = vmatpush3.bf16.xpose.msra.mxu0 %v2289_v57  ;;  %4974 = vmatpush3.bf16.xpose.msra.mxu1 %v2335_v20  ;;  %v1959_v27 = vcombine.low %v1935_v16, %v1951_v17  ;;  %v1960_v28 = vcombine.high %v1935_v16, %v1951_v17  ;;  %v1961_v39 = vcombine.low %v1942_v34, %v1958_v36 }
 0xb5a   : > { %4979 = vmatprep.subr.bf16.mxu0 %v5360_v2  ;;  %4985 = vmatprep.subr.bf16.mxu1 %v5360_v2  ;;  %v2124_v29 = vpack.c.bf16 %v2120_v21, %v2120_v21  ;;  %v2125_v32 = vpack.c.bf16 %v2121_v22, %v2121_v22  ;;  %v1962_v4 = vcombine.high %v1942_v34, %v1958_v36 }
 0xb5b   : > { %v1963_v10 = vpack.c.bf16 %v1959_v27, %v1959_v27  ;;  %v1964_v33 = vpack.c.bf16 %v1960_v28, %v1960_v28  ;;  %v1965_v41 = vpack.c.bf16 %v1961_v39, %v1961_v39 }
 0xb5c   : > { %v2381_v13 = vsel %vm918_vm2, %v2124_v29, 0  ;;  %v2427_v37 = vsel %vm918_vm2, %v2125_v32, 0  ;;  %v1966_v45 = vpack.c.bf16 %v1962_v4, %v1962_v4 }
 0xb60   : > { %4970 = vmatmul.mubr.msk.bf16.vlgmr.msra.gmra.mrb[24].mxu0 %vm918_vm2, %v1963_v10  ;;  %4976 = vmatmul.mubr.msk.bf16.vlgmr.msra.gmra.mrb[28].mxu1 %vm918_vm2, %v1964_v33 }
 0xb61   : > { %4980 = vmatpush3.bf16.xpose.msra.mxu0 %v2381_v13  ;;  %4986 = vmatpush3.bf16.xpose.msra.mxu1 %v2427_v37 }
 0xb62   : > { %4981 = vmatprep.mubr.msk.bf16.mxu0 %vm5361_vm0, %v5360_v2  ;;  %4987 = vmatprep.mubr.msk.bf16.mxu1 %vm5361_vm0, %v5360_v2 }
 0xb63   : > { %4991 = vmatprep.subr.bf16.mxu0 %v5360_v2  ;;  %4997 = vmatprep.subr.bf16.mxu1 %v5360_v2 }
 0xb68   : > { %4982 = vmatmul.mubr.msk.bf16.vlgmr.msra.gmra.mrb[28].mxu0 %vm918_vm2, %v1965_v41  ;;  %4988 = vmatmul.mubr.msk.bf16.vlgmr.msra.gmra.mrb[32].mxu1 %vm918_vm2, %v1966_v45 }
 0xb69   : > { %4993 = vmatprep.mubr.msk.bf16.mxu0 %vm5361_vm0, %v5360_v2  ;;  %4999 = vmatprep.mubr.msk.bf16.mxu1 %vm5361_vm0, %v5360_v2 }
 0xbc4   : > { %v2128_v3 = vpop.permute.xlu1 %2127  ;;  %v2130_v7 = vpop.permute.xlu0 %2129 }
 0xbc8   : > { %v2132_v8 = vpop.permute.xlu1 %2131 }
 0xc33   : > { %v2325_v46 = vpop.f32.mrb[24].mxu0  ;;  %v2371_v49 = vpop.f32.mrb[28].mxu1 }
 0xc34   : > { %v4971_v26 = vpop.f32.mrb[25].mxu0  ;;  %v4977_v50 = vpop.f32.mrb[29].mxu1  ;;  %v2469_v51 = vsel %vm918_vm2, %v2325_v46, -inf  ;;  %v2472_v52 = vsel %vm918_vm2, %v2371_v49, -inf }
 0xc35   : > { %2470 = vmax.xlane.f32.xlu0 %v2469_v51  ;;  %v2328_v54 = vpop.f32.mrb[26].mxu0  ;;  %2473 = vmax.xlane.f32.xlu1 %v2472_v52  ;;  %v2374_v55 = vpop.f32.mrb[30].mxu1 }
 0xc36   : > { %v4972_v5 = vpop.f32.mrb[27].mxu0  ;;  %v4978_v58 = vpop.f32.mrb[31].mxu1 }
 0xc3b   : > { %v2417_v59 = vpop.f32.mrb[28].mxu0  ;;  %v2463_v60 = vpop.f32.mrb[32].mxu1 }
 0xc3c   : > { %v4983_v61 = vpop.f32.mrb[29].mxu0  ;;  %v4989_v62 = vpop.f32.mrb[33].mxu1  ;;  %v2475_v47 = vsel %vm918_vm2, %v2417_v59, -inf  ;;  %v2478_v1 = vsel %vm918_vm2, %v2463_v60, -inf }
 0xc3d   : > { %2476 = vmax.xlane.f32.xlu0 %v2475_v47  ;;  %v2420_v40 = vpop.f32.mrb[30].mxu0  ;;  %v2466_v48 = vpop.f32.mrb[34].mxu1 }
 0xc3e   : > { %v4984_v63 = vpop.f32.mrb[31].mxu0  ;;  %v4990_v0 = vpop.f32.mrb[35].mxu1 }
 0xc41   : > { %2479 = vmax.xlane.f32.xlu0 %v2478_v1 }
 0xc46   : > { %2135 = vrot.lane.b32.xlu1 %v2128_v3, %s6368_s25 }
 0xc57   : > { %2133 = vrot.lane.b32.xlu0 %v5828_v53, %s6368_s25 }
 0xcc2   : > { %v2471_v9 = vpop.xlane.xlu0 %2470  ;;  %v2474_v11 = vpop.xlane.xlu1 %2473 }
 0xcc3   : > { %v2481_v12 = vsub.f32 %v2325_v46, %v2471_v9  ;;  %v2482_v14 = vsub.f32 %v2371_v49, %v2474_v11 }
 0xcc5   : > { %v2485_v15 = vmul.f32 1.442695, %v2481_v12  ;;  %v2487_v16 = vmul.f32 1.442695, %v2482_v14 }
 0xcc6   : > { %v2136_v34 = vpop.permute.xlu1 %2135 }
 0xcc7   : > { %5255 = vpow2.f32 %v2485_v15 }
 0xcc8   : > { %5257 = vpow2.f32 %v2487_v16 }
 0xcca   : > { %v2477_v21 = vpop.xlane.xlu0 %2476 }
 0xccb   : > { %v2483_v23 = vsub.f32 %v2417_v59, %v2477_v21 }
 0xccd   : > { %v2489_v27 = vmul.f32 1.442695, %v2483_v23 }
 0xcce   : > { %v2480_v22 = vpop.xlane.xlu0 %2479 }
 0xccf   : > { %v2484_v25 = vsub.f32 %v2463_v60, %v2480_v22  ;;  %5259 = vpow2.f32 %v2489_v27 }
 0xcd1   : > { %v5875_v17 = vpop.eup %5255  ;;  %v2491_v28 = vmul.f32 1.442695, %v2484_v25 }
 0xcd2   : > { %v5877_v57 = vpop.eup %5257  ;;  %v2493_v20 = vsel %vm918_vm2, %v5875_v17, 0.0  ;;  %v2134_v36 = vpop.permute.xlu0 %2133 }
 0xcd3   : > { %2494 = vadd.xlane.f32.xlu1 %v2493_v20  ;;  %v2496_v53 = vsel %vm918_vm2, %v5877_v57, 0.0  ;;  %5261 = vpow2.f32 %v2491_v28 }
 0xcd4   : > { %2497 = vadd.xlane.f32.xlu0 %v2496_v53 }
 0xcd9   : > { %v5885_v29 = vpop.eup %5259 }
 0xcda   : > { %v2499_v10 = vsel %vm918_vm2, %v5885_v29, 0.0 }
 0xcdd   : > { %v5887_v32 = vpop.eup %5261 }
 0xcde   : > { %v2502_v33 = vsel %vm918_vm2, %v5887_v32, 0.0 }
 0xce4   : > { %2137 = vrot.lane.b32.xlu1 %v2130_v7, %s6368_s25 }
 0xcea   : > { %2139 = vrot.lane.b32.xlu0 %v2132_v8, %s6368_s25 }
 0xd08   : > { %2500 = vadd.xlane.f32.xlu1 %v2499_v10 }
 0xd09   : > { %2503 = vadd.xlane.f32.xlu0 %v2502_v33 }
 0xd60   : > { %v2495_v13 = vpop.xlane.xlu1 %2494 }
 0xd61   : > { %v2498_v37 = vpop.xlane.xlu0 %2497  ;;  %5263 = vrcp.f32 %v2495_v13 }
 0xd62   : > { %5265 = vrcp.f32 %v2498_v37 }
 0xd64   : > { %v2138_v39 = vpop.permute.xlu1 %2137 }
 0xd65   : > { %v2145_v4 = vcombine.low %v2134_v36, %v2138_v39  ;;  %v2146_v41 = vcombine.high %v2134_v36, %v2138_v39  ;;  %v2140_v45 = vpop.permute.xlu0 %2139 }
 0xd66   : > { %v2161_v46 = vcombine.low %v2136_v34, %v2140_v45  ;;  %v2162_v49 = vcombine.high %v2136_v34, %v2140_v45 }
 0xd67   : > { %v2153_v26 = vrot.slane %v2145_v4, %v5535_v35  ;;  %v2160_v50 = vrot.slane %v2146_v41, %v5535_v35 }
 0xd68   : > { %v2169_v51 = vrot.slane %v2161_v46, %v5535_v35  ;;  %v2176_v52 = vrot.slane %v2162_v49, %v5535_v35 }
 0xd6a   : > { %v2177_v54 = vcombine.low %v2153_v26, %v2169_v51  ;;  %v2178_v55 = vcombine.high %v2153_v26, %v2169_v51  ;;  %v2193_v5 = vcombine.low %v2160_v50, %v2176_v52  ;;  %v2194_v58 = vcombine.high %v2160_v50, %v2176_v52 }
 0xd6b   : > { %v5264_v16 = vpop.eup %5263 }
 0xd6c   : > { %v2185_v59 = vrot.slane %v2177_v54, %v5538_v42  ;;  %v2192_v60 = vrot.slane %v2178_v55, %v5538_v42  ;;  %v2201_v61 = vrot.slane %v2193_v5, %v5538_v42  ;;  %v2208_v62 = vrot.slane %v2194_v58, %v5538_v42  ;;  %v5266_v21 = vpop.eup %5265 }
 0xd6d   : > { %v2509_v28 = vmul.f32 %v5264_v16, %v5875_v17  ;;  %v2510_v10 = vmul.f32 %v5266_v21, %v5877_v57 }
 0xd6e   : > { %v2213_v47 = vcombine.low %v2185_v59, %v2192_v60  ;;  %v4713_v40 = vcombine.high %v2185_v59, %v2192_v60  ;;  %v2229_v48 = vcombine.low %v2201_v61, %v2208_v62  ;;  %v4714_v63 = vcombine.high %v2201_v61, %v2208_v62 }
 0xd6f   : > { %v2513_v4 = vpack.c.bf16 %v2509_v28, %v2509_v28  ;;  %v2514_v41 = vpack.c.bf16 %v2510_v10, %v2510_v10 }
 0xd70   : > { %v2220_v0 = vrot.slane %v2213_v47, %v5535_v35  ;;  %v2228_v1 = vrot.slane %v4713_v40, %v5535_v35  ;;  %v2236_v3 = vrot.slane %v2229_v48, %v5535_v35  ;;  %v2244_v7 = vrot.slane %v4714_v63, %v5535_v35 }
 0xd72   : > { %v2245_v8 = vcombine.low %v2220_v0, %v2228_v1  ;;  %v2246_v9 = vcombine.high %v2220_v0, %v2228_v1  ;;  %v2261_v11 = vcombine.low %v2236_v3, %v2244_v7  ;;  %v2262_v12 = vcombine.high %v2236_v3, %v2244_v7 }
 0xd74   : > { %v2253_v14 = vrot.slane %v2245_v8, %v5538_v42  ;;  %v2260_v15 = vrot.slane %v2246_v9, %v5538_v42  ;;  %v2269_v20 = vrot.slane %v2261_v11, %v5538_v42  ;;  %v2276_v53 = vrot.slane %v2262_v12, %v5538_v42 }
 0xd76   : > { %v2277_v22 = vcombine.low %v2253_v14, %v2269_v20  ;;  %v2278_v23 = vcombine.high %v2253_v14, %v2269_v20  ;;  %v2279_v25 = vcombine.low %v2260_v15, %v2276_v53  ;;  %v2280_v27 = vcombine.high %v2260_v15, %v2276_v53 }
 0xd78   : > { %v2281_v33 = vpack.c.bf16 %v2277_v22, %v2277_v22  ;;  %v2282_v34 = vpack.c.bf16 %v2278_v23, %v2278_v23  ;;  %v2283_v37 = vpack.c.bf16 %v2279_v25, %v2279_v25  ;;  %v2284_v39 = vpack.c.bf16 %v2280_v27, %v2280_v27  ;;  %v5211_v23 = vld [vmem:[%s6345_s4 + $0x30] sm:$0xff]  }
 0xd7a   : > { %v2521_v36 = vsel %vm1154_vm3, %v2281_v33, 0  ;;  %v2567_v13 = vsel %vm1154_vm3, %v2282_v34, 0  ;;  %v2613_v17 = vsel %vm1154_vm3, %v2283_v37, 0  ;;  %v2659_v57 = vsel %vm1154_vm3, %v2284_v39, 0 }
 0xd7b   : > { %4992 = vmatpush3.bf16.msra.mxu0 %v2521_v36  ;;  %4998 = vmatpush3.bf16.msra.mxu1 %v2567_v13 }
 0xd7c   : > { %5003 = vmatprep.subr.bf16.mxu0 %v5360_v2  ;;  %5009 = vmatprep.subr.bf16.mxu1 %v5360_v2 }
 0xd7e   : > { %4994 = vmatmul.mubr.msk.bf16.vlgmr.msra.gmra.mrb[32].mxu0 %vm918_vm2, %v2513_v4  ;;  %5000 = vmatmul.mubr.msk.bf16.vlgmr.msra.gmra.mrb[36].mxu1 %vm918_vm2, %v2514_v41 }
 0xd7f   : > { %5004 = vmatpush3.bf16.msra.mxu0 %v2613_v17  ;;  %5010 = vmatpush3.bf16.msra.mxu1 %v2659_v57  ;;  %v5212_v17 = vld [vmem:[%s6345_s4 + $0x38] sm:$0xff]  }
 0xd80   : > { %5005 = vmatprep.mubr.msk.bf16.mxu0 %vm5361_vm0, %v5360_v2  ;;  %5011 = vmatprep.mubr.msk.bf16.mxu1 %vm5361_vm0, %v5360_v2 }
 0xd81   : > { %5015 = vmatprep.subr.bf16.mxu0 %v5360_v2  ;;  %5023 = vmatprep.subr.bf16.mxu1 %v5360_v2 }
 0xd95   : > { %v2501_v45 = vpop.xlane.xlu1 %2500 }
 0xd96   : > { %5267 = vrcp.f32 %v2501_v45  ;;  %v2504_v46 = vpop.xlane.xlu0 %2503 }
 0xd97   : > { %5269 = vrcp.f32 %v2504_v46 }
 0xda0   : > { %v5268_v49 = vpop.eup %5267 }
 0xda1   : > { %v5270_v26 = vpop.eup %5269  ;;  %v2511_v50 = vmul.f32 %v5268_v49, %v5885_v29 }
 0xda2   : > { %v2512_v51 = vmul.f32 %v5270_v26, %v5887_v32 }
 0xda3   : > { %v2515_v52 = vpack.c.bf16 %v2511_v50, %v2511_v50 }
 0xda4   : > { %v2516_v54 = vpack.c.bf16 %v2512_v51, %v2512_v51 }
 0xda5   : > { %5006 = vmatmul.mubr.msk.bf16.vlgmr.msra.gmra.mrb[36].mxu0 %vm918_vm2, %v2515_v52 }
 0xda6   : > { %5012 = vmatmul.mubr.msk.bf16.vlgmr.msra.gmra.mrb[40].mxu1 %vm918_vm2, %v2516_v54  ;;  %5019 = vmatprep.mubr.msk.bf16.mxu0 %vm5361_vm0, %v5360_v2 }
 0xda7   : > { %5027 = vmatprep.mubr.msk.bf16.mxu1 %vm5361_vm0, %v5360_v2  ;;  %5016 = vmatpush3.bf16.msra.mxu0 %v5211_v23 }
 0xda8   : > { %5017 = vmatprep.subr.bf16.mxu0 %v5360_v2 }
 0xdab   : > { %5018 = vmatpush3.bf16.msra.mxu0 %v5212_v17  ;;  %v367_v17 = vld [vmem:[%s6346_s5 + $0x18] sm:$0x3] }
 0xdac   : > { %5031 = vmatprep.subr.bf16.mxu0 %v5360_v2 }
 0xe51   : > { %v2557_v55 = vpop.f32.mrb[32].mxu0  ;;  %v2603_v5 = vpop.f32.mrb[36].mxu1 }
 0xe52   : > { %v4995_v58 = vpop.f32.mrb[33].mxu0  ;;  %v5001_v59 = vpop.f32.mrb[37].mxu1 }
 0xe53   : > { %v2560_v60 = vpop.f32.mrb[34].mxu0  ;;  %v2606_v29 = vpop.f32.mrb[38].mxu1 }
 0xe54   : > { %v4996_v61 = vpop.f32.mrb[35].mxu0  ;;  %v5002_v32 = vpop.f32.mrb[39].mxu1 }
 0xe78   : > { %v2649_v62 = vpop.f32.mrb[36].mxu0 }
 0xe79   : > { %v2701_v47 = vcombine.low %v2557_v55, %v2649_v62  ;;  %v2702_v40 = vcombine.high %v2557_v55, %v2649_v62  ;;  %v2695_v48 = vpop.f32.mrb[40].mxu1  ;;  %v5007_v63 = vpop.f32.mrb[37].mxu0 }
 0xe7a   : > { %v2717_v0 = vcombine.low %v2603_v5, %v2695_v48  ;;  %v2718_v1 = vcombine.high %v2603_v5, %v2695_v48  ;;  %v5013_v3 = vpop.f32.mrb[41].mxu1  ;;  %v2652_v7 = vpop.f32.mrb[38].mxu0 }
 0xe7b   : > { %v2709_v8 = vrot.slane %v2701_v47, %v5535_v35  ;;  %v2716_v9 = vrot.slane %v2702_v40, %v5535_v35  ;;  %v2698_v11 = vpop.f32.mrb[42].mxu1  ;;  %v5008_v12 = vpop.f32.mrb[39].mxu0  ;;  %v2856_v40 = vrot.slane %v5765_v56, %v5700_v19 }
 0xe7c   : > { %v2725_v14 = vrot.slane %v2717_v0, %v5535_v35  ;;  %v2732_v15 = vrot.slane %v2718_v1, %v5535_v35  ;;  %v5014_v16 = vpop.f32.mrb[43].mxu1  ;;  %v5213_v12 = vld [vmem:[%s6344_s3 + $0x10] sm:$0xff]  }
 0xe7d   : > { %5024 = vmatpush3.bf16.msra.mxu1 %v5213_v12 }
 0xe7e   : > { %v2733_v20 = vcombine.low %v2709_v8, %v2725_v14  ;;  %v2734_v53 = vcombine.high %v2709_v8, %v2725_v14  ;;  %v2749_v21 = vcombine.low %v2716_v9, %v2732_v15  ;;  %v2750_v22 = vcombine.high %v2716_v9, %v2732_v15  ;;  %v5214_v14 = vld [vmem:[%s6344_s3 + $0x18] sm:$0xff]   ;;  %5025 = vmatprep.subr.bf16.mxu1 %v5360_v2  ;;  %v5216_v15 = vld [vmem:[%s6345_s4 + $0x48] sm:$0xff]  }
 0xe80   : > { %v2741_v25 = vrot.slane %v2733_v20, %v5538_v42  ;;  %v2748_v27 = vrot.slane %v2734_v53, %v5538_v42  ;;  %v2757_v28 = vrot.slane %v2749_v21, %v5538_v42  ;;  %v2764_v10 = vrot.slane %v2750_v22, %v5538_v42 }
 0xe81   : > { %5026 = vmatpush3.bf16.msra.mxu1 %v5214_v14 }
 0xe82   : > { %v2769_v33 = vcombine.low %v2741_v25, %v2748_v27  ;;  %v4723_v34 = vcombine.high %v2741_v25, %v2748_v27  ;;  %v2785_v36 = vcombine.low %v2757_v28, %v2764_v10  ;;  %v4724_v13 = vcombine.high %v2757_v28, %v2764_v10  ;;  %5043 = vmatprep.subr.bf16.mxu1 %v5360_v2 }
 0xe83   : > { %v2932_v10 = vrot.slane %v5765_v56, %v5724_v43 }
 0xe84   : > { %v2776_v37 = vrot.slane %v2769_v33, %v5535_v35  ;;  %v2784_v39 = vrot.slane %v4723_v34, %v5535_v35  ;;  %v2792_v4 = vrot.slane %v2785_v36, %v5535_v35  ;;  %v2800_v41 = vrot.slane %v4724_v13, %v5535_v35 }
 0xe85   : > { %v2937_v36 = vrot.slane %v5765_v56, %v5727_v44 }
 0xe86   : > { %v2802_v57 = vcombine.high %v2776_v37, %v2784_v39  ;;  %v2818_v45 = vcombine.high %v2792_v4, %v2800_v41  ;;  %v2801_v46 = vcombine.low %v2776_v37, %v2784_v39  ;;  %v2817_v49 = vcombine.low %v2792_v4, %v2800_v41  ;;  %v5217_v4 = vld [vmem:[%s6345_s4 + $0x50] sm:$0xff]   ;;  %v5218_v41 = vld [vmem:[%s6345_s4 + $0x58] sm:$0xff]  }
 0xe88   : > { %v2816_v26 = vrot.slane %v2802_v57, %v5538_v42  ;;  %v2832_v50 = vrot.slane %v2818_v45, %v5538_v42  ;;  %v2809_v51 = vrot.slane %v2801_v46, %v5538_v42  ;;  %v2825_v52 = vrot.slane %v2817_v49, %v5538_v42 }
 0xe89   : > { %v2943_v57 = vrot.slane %v367_v17, %v5490_v6 }
 0xe8a   : > { %v2835_v54 = vcombine.low %v2816_v26, %v2832_v50  ;;  %v2834_v55 = vcombine.high %v2809_v51, %v2825_v52  ;;  %v2836_v5 = vcombine.high %v2816_v26, %v2832_v50  ;;  %v2833_v58 = vcombine.low %v2809_v51, %v2825_v52 }
 0xe8c   : > { %2842 = vrot.lane.b32.xlu1 %v2835_v54, %s6369_s13  ;;  %2838 = vrot.lane.b32.xlu0 %v2834_v55, %s6370_s23  ;;  %v3004_v54 = vrot.slane %v367_v17, %v5517_v18 }
 0xe90   : > { %2846 = vrot.lane.b32.xlu1 %v2836_v5, %s6371_s24 }
 0xefe   : > { %v2843_v59 = vpop.permute.xlu1 %2842  ;;  %v2839_v60 = vpop.permute.xlu0 %2838 }
 0xeff   : > { %v2849_v29 = vsel %vm918_vm2, %v2833_v58, %v2839_v60 }
 0xf00   : > { %v2850_v32 = vsel %vm1485_vm4, %v2849_v29, %v2843_v59 }
 0xf02   : > { %v2847_v61 = vpop.permute.xlu1 %2846 }
 0xf03   : > { %v2851_v62 = vsel %vm1487_vm5, %v2850_v32, %v2847_v61 }
 0xf04   : > { %v2852_v47 = vpack.c.bf16 %v2851_v62, %v2851_v62 }
 0xf06   : > { %5020 = vmatmul.mubr.msk.bf16.vlgmr.msra.gmra.mrb[40].mxu0 %vm383_vm1, %v2852_v47  ;;  %v5219_v47 = vld [vmem:[%s6343_s2 + $0x20] sm:$0xff]  }
 0xf07   : > { %5039 = vmatprep.mubr.msk.bf16.mxu0 %vm5361_vm0, %v5360_v2 }
 0xfd9   : > { %v2906_v48 = vpop.f32.mrb[40].mxu0 }
 0xfda   : > { %v2907_v63 = vadd.f32 %v2906_v48, %v2856_v40  ;;  %v5021_v0 = vpop.f32.mrb[41].mxu0  ;;  %v5220_v40 = vld [vmem:[%s6343_s2 + $0x28] sm:$0xff]   ;;  %v6023_v48 = vld [vmem:[%s6346_s5 + $0x20] sm:$0xff] }
 0xfdb   : > { %v2909_v1 = vpop.f32.mrb[42].mxu0 }
 0xfdc   : > { %v2912_v3 = vadd.f32 %v2907_v63, %v5781_v38  ;;  %v5022_v7 = vpop.f32.mrb[43].mxu0  ;;  %v5215_v38 = vld [vmem:[%s6345_s4 + $0x40] sm:$0xff]   ;;  %v3163_v63 = vrot.slane %v6023_v48, %v5490_v6 }
 0xfdd   : > { %5032 = vmatpush3.bf16.msra.mxu0 %v5215_v38  ;;  %v3092_v38 = vrot.slane %v5765_v56, %v5771_v30 }
 0xfde   : > { %v2913_v8 = vsel %vm383_vm1, %v2912_v3, 0.0  ;;  %v2917_v9 = vmul.f32 %v2912_v3, %v2912_v3  ;;  %5033 = vmatprep.subr.bf16.mxu0 %v5360_v2 }
 0xfdf   : > { %2914 = vadd.xlane.f32.xlu0 %v2913_v8 }
 0xfe0   : > { %v2918_v11 = vsel %vm383_vm1, %v2917_v9, 0.0 }
 0xfe1   : > { %2919 = vadd.xlane.f32.xlu1 %v2918_v11  ;;  %5034 = vmatpush3.bf16.msra.mxu0 %v5216_v15 }
 0xfe2   : > { %5035 = vmatprep.subr.bf16.mxu0 %v5360_v2 }
 0xfe5   : > { %5036 = vmatpush3.bf16.msra.mxu0 %v5217_v4 }
 0xfe6   : > { %5037 = vmatprep.subr.bf16.mxu0 %v5360_v2 }
 0xfe9   : > { %5038 = vmatpush3.bf16.msra.mxu0 %v5218_v41 }
 0xfea   : > { %5057 = vmatprep.subr.bf16.mxu0 %v5360_v2 }
 0xff2   : > { %3165 = vrot.lane.b32.xlu1 %v3163_v63, %s5362_s17  ;;  %s6372_s17 = smov 112  }
0x106c   : > { %v2915_v16 = vpop.xlane.xlu0 %2914 }
0x106d   : > { %v2916_v20 = vmul.f32 0.03125, %v2915_v16 }
0x106e   : > { %v2920_v53 = vpop.xlane.xlu1 %2919 }
0x106f   : > { %v2922_v21 = vmul.f32 %v2916_v20, %v2916_v20  ;;  %v2921_v22 = vmul.f32 0.03125, %v2920_v53  ;;  %v2925_v28 = vsub.f32 %v2912_v3, %v2916_v20  ;;  %v3097_v20 = vrot.slane %v5765_v56, %v5774_v31 }
0x1071   : > { %v2923_v23 = vsub.f32 %v2921_v22, %v2922_v21 }
0x1073   : > { %v2924_v25 = vmax.f32 %v2923_v23, 0.0  ;;  %v3166_v23 = vpop.permute.xlu1 %3165 }
0x1075   : > { %v2926_v27 = vadd.f32 1e-05, %v2924_v25 }
0x1077   : > { %5271 = vrsqrt.f32 %v2926_v27 }
0x1081   : > { %v5272_v33 = vpop.eup %5271 }
0x1082   : > { %v2928_v34 = vmul.f32 %v5272_v33, %v2925_v28  ;;  %v3158_v33 = vrot.slane %v6023_v48, %v5517_v18 }
0x1084   : > { %v2933_v13 = vmul.f32 %v2932_v10, %v2928_v34 }
0x1086   : > { %v2938_v37 = vadd.f32 %v2937_v36, %v2933_v13 }
0x1088   : > { %v2939_v39 = vpack.c.bf16 %v2938_v37, %v2938_v37 }
0x108a   : > { %5028 = vmatmul.mubr.msk.bf16.vlgmr.msra.gmra.mrb[44].mxu1 %vm383_vm1, %v2939_v39  ;;  %v3172_v39 = vrot.slane %v6023_v48, %v5527_v24 }
0x108b   : > { %5047 = vmatprep.mubr.msk.bf16.mxu1 %vm5361_vm0, %v5360_v2  ;;  %5044 = vmatpush3.bf16.msra.mxu1 %v5219_v47 }
0x108c   : > { %5045 = vmatprep.subr.bf16.mxu1 %v5360_v2 }
0x108f   : > { %5046 = vmatpush3.bf16.msra.mxu1 %v5220_v40 }
0x1090   : > { %5051 = vmatprep.subr.bf16.mxu1 %v5360_v2 }
0x115d   : > { %v2993_v45 = vpop.f32.mrb[44].mxu1 }
0x115e   : > { %v2994_v46 = vadd.f32 %v2993_v45, %v2943_v57  ;;  %v5029_v49 = vpop.f32.mrb[45].mxu1 }
0x115f   : > { %v2996_v26 = vpop.f32.mrb[46].mxu1 }
0x1160   : > { %v2999_v50 = vmax.f32 %v2994_v46, 0.0  ;;  %v5030_v51 = vpop.f32.mrb[47].mxu1 }
0x1162   : > { %v3000_v52 = vpack.c.bf16 %v2999_v50, %v2999_v50 }
0x1164   : > { %5040 = vmatmul.mubr.msk.bf16.vlgmr.msra.gmra.mrb[44].mxu0 %vm1667_vm6, %v3000_v52 }
0x1165   : > { %5059 = vmatprep.mubr.msk.bf16.mxu0 %vm5361_vm0, %v5360_v2 }
0x1237   : > { %v3066_v55 = vpop.f32.mrb[44].mxu0 }
0x1238   : > { %v3067_v5 = vadd.f32 %v3066_v55, %v3004_v54  ;;  %v5041_v58 = vpop.f32.mrb[45].mxu0 }
0x1239   : > { %v3069_v59 = vpop.f32.mrb[46].mxu0 }
0x123a   : > { %v3072_v60 = vadd.f32 %v3067_v5, %v2938_v37  ;;  %v5042_v29 = vpop.f32.mrb[47].mxu0 }
0x123c   : > { %v3073_v61 = vsel %vm383_vm1, %v3072_v60, 0.0  ;;  %v3077_v32 = vmul.f32 %v3072_v60, %v3072_v60 }
0x123d   : > { %3074 = vadd.xlane.f32.xlu0 %v3073_v61 }
0x123e   : > { %v3078_v62 = vsel %vm383_vm1, %v3077_v32, 0.0 }
0x1241   : > { %3079 = vadd.xlane.f32.xlu0 %v3078_v62 }
0x12ca   : > { %v3075_v0 = vpop.xlane.xlu0 %3074 }
0x12cb   : > { %v3076_v1 = vmul.f32 0.03125, %v3075_v0 }
0x12cd   : > { %v3082_v7 = vmul.f32 %v3076_v1, %v3076_v1  ;;  %v3085_v14 = vsub.f32 %v3072_v60, %v3076_v1 }
0x12ce   : > { %v3080_v3 = vpop.xlane.xlu0 %3079 }
0x12cf   : > { %v3081_v8 = vmul.f32 0.03125, %v3080_v3 }
0x12d1   : > { %v3083_v9 = vsub.f32 %v3081_v8, %v3082_v7 }
0x12d3   : > { %v3084_v11 = vmax.f32 %v3083_v9, 0.0 }
0x12d5   : > { %v3086_v12 = vadd.f32 1e-05, %v3084_v11 }
0x12d7   : > { %5273 = vrsqrt.f32 %v3086_v12 }
0x12e1   : > { %v5274_v15 = vpop.eup %5273 }
0x12e2   : > { %v3088_v16 = vmul.f32 %v5274_v15, %v3085_v14 }
0x12e4   : > { %v3093_v53 = vmul.f32 %v3092_v38, %v3088_v16 }
0x12e6   : > { %v6032_v21 = vadd.f32 %v3097_v20, %v3093_v53 }
0x12e8   : > { %v3099_v22 = vpack.c.bf16 %v6032_v21, %v6032_v21 }
0x12ea   : > { %5048 = vmatmul.mubr.msk.bf16.vlgmr.msra.gmra.mrb[48].mxu1 %vm383_vm1, %v3099_v22 }
0x12eb   : > { %5053 = vmatprep.mubr.msk.bf16.mxu1 %vm5361_vm0, %v5360_v2 }
0x13bd   : > { %v6039_v25 = vpop.f32.mrb[48].mxu1 }
0x13be   : > { %v3168_v27 = vadd.f32 %v3166_v23, %v6039_v25  ;;  %v5049_v28 = vpop.f32.mrb[49].mxu1  ;;  %v3159_v13 = vadd.f32 %v3158_v33, %v6039_v25 }
0x13bf   : > { %v3152_v10 = vpop.f32.mrb[50].mxu1 }
0x13c0   : > { %3331 = vrot.lane.b32.xlu1 %v3168_v27, %s6372_s17  ;;  %3329 = vrot.lane.b32.xlu0 %v3168_v27, %s6373_s26  ;;  %v5050_v56 = vpop.f32.mrb[51].mxu1 }
0x13c4   : > { %3333 = vrot.lane.b32.xlu1 %v3168_v27, %s6374_s22  ;;  %3335 = vrot.lane.b32.xlu0 %v3168_v27, %s6375_s10 }
0x1432   : > { %v3332_v34 = vpop.permute.xlu1 %3331  ;;  %v3330_v36 = vpop.permute.xlu0 %3329 }
0x1433   : > { %3339 = vrot.lane.b32.xlu0 %v3332_v34, %s6375_s10  ;;  %3337 = vrot.lane.b32.xlu1 %v3330_v36, %s6375_s10 }
0x1436   : > { %v3334_v37 = vpop.permute.xlu1 %3333  ;;  %v3336_v4 = vpop.permute.xlu0 %3335 }
0x1437   : > { %3341 = vrot.lane.b32.xlu1 %v3334_v37, %s6375_s10  ;;  %3179 = vrot.lane.b32.xlu0 %v3159_v13, %s6373_s26  ;;  %s6299_s10 = scalar_lea.hbm %s6349_s8, %s4774_s20 }
0x143b   : > { %3182 = vrot.lane.b32.xlu1 %v3159_v13, %s6372_s17  ;;  %3185 = vrot.lane.b32.xlu0 %v3159_v13, %s6374_s22 }
0x143f   : > { %3174 = vrot.lane.b32.xlu1 %v3172_v39, %s6368_s25 }
0x14a5   : > { %v3338_v41 = vpop.permute.xlu1 %3337  ;;  %v3340_v17 = vpop.permute.xlu0 %3339 }
0x14a6   : > { %v3347_v57 = vcombine.low %v3336_v4, %v3340_v17  ;;  %v3348_v45 = vcombine.high %v3336_v4, %v3340_v17 }
0x14a8   : > { %v3355_v51 = vrot.slane %v3347_v57, %v5535_v35  ;;  %v3362_v52 = vrot.slane %v3348_v45, %v5535_v35 }
0x14a9   : > { %v3342_v46 = vpop.permute.xlu1 %3341  ;;  %v3180_v49 = vpop.permute.xlu0 %3179 }
0x14aa   : > { %v3363_v26 = vcombine.low %v3338_v41, %v3342_v46  ;;  %v3364_v50 = vcombine.high %v3338_v41, %v3342_v46 }
0x14ac   : > { %v3371_v54 = vrot.slane %v3363_v26, %v5535_v35  ;;  %v3378_v55 = vrot.slane %v3364_v50, %v5535_v35 }
0x14ad   : > { %v3183_v24 = vpop.permute.xlu1 %3182  ;;  %v3186_v5 = vpop.permute.xlu0 %3185 }
0x14ae   : > { %v3379_v58 = vcombine.low %v3355_v51, %v3371_v54  ;;  %v3380_v59 = vcombine.high %v3355_v51, %v3371_v54  ;;  %v3395_v60 = vcombine.low %v3362_v52, %v3378_v55  ;;  %v3396_v29 = vcombine.high %v3362_v52, %v3378_v55 }
0x14af   : > { %v3188_v61 = vcombine.low %v3159_v13, %v3183_v24  ;;  %v3189_v32 = vcombine.high %v3159_v13, %v3183_v24  ;;  %v3204_v62 = vcombine.low %v3180_v49, %v3186_v5  ;;  %v3205_v47 = vcombine.high %v3180_v49, %v3186_v5 }
0x14b0   : > { %v3387_v40 = vrot.slane %v3379_v58, %v5538_v42  ;;  %v3394_v63 = vrot.slane %v3380_v59, %v5538_v42  ;;  %v3403_v0 = vrot.slane %v3395_v60, %v5538_v42  ;;  %v3410_v1 = vrot.slane %v3396_v29, %v5538_v42 }
0x14b1   : > { %v3196_v3 = vrot.slane %v3188_v61, %v5535_v35  ;;  %v3203_v7 = vrot.slane %v3189_v32, %v5535_v35  ;;  %v3212_v8 = vrot.slane %v3204_v62, %v5535_v35  ;;  %v3219_v9 = vrot.slane %v3205_v47, %v5535_v35  ;;  %v3175_v22 = vpop.permute.xlu1 %3174 }
0x14b2   : > { %v3415_v11 = vcombine.low %v3387_v40, %v3394_v63  ;;  %v4741_v12 = vcombine.high %v3387_v40, %v3394_v63  ;;  %v3431_v14 = vcombine.low %v3403_v0, %v3410_v1  ;;  %v4742_v38 = vcombine.high %v3403_v0, %v3410_v1 }
0x14b3   : > { %v3220_v15 = vcombine.low %v3196_v3, %v3212_v8  ;;  %v3221_v16 = vcombine.high %v3196_v3, %v3212_v8  ;;  %v3236_v20 = vcombine.low %v3203_v7, %v3219_v9  ;;  %v3237_v53 = vcombine.high %v3203_v7, %v3219_v9 }
0x14b4   : > { %v3422_v23 = vrot.slane %v3415_v11, %v5535_v35  ;;  %v3430_v27 = vrot.slane %v4741_v12, %v5535_v35  ;;  %v3438_v28 = vrot.slane %v3431_v14, %v5535_v35  ;;  %v3446_v10 = vrot.slane %v4742_v38, %v5535_v35 }
0x14b5   : > { %v3228_v56 = vrot.slane %v3220_v15, %v5538_v42  ;;  %v3235_v33 = vrot.slane %v3221_v16, %v5538_v42  ;;  %v3244_v34 = vrot.slane %v3236_v20, %v5538_v42  ;;  %v3251_v36 = vrot.slane %v3237_v53, %v5538_v42 }
0x14b6   : > { %v6079_v13 = vadd.f32 %v3175_v22, %v6039_v25  ;;  %v3447_v37 = vcombine.low %v3422_v23, %v3430_v27  ;;  %v3463_v39 = vcombine.low %v3438_v28, %v3446_v10  ;;  %v3448_v4 = vcombine.high %v3422_v23, %v3430_v27 }
0x14b7   : > { %v3256_v41 = vcombine.low %v3228_v56, %v3235_v33  ;;  %v4739_v17 = vcombine.high %v3228_v56, %v3235_v33  ;;  %v3272_v57 = vcombine.low %v3244_v34, %v3251_v36  ;;  %v4740_v45 = vcombine.high %v3244_v34, %v3251_v36 }
0x14b8   : > { %3488 = vrot.lane.b32.xlu1 %v6079_v13, %s6373_s26  ;;  %3490 = vrot.lane.b32.xlu0 %v6079_v13, %s6372_s17  ;;  %v3455_v46 = vrot.slane %v3447_v37, %v5538_v42  ;;  %v3471_v49 = vrot.slane %v3463_v39, %v5538_v42  ;;  %v3462_v55 = vrot.slane %v3448_v4, %v5538_v42 }
0x14b9   : > { %v3263_v25 = vrot.slane %v3256_v41, %v5535_v35  ;;  %v3271_v26 = vrot.slane %v4739_v17, %v5535_v35  ;;  %v3279_v50 = vrot.slane %v3272_v57, %v5535_v35  ;;  %v3287_v51 = vrot.slane %v4740_v45, %v5535_v35 }
0x14ba   : > { %v3479_v52 = vcombine.low %v3455_v46, %v3471_v49  ;;  %v3480_v54 = vcombine.high %v3455_v46, %v3471_v49  ;;  %v3464_v24 = vcombine.high %v3438_v28, %v3446_v10 }
0x14bb   : > { %v3288_v5 = vcombine.low %v3263_v25, %v3271_v26  ;;  %v3304_v58 = vcombine.low %v3279_v50, %v3287_v51  ;;  %v3289_v0 = vcombine.high %v3263_v25, %v3271_v26  ;;  %v3305_v1 = vcombine.high %v3279_v50, %v3287_v51 }
0x14bc   : > { %3492 = vrot.lane.b32.xlu1 %v6079_v13, %s6374_s22  ;;  %v3483_v59 = vpack.c.bf16 %v3479_v52, %v3479_v52  ;;  %v3484_v60 = vpack.c.bf16 %v3480_v54, %v3480_v54  ;;  %v3478_v29 = vrot.slane %v3464_v24, %v5538_v42 }
0x14bd   : > { %v3296_v61 = vrot.slane %v3288_v5, %v5538_v42  ;;  %v3312_v32 = vrot.slane %v3304_v58, %v5538_v42  ;;  %v3303_v14 = vrot.slane %v3289_v0, %v5538_v42  ;;  %v3319_v38 = vrot.slane %v3305_v1, %v5538_v42 }
0x14be   : > { %v3650_v62 = vsel %vm918_vm2, %v3483_v59, 0  ;;  %v3696_v47 = vsel %vm918_vm2, %v3484_v60, 0  ;;  %v3481_v40 = vcombine.low %v3462_v55, %v3478_v29  ;;  %v3482_v63 = vcombine.high %v3462_v55, %v3478_v29 }
0x14bf   : > { %5052 = vmatpush3.bf16.xpose.msra.mxu1 %v3650_v62  ;;  %5058 = vmatpush3.bf16.xpose.msra.mxu0 %v3696_v47  ;;  %v3320_v3 = vcombine.low %v3296_v61, %v3312_v32  ;;  %v3321_v7 = vcombine.high %v3296_v61, %v3312_v32  ;;  %v3322_v20 = vcombine.low %v3303_v14, %v3319_v38 }
0x14c0   : > { %5063 = vmatprep.subr.bf16.mxu1 %v5360_v2  ;;  %5069 = vmatprep.subr.bf16.mxu0 %v5360_v2  ;;  %v3485_v8 = vpack.c.bf16 %v3481_v40, %v3481_v40  ;;  %v3486_v9 = vpack.c.bf16 %v3482_v63, %v3482_v63  ;;  %v3323_v53 = vcombine.high %v3303_v14, %v3319_v38 }
0x14c1   : > { %v3324_v11 = vpack.c.bf16 %v3320_v3, %v3320_v3  ;;  %v3325_v12 = vpack.c.bf16 %v3321_v7, %v3321_v7  ;;  %v3326_v22 = vpack.c.bf16 %v3322_v20, %v3322_v20 }
0x14c2   : > { %v3742_v15 = vsel %vm918_vm2, %v3485_v8, 0  ;;  %v3788_v16 = vsel %vm918_vm2, %v3486_v9, 0  ;;  %v3327_v23 = vpack.c.bf16 %v3323_v53, %v3323_v53 }
0x14c6   : > { %5054 = vmatmul.mubr.msk.bf16.vlgmr.msra.gmra.mrb[52].mxu1 %vm918_vm2, %v3324_v11  ;;  %5060 = vmatmul.mubr.msk.bf16.vlgmr.msra.gmra.mrb[48].mxu0 %vm918_vm2, %v3325_v12 }
0x14c7   : > { %5064 = vmatpush3.bf16.xpose.msra.mxu1 %v3742_v15  ;;  %5070 = vmatpush3.bf16.xpose.msra.mxu0 %v3788_v16 }
0x14c8   : > { %5065 = vmatprep.mubr.msk.bf16.mxu1 %vm5361_vm0, %v5360_v2  ;;  %5071 = vmatprep.mubr.msk.bf16.mxu0 %vm5361_vm0, %v5360_v2 }
0x14c9   : > { %5075 = vmatprep.subr.bf16.mxu1 %v5360_v2  ;;  %5081 = vmatprep.subr.bf16.mxu0 %v5360_v2 }
0x14ce   : > { %5066 = vmatmul.mubr.msk.bf16.vlgmr.msra.gmra.mrb[56].mxu1 %vm918_vm2, %v3326_v22  ;;  %5072 = vmatmul.mubr.msk.bf16.vlgmr.msra.gmra.mrb[52].mxu0 %vm918_vm2, %v3327_v23 }
0x14cf   : > { %5077 = vmatprep.mubr.msk.bf16.mxu1 %vm5361_vm0, %v5360_v2  ;;  %5083 = vmatprep.mubr.msk.bf16.mxu0 %vm5361_vm0, %v5360_v2 }
0x152a   : > { %v3489_v52 = vpop.permute.xlu1 %3488  ;;  %v3491_v54 = vpop.permute.xlu0 %3490 }
0x152e   : > { %v3493_v55 = vpop.permute.xlu1 %3492 }
0x1599   : > { %v3686_v27 = vpop.f32.mrb[52].mxu1  ;;  %v3732_v28 = vpop.f32.mrb[48].mxu0 }
0x159a   : > { %v5055_v10 = vpop.f32.mrb[53].mxu1  ;;  %v5061_v56 = vpop.f32.mrb[49].mxu0  ;;  %v3833_v33 = vsel %vm918_vm2, %v3732_v28, -inf  ;;  %v3830_v34 = vsel %vm918_vm2, %v3686_v27, -inf }
0x159b   : > { %3834 = vmax.xlane.f32.xlu1 %v3833_v33  ;;  %v3735_v36 = vpop.f32.mrb[50].mxu0  ;;  %3831 = vmax.xlane.f32.xlu0 %v3830_v34  ;;  %v3689_v37 = vpop.f32.mrb[54].mxu1 }
0x159c   : > { %v5056_v39 = vpop.f32.mrb[55].mxu1  ;;  %v5062_v4 = vpop.f32.mrb[51].mxu0 }
0x15a1   : > { %v3778_v41 = vpop.f32.mrb[56].mxu1  ;;  %v3824_v17 = vpop.f32.mrb[52].mxu0 }
0x15a2   : > { %v5067_v57 = vpop.f32.mrb[57].mxu1  ;;  %v5073_v45 = vpop.f32.mrb[53].mxu0  ;;  %v3836_v46 = vsel %vm918_vm2, %v3778_v41, -inf  ;;  %v3839_v51 = vsel %vm918_vm2, %v3824_v17, -inf }
0x15a3   : > { %v3827_v49 = vpop.f32.mrb[54].mxu0  ;;  %3837 = vmax.xlane.f32.xlu0 %v3836_v46  ;;  %v3781_v25 = vpop.f32.mrb[58].mxu1 }
0x15a4   : > { %v5068_v26 = vpop.f32.mrb[59].mxu1  ;;  %v5074_v50 = vpop.f32.mrb[55].mxu0 }
0x15a7   : > { %3840 = vmax.xlane.f32.xlu0 %v3839_v51 }
0x15ac   : > { %3496 = vrot.lane.b32.xlu1 %v3489_v52, %s6368_s25 }
0x15bd   : > { %3494 = vrot.lane.b32.xlu0 %v6079_v13, %s6368_s25 }
0x1628   : > { %v3835_v24 = vpop.xlane.xlu1 %3834  ;;  %v3832_v5 = vpop.xlane.xlu0 %3831 }
0x1629   : > { %v3843_v58 = vsub.f32 %v3732_v28, %v3835_v24  ;;  %v3842_v59 = vsub.f32 %v3686_v27, %v3832_v5 }
0x162b   : > { %v3848_v60 = vmul.f32 1.442695, %v3843_v58  ;;  %v3846_v29 = vmul.f32 1.442695, %v3842_v59 }
0x162c   : > { %v3497_v14 = vpop.permute.xlu1 %3496 }
0x162d   : > { %5275 = vpow2.f32 %v3848_v60 }
0x162e   : > { %5277 = vpow2.f32 %v3846_v29 }
0x1630   : > { %v3838_v47 = vpop.xlane.xlu0 %3837 }
0x1631   : > { %v3844_v0 = vsub.f32 %v3778_v41, %v3838_v47 }
0x1633   : > { %v3850_v3 = vmul.f32 1.442695, %v3844_v0 }
0x1634   : > { %v3841_v40 = vpop.xlane.xlu0 %3840 }
0x1635   : > { %v3845_v63 = vsub.f32 %v3824_v17, %v3841_v40 }
0x1637   : > { %v6126_v61 = vpop.eup %5275  ;;  %v3852_v1 = vmul.f32 1.442695, %v3845_v63 }
0x1638   : > { %v6128_v32 = vpop.eup %5277  ;;  %v3857_v62 = vsel %vm918_vm2, %v6126_v61, 0.0  ;;  %v3495_v12 = vpop.permute.xlu0 %3494 }
0x1639   : > { %v3854_v13 = vsel %vm918_vm2, %v6128_v32, 0.0  ;;  %3858 = vadd.xlane.f32.xlu0 %v3857_v62  ;;  %5279 = vpow2.f32 %v3852_v1 }
0x163a   : > { %3855 = vadd.xlane.f32.xlu1 %v3854_v13  ;;  %5281 = vpow2.f32 %v3850_v3 }
0x1643   : > { %v6136_v7 = vpop.eup %5279 }
0x1644   : > { %v6138_v8 = vpop.eup %5281  ;;  %v3863_v9 = vsel %vm918_vm2, %v6136_v7, 0.0 }
0x1645   : > { %v3860_v11 = vsel %vm918_vm2, %v6138_v8, 0.0 }
0x164b   : > { %3498 = vrot.lane.b32.xlu1 %v3491_v54, %s6368_s25 }
0x164f   : > { %3500 = vrot.lane.b32.xlu0 %v3493_v55, %s6368_s25 }
0x166e   : > { %3864 = vadd.xlane.f32.xlu0 %v3863_v9 }
0x166f   : > { %3861 = vadd.xlane.f32.xlu1 %v3860_v11 }
0x16c6   : > { %v3859_v38 = vpop.xlane.xlu0 %3858 }
0x16c7   : > { %v3856_v15 = vpop.xlane.xlu1 %3855  ;;  %5283 = vrcp.f32 %v3859_v38 }
0x16c8   : > { %5285 = vrcp.f32 %v3856_v15 }
0x16ca   : > { %v3501_v16 = vpop.permute.xlu0 %3500 }
0x16cb   : > { %v3499_v20 = vpop.permute.xlu1 %3498  ;;  %v3522_v53 = vcombine.low %v3497_v14, %v3501_v16  ;;  %v3523_v22 = vcombine.high %v3497_v14, %v3501_v16 }
0x16cc   : > { %v3506_v23 = vcombine.low %v3495_v12, %v3499_v20  ;;  %v3507_v27 = vcombine.high %v3495_v12, %v3499_v20 }
0x16cd   : > { %v3530_v28 = vrot.slane %v3522_v53, %v5535_v35  ;;  %v3537_v10 = vrot.slane %v3523_v22, %v5535_v35 }
0x16ce   : > { %v3514_v56 = vrot.slane %v3506_v23, %v5535_v35  ;;  %v3521_v33 = vrot.slane %v3507_v27, %v5535_v35 }
0x16d0   : > { %v3538_v34 = vcombine.low %v3514_v56, %v3530_v28  ;;  %v3539_v36 = vcombine.high %v3514_v56, %v3530_v28  ;;  %v3554_v37 = vcombine.low %v3521_v33, %v3537_v10  ;;  %v3555_v39 = vcombine.high %v3521_v33, %v3537_v10 }
0x16d1   : > { %v5284_v60 = vpop.eup %5283 }
0x16d2   : > { %v3546_v4 = vrot.slane %v3538_v34, %v5538_v42  ;;  %v3553_v41 = vrot.slane %v3539_v36, %v5538_v42  ;;  %v3562_v17 = vrot.slane %v3554_v37, %v5538_v42  ;;  %v3569_v57 = vrot.slane %v3555_v39, %v5538_v42  ;;  %v5286_v13 = vpop.eup %5285 }
0x16d3   : > { %v3870_v1 = vmul.f32 %v5286_v13, %v6128_v32  ;;  %v3871_v3 = vmul.f32 %v5284_v60, %v6126_v61 }
0x16d4   : > { %v3574_v45 = vcombine.low %v3546_v4, %v3553_v41  ;;  %v4743_v46 = vcombine.high %v3546_v4, %v3553_v41  ;;  %v3590_v49 = vcombine.low %v3562_v17, %v3569_v57  ;;  %v4744_v25 = vcombine.high %v3562_v17, %v3569_v57 }
0x16d5   : > { %v3874_v16 = vpack.c.bf16 %v3870_v1, %v3870_v1  ;;  %v3875_v20 = vpack.c.bf16 %v3871_v3, %v3871_v3 }
0x16d6   : > { %v3581_v26 = vrot.slane %v3574_v45, %v5535_v35  ;;  %v3589_v50 = vrot.slane %v4743_v46, %v5535_v35  ;;  %v3597_v51 = vrot.slane %v3590_v49, %v5535_v35  ;;  %v3605_v52 = vrot.slane %v4744_v25, %v5535_v35 }
0x16d8   : > { %v3606_v54 = vcombine.low %v3581_v26, %v3589_v50  ;;  %v3607_v55 = vcombine.high %v3581_v26, %v3589_v50  ;;  %v3622_v24 = vcombine.low %v3597_v51, %v3605_v52  ;;  %v3623_v5 = vcombine.high %v3597_v51, %v3605_v52 }
0x16da   : > { %v3614_v58 = vrot.slane %v3606_v54, %v5538_v42  ;;  %v3621_v59 = vrot.slane %v3607_v55, %v5538_v42  ;;  %v3630_v29 = vrot.slane %v3622_v24, %v5538_v42  ;;  %v3637_v62 = vrot.slane %v3623_v5, %v5538_v42 }
0x16dc   : > { %v3638_v47 = vcombine.low %v3614_v58, %v3630_v29  ;;  %v3639_v40 = vcombine.high %v3614_v58, %v3630_v29  ;;  %v3640_v63 = vcombine.low %v3621_v59, %v3637_v62  ;;  %v3641_v0 = vcombine.high %v3621_v59, %v3637_v62 }
0x16de   : > { %v3642_v9 = vpack.c.bf16 %v3638_v47, %v3638_v47  ;;  %v3643_v11 = vpack.c.bf16 %v3639_v40, %v3639_v40  ;;  %v3644_v38 = vpack.c.bf16 %v3640_v63, %v3640_v63  ;;  %v3645_v15 = vpack.c.bf16 %v3641_v0, %v3641_v0  ;;  %v5221_v47 = vld [vmem:[%s6345_s4 + $0x60] sm:$0xff]  }
0x16e0   : > { %v3882_v12 = vsel %vm1154_vm3, %v3642_v9, 0  ;;  %v3928_v14 = vsel %vm1154_vm3, %v3643_v11, 0  ;;  %v3974_v61 = vsel %vm1154_vm3, %v3644_v38, 0  ;;  %v4020_v32 = vsel %vm1154_vm3, %v3645_v15, 0 }
0x16e1   : > { %5076 = vmatpush3.bf16.msra.mxu1 %v3882_v12  ;;  %5082 = vmatpush3.bf16.msra.mxu0 %v3928_v14 }
0x16e2   : > { %5087 = vmatprep.subr.bf16.mxu1 %v5360_v2  ;;  %5093 = vmatprep.subr.bf16.mxu0 %v5360_v2 }
0x16e4   : > { %5078 = vmatmul.mubr.msk.bf16.vlgmr.msra.gmra.mrb[60].mxu1 %vm918_vm2, %v3874_v16  ;;  %5084 = vmatmul.mubr.msk.bf16.vlgmr.msra.gmra.mrb[56].mxu0 %vm918_vm2, %v3875_v20  ;;  %v5222_v20 = vld [vmem:[%s6345_s4 + $0x68] sm:$0xff]  }
0x16e5   : > { %5088 = vmatpush3.bf16.msra.mxu1 %v3974_v61  ;;  %5094 = vmatpush3.bf16.msra.mxu0 %v4020_v32 }
0x16e6   : > { %5089 = vmatprep.mubr.msk.bf16.mxu1 %vm5361_vm0, %v5360_v2  ;;  %5095 = vmatprep.mubr.msk.bf16.mxu0 %vm5361_vm0, %v5360_v2 }
0x16e7   : > { %5099 = vmatprep.subr.bf16.mxu1 %v5360_v2  ;;  %5107 = vmatprep.subr.bf16.mxu0 %v5360_v2 }
0x16fb   : > { %v3865_v53 = vpop.xlane.xlu0 %3864 }
0x16fc   : > { %v3862_v22 = vpop.xlane.xlu1 %3861  ;;  %5287 = vrcp.f32 %v3865_v53 }
0x16fd   : > { %5289 = vrcp.f32 %v3862_v22 }
0x1706   : > { %v5288_v23 = vpop.eup %5287 }
0x1707   : > { %v5290_v27 = vpop.eup %5289  ;;  %v3873_v28 = vmul.f32 %v5288_v23, %v6136_v7 }
0x1708   : > { %v3872_v10 = vmul.f32 %v5290_v27, %v6138_v8 }
0x1709   : > { %v3877_v56 = vpack.c.bf16 %v3873_v28, %v3873_v28 }
0x170a   : > { %v3876_v33 = vpack.c.bf16 %v3872_v10, %v3872_v10 }
0x170b   : > { %5096 = vmatmul.mubr.msk.bf16.vlgmr.msra.gmra.mrb[60].mxu0 %vm918_vm2, %v3877_v56 }
0x170c   : > { %5090 = vmatmul.mubr.msk.bf16.vlgmr.msra.gmra.mrb[64].mxu1 %vm918_vm2, %v3876_v33  ;;  %5111 = vmatprep.mubr.msk.bf16.mxu0 %vm5361_vm0, %v5360_v2 }
0x170d   : > { %5103 = vmatprep.mubr.msk.bf16.mxu1 %vm5361_vm0, %v5360_v2  ;;  %5100 = vmatpush3.bf16.msra.mxu1 %v5221_v47  ;;  %v4293_v47 = vrot.slane %v6023_v48, %v5724_v43  ;;  %v5228_v43 = vld [vmem:[%s6345_s4 + $0x88] sm:$0xff]  }
0x170e   : > { %5101 = vmatprep.subr.bf16.mxu1 %v5360_v2 }
0x1711   : > { %5102 = vmatpush3.bf16.msra.mxu1 %v5222_v20 }
0x1712   : > { %5115 = vmatprep.subr.bf16.mxu1 %v5360_v2 }
0x17b7   : > { %v3918_v34 = vpop.f32.mrb[60].mxu1  ;;  %v3964_v36 = vpop.f32.mrb[56].mxu0 }
0x17b8   : > { %v5079_v37 = vpop.f32.mrb[61].mxu1  ;;  %v5085_v39 = vpop.f32.mrb[57].mxu0 }
0x17b9   : > { %v3921_v4 = vpop.f32.mrb[62].mxu1  ;;  %v3967_v7 = vpop.f32.mrb[58].mxu0 }
0x17ba   : > { %v5080_v41 = vpop.f32.mrb[63].mxu1  ;;  %v5086_v8 = vpop.f32.mrb[59].mxu0 }
0x17bb   : > { %v4217_v8 = vrot.slane %v6023_v48, %v5700_v19  ;;  %v5224_v19 = vld [vmem:[%s6344_s3 + $0x28] sm:$0xff]  }
0x17de   : > { %v4056_v17 = vpop.f32.mrb[60].mxu0 }
0x17df   : > { %v4010_v57 = vpop.f32.mrb[64].mxu1  ;;  %v4078_v45 = vcombine.low %v3964_v36, %v4056_v17  ;;  %v4079_v46 = vcombine.high %v3964_v36, %v4056_v17  ;;  %v5097_v49 = vpop.f32.mrb[61].mxu0 }
0x17e0   : > { %v4062_v25 = vcombine.low %v3918_v34, %v4010_v57  ;;  %v4063_v26 = vcombine.high %v3918_v34, %v4010_v57  ;;  %v5091_v50 = vpop.f32.mrb[65].mxu1  ;;  %v4059_v51 = vpop.f32.mrb[62].mxu0 }
0x17e1   : > { %v4086_v52 = vrot.slane %v4078_v45, %v5535_v35  ;;  %v4093_v54 = vrot.slane %v4079_v46, %v5535_v35  ;;  %v4013_v55 = vpop.f32.mrb[66].mxu1  ;;  %v5098_v24 = vpop.f32.mrb[63].mxu0 }
0x17e2   : > { %v4070_v5 = vrot.slane %v4062_v25, %v5535_v35  ;;  %v4077_v58 = vrot.slane %v4063_v26, %v5535_v35  ;;  %v5092_v59 = vpop.f32.mrb[67].mxu1 }
0x17e4   : > { %v4094_v60 = vcombine.low %v4070_v5, %v4086_v52  ;;  %v4095_v29 = vcombine.high %v4070_v5, %v4086_v52  ;;  %v4110_v62 = vcombine.low %v4077_v58, %v4093_v54  ;;  %v4111_v13 = vcombine.high %v4077_v58, %v4093_v54  ;;  %v5223_v52 = vld [vmem:[%s6344_s3 + $0x20] sm:$0xff]   ;;  %v5226_v54 = vld [vmem:[%s6345_s4 + $0x78] sm:$0xff]  }
0x17e5   : > { %5108 = vmatpush3.bf16.msra.mxu0 %v5223_v52  ;;  %v5232_v52 = vld [vmem:[%s6347_s6 + $0x18] sm:$0xff]  }
0x17e6   : > { %v4102_v40 = vrot.slane %v4094_v60, %v5538_v42  ;;  %v4109_v63 = vrot.slane %v4095_v29, %v5538_v42  ;;  %v4118_v0 = vrot.slane %v4110_v62, %v5538_v42  ;;  %v4125_v1 = vrot.slane %v4111_v13, %v5538_v42  ;;  %5109 = vmatprep.subr.bf16.mxu0 %v5360_v2 }
0x17e8   : > { %v4130_v3 = vcombine.low %v4102_v40, %v4109_v63  ;;  %v4753_v9 = vcombine.high %v4102_v40, %v4109_v63  ;;  %v4146_v11 = vcombine.low %v4118_v0, %v4125_v1  ;;  %v4754_v12 = vcombine.high %v4118_v0, %v4125_v1 }
0x17e9   : > { %5110 = vmatpush3.bf16.msra.mxu0 %v5224_v19  ;;  %v4298_v0 = vrot.slane %v6023_v48, %v5727_v44  ;;  %v369_v44 = vld [vmem:[%s6346_s5 + $0x28] sm:$0x3] }
0x17ea   : > { %v4137_v14 = vrot.slane %v4130_v3, %v5535_v35  ;;  %v4145_v38 = vrot.slane %v4753_v9, %v5535_v35  ;;  %v4153_v15 = vrot.slane %v4146_v11, %v5535_v35  ;;  %v4161_v16 = vrot.slane %v4754_v12, %v5535_v35  ;;  %5127 = vmatprep.subr.bf16.mxu0 %v5360_v2  ;;  %v5227_v11 = vld [vmem:[%s6345_s4 + $0x80] sm:$0xff]  }
0x17eb   : > { %v4304_v12 = vrot.slane %v369_v44, %v5490_v6 }
0x17ec   : > { %v4163_v61 = vcombine.high %v4137_v14, %v4145_v38  ;;  %v4179_v32 = vcombine.high %v4153_v15, %v4161_v16  ;;  %v4162_v53 = vcombine.low %v4137_v14, %v4145_v38  ;;  %v4178_v22 = vcombine.low %v4153_v15, %v4161_v16 }
0x17ee   : > { %v4177_v23 = vrot.slane %v4163_v61, %v5538_v42  ;;  %v4193_v27 = vrot.slane %v4179_v32, %v5538_v42  ;;  %v4170_v28 = vrot.slane %v4162_v53, %v5538_v42  ;;  %v4186_v10 = vrot.slane %v4178_v22, %v5538_v42 }
0x17ef   : > { %v4365_v53 = vrot.slane %v369_v44, %v5517_v18  ;;  %v5230_v18 = vld [vmem:[%s6347_s6 + $0x8] sm:$0xff]  }
0x17f0   : > { %v4196_v35 = vcombine.low %v4177_v23, %v4193_v27  ;;  %v4195_v56 = vcombine.high %v4170_v28, %v4186_v10  ;;  %v4197_v33 = vcombine.high %v4177_v23, %v4193_v27  ;;  %v4194_v34 = vcombine.low %v4170_v28, %v4186_v10 }
0x17f2   : > { %4203 = vrot.lane.b32.xlu1 %v4196_v35, %s6369_s13  ;;  %4199 = vrot.lane.b32.xlu0 %v4195_v56, %s6370_s23 }
0x17f6   : > { %4207 = vrot.lane.b32.xlu1 %v4197_v33, %s6371_s24  ;;  %s294_s24 = sand.u32 1, %s5350_s28  }
0x17f7   : > { %s295_s21 = scalar_lea.vmem [#allocation2], %s294_s24  ;;  %s4604_s9 = scalar_lea.sflag [#allocation3], %s294_s24 }
0x17f8   : > { %s4616_s17 = sshll.u32 %s295_s21, 4  ;;  %s6301_s17 = int_to_ptr.vmem [resolvable:$true] %s4616_s17 }
0x17f9   : > { %s5296_s25 = scalar_lea.vmem %s6301_s17, 16  ;;  %p5303_p0 = scmp.lt.s32.totalorder %s6301_s17, %s5301_s18 }
0x17fa   : > { %p5297_p11 = scmp.ne.s32.totalorder %s6301_s17, %s5296_s25  ;;  %p5304_p1 = scmp.lt.s32.totalorder %s5302_s19, %s5296_s25 }
0x17fc   : > { %p5298_p12 = pnand %p5297_p11, %p5457_p5  ;;  %p5305_p2 = por %p5304_p1, %p5303_p0 }
0x17fe   : > { %p5299_p13 = pneg %p5298_p12 }
0x1800   : > { %p5306_p3 = pnand %p5305_p2, %p5299_p13 }
0x1864   : > { %v4204_v36 = vpop.permute.xlu1 %4203  ;;  %v4200_v37 = vpop.permute.xlu0 %4199 }
0x1865   : > { %v4210_v39 = vsel %vm918_vm2, %v4194_v34, %v4200_v37  ;;  %v5229_v34 = vld [vmem:[%s6347_s6] sm:$0xff]  }
0x1866   : > { %v4211_v7 = vsel %vm1485_vm4, %v4210_v39, %v4204_v36 }
0x1868   : > { %v4208_v4 = vpop.permute.xlu1 %4207 }
0x1869   : > { %v4212_v41 = vsel %vm1487_vm5, %v4211_v7, %v4208_v4 }
0x186a   : > { %v4213_v42 = vpack.c.bf16 %v4212_v41, %v4212_v41 }
0x186c   : > { %5104 = vmatmul.mubr.msk.bf16.vlgmr.msra.gmra.mrb[68].mxu1 %vm383_vm1, %v4213_v42 }
0x186d   : > { %5123 = vmatprep.mubr.msk.bf16.mxu1 %vm5361_vm0, %v5360_v2 }
0x193f   : > { %v4267_v17 = vpop.f32.mrb[68].mxu1 }
0x1940   : > { %v4268_v57 = vadd.f32 %v4267_v17, %v4217_v8  ;;  %v5105_v45 = vpop.f32.mrb[69].mxu1 }
0x1941   : > { %v4270_v46 = vpop.f32.mrb[70].mxu1 }
0x1942   : > { %v4273_v49 = vadd.f32 %v4268_v57, %v6032_v21  ;;  %v5106_v25 = vpop.f32.mrb[71].mxu1  ;;  %v5225_v21 = vld [vmem:[%s6345_s4 + $0x70] sm:$0xff]   ;;  %v4453_v57 = vrot.slane %v6023_v48, %v5771_v30  ;;  %v5233_v30 = vld [vmem:[%s6347_s6 + $0x20] sm:$0xff]  }
0x1943   : > { %5116 = vmatpush3.bf16.msra.mxu1 %v5225_v21 }
0x1944   : > { %v4274_v26 = vsel %vm383_vm1, %v4273_v49, 0.0  ;;  %v4278_v50 = vmul.f32 %v4273_v49, %v4273_v49  ;;  %5117 = vmatprep.subr.bf16.mxu1 %v5360_v2 }
0x1945   : > { %4275 = vadd.xlane.f32.xlu0 %v4274_v26 }
0x1946   : > { %v4279_v51 = vsel %vm383_vm1, %v4278_v50, 0.0  ;;  %v5231_v50 = vld [vmem:[%s6347_s6 + $0x10] sm:$0xff]  }
0x1947   : > { %4280 = vadd.xlane.f32.xlu1 %v4279_v51  ;;  %5118 = vmatpush3.bf16.msra.mxu1 %v5226_v54 }
0x1948   : > { %5119 = vmatprep.subr.bf16.mxu1 %v5360_v2 }
0x194b   : > { %5120 = vmatpush3.bf16.msra.mxu1 %v5227_v11 }
0x194c   : > { %5121 = vmatprep.subr.bf16.mxu1 %v5360_v2 }
0x194f   : > { %5122 = vmatpush3.bf16.msra.mxu1 %v5228_v43 }
0x19d2   : > { %v4276_v55 = vpop.xlane.xlu0 %4275 }
0x19d3   : > { %v4277_v24 = vmul.f32 0.03125, %v4276_v55 }
0x19d4   : > { %v4281_v5 = vpop.xlane.xlu1 %4280 }
0x19d5   : > { %v4283_v58 = vmul.f32 %v4277_v24, %v4277_v24  ;;  %v4282_v59 = vmul.f32 0.03125, %v4281_v5  ;;  %v4286_v13 = vsub.f32 %v4273_v49, %v4277_v24  ;;  %v4458_v49 = vrot.slane %v6023_v48, %v5774_v31  ;;  %v5234_v31 = vld [vmem:[%s6347_s6 + $0x28] sm:$0xff]   ;;  %v4472_v48 = vld [vmem:[%s6348_s7] sm:$0x3] }
0x19d7   : > { %v4284_v60 = vsub.f32 %v4282_v59, %v4283_v58 }
0x19d9   : > { %v4285_v29 = vmax.f32 %v4284_v60, 0.0 }
0x19db   : > { %v4287_v62 = vadd.f32 1e-05, %v4285_v29 }
0x19dd   : > { %5291 = vrsqrt.f32 %v4287_v62 }
0x19e7   : > { %v5292_v40 = vpop.eup %5291 }
0x19e8   : > { %v4289_v63 = vmul.f32 %v5292_v40, %v4286_v13 }
0x19ea   : > { %v4294_v1 = vmul.f32 %v4293_v47, %v4289_v63 }
0x19ec   : > { %v4299_v3 = vadd.f32 %v4298_v0, %v4294_v1 }
0x19ee   : > { %v4300_v9 = vpack.c.bf16 %v4299_v3, %v4299_v3 }
0x19f0   : > { %5112 = vmatmul.mubr.msk.bf16.vlgmr.msra.gmra.mrb[64].mxu0 %vm383_vm1, %v4300_v9 }
0x19f1   : > { %5131 = vmatprep.mubr.msk.bf16.mxu0 %vm5361_vm0, %v5360_v2  ;;  %5128 = vmatpush3.bf16.msra.mxu0 %v5229_v34 }
0x19f2   : > { %5129 = vmatprep.subr.bf16.mxu0 %v5360_v2 }
0x19f5   : > { %5130 = vmatpush3.bf16.msra.mxu0 %v5230_v18 }
0x19f6   : > { %5135 = vmatprep.subr.bf16.mxu0 %v5360_v2 }
0x1ac3   : > { %v4354_v14 = vpop.f32.mrb[64].mxu0 }
0x1ac4   : > { %v4355_v38 = vadd.f32 %v4354_v14, %v4304_v12  ;;  %v5113_v15 = vpop.f32.mrb[65].mxu0 }
0x1ac5   : > { %v4357_v16 = vpop.f32.mrb[66].mxu0 }
0x1ac6   : > { %v4360_v20 = vmax.f32 %v4355_v38, 0.0  ;;  %v5114_v61 = vpop.f32.mrb[67].mxu0 }
0x1ac8   : > { %v4361_v32 = vpack.c.bf16 %v4360_v20, %v4360_v20 }
0x1aca   : > { %5124 = vmatmul.mubr.msk.bf16.vlgmr.msra.gmra.mrb[72].mxu1 %vm1667_vm6, %v4361_v32 }
0x1b9d   : > { %v4427_v22 = vpop.f32.mrb[72].mxu1 }
0x1b9e   : > { %v4428_v23 = vadd.f32 %v4427_v22, %v4365_v53  ;;  %v5125_v27 = vpop.f32.mrb[73].mxu1 }
0x1b9f   : > { %v4430_v28 = vpop.f32.mrb[74].mxu1 }
0x1ba0   : > { %v4433_v10 = vadd.f32 %v4428_v23, %v4299_v3  ;;  %v5126_v35 = vpop.f32.mrb[75].mxu1 }
0x1ba2   : > { %v4434_v56 = vsel %vm383_vm1, %v4433_v10, 0.0  ;;  %v4438_v6 = vmul.f32 %v4433_v10, %v4433_v10 }
0x1ba3   : > { %4435 = vadd.xlane.f32.xlu0 %v4434_v56 }
0x1ba4   : > { %v4439_v33 = vsel %vm383_vm1, %v4438_v6, 0.0 }
0x1ba7   : > { %4440 = vadd.xlane.f32.xlu0 %v4439_v33 }
0x1c30   : > { %v4436_v36 = vpop.xlane.xlu0 %4435 }
0x1c31   : > { %v4437_v37 = vmul.f32 0.03125, %v4436_v36 }
0x1c33   : > { %v4443_v4 = vmul.f32 %v4437_v37, %v4437_v37  ;;  %v4446_v17 = vsub.f32 %v4433_v10, %v4437_v37 }
0x1c34   : > { %v4441_v39 = vpop.xlane.xlu0 %4440 }
0x1c35   : > { %v4442_v7 = vmul.f32 0.03125, %v4441_v39 }
0x1c37   : > { %v4444_v41 = vsub.f32 %v4442_v7, %v4443_v4 }
0x1c39   : > { %v4445_v42 = vmax.f32 %v4444_v41, 0.0 }
0x1c3b   : > { %v4447_v8 = vadd.f32 1e-05, %v4445_v42 }
0x1c3d   : > { %5293 = vrsqrt.f32 %v4447_v8 }
0x1c47   : > { %v5294_v45 = vpop.eup %5293 }
0x1c48   : > { %v4449_v46 = vmul.f32 %v5294_v45, %v4446_v17 }
0x1c4a   : > { %v4454_v25 = vmul.f32 %v4453_v57, %v4449_v46 }
0x1c4c   : > { %v4459_v26 = vadd.f32 %v4458_v49, %v4454_v25 }
0x1c4e   : > { %v4473_v51 = vpack.c.bf16 %v4459_v26, %v4459_v26 }
0x1c50   : > { %5132 = vmatmul.mubr.msk.bf16.vlgmr.msra.gmra.mrb[68].mxu0 %vm383_vm1, %v4473_v51 }
0x1c51   : > { %5136 = vmatpush3.bf16.msra.mxu0 %v5231_v50  ;;  %5143 = vmatprep.mubr.msk.bf16.mxu0 %vm5361_vm0, %v5360_v2 }
0x1c52   : > { %5137 = vmatprep.subr.bf16.mxu0 %v5360_v2 }
0x1c55   : > { %5138 = vmatpush3.bf16.msra.mxu0 %v5232_v52 }
0x1c56   : > { %5139 = vmatprep.subr.bf16.mxu0 %v5360_v2 }
0x1c59   : > { %5140 = vmatpush3.bf16.msra.mxu0 %v5233_v30 }
0x1c5a   : > { %5141 = vmatprep.subr.bf16.mxu0 %v5360_v2  ;;  %v4556_v2 = vrot.slane %v4472_v48, 1 }
0x1c5d   : > { %5142 = vmatpush3.bf16.msra.mxu0 %v5234_v31 }
0x1d23   : > { %v4523_v19 = vpop.f32.mrb[68].mxu0 }
0x1d24   : > { %v4524_v21 = vadd.f32 %v4523_v19, %v4472_v48  ;;  %v5133_v54 = vpop.f32.mrb[69].mxu0 }
0x1d25   : > { %v4526_v55 = vpop.f32.mrb[70].mxu0 }
0x1d26   : > { %v4529_v24 = vmax.f32 %v4524_v21, 0.0  ;;  %v5134_v5 = vpop.f32.mrb[71].mxu0 }
0x1d28   : > { %v4530_v58 = vpack.c.bf16 %v4529_v24, %v4529_v24 }
0x1d2a   : > { %5144 = vmatmul.mubr.msk.bf16.vlgmr.msra.gmra.mrb[72].mxu0 %vm1667_vm6, %v4530_v58 }
0x1dfd   : > { %v4595_v59 = vpop.f32.mrb[72].mxu0 }
0x1dfe   : > { %v4596_v60 = vadd.f32 %v4595_v59, %v4556_v2  ;;  %v5145_v29 = vpop.f32.mrb[73].mxu0 }
0x1dff   : > { %v4598_v62 = vpop.f32.mrb[74].mxu0 }
0x1e00   : > { %v5146_v13 = vpop.f32.mrb[75].mxu0  ;;  %4602 = vst.msk [vmem:[%s295_s21] sm:$0x1] %vm4601_vm7, %v4596_v60 }
0x1e01   : > { %5309 = shalt.err (!%p5306_p3)
}
0x1e02   : > { %s5310_s13 = scalar_lea.hbm %s6299_s10, 16  ;;  %s5314_s20 = scalar_lea.hbm %s6349_s8, 32 }
0x1e03   : > { %p5311_p4 = scmp.ne.s32.totalorder %s6299_s10, %s5310_s13  ;;  %p5315_p9 = scmp.lt.u32.totalorder %s6299_s10, %s6349_s8 }
0x1e04   : > { %p5316_p10 = scmp.lt.u32.totalorder %s5314_s20, %s5310_s13  ;;  %p5318_p12 = scmp.lt.u32.totalorder %s5310_s13, %s6299_s10 }
0x1e05   : > { %p5312_p7 = pnand %p5311_p4, %p5457_p5 }
0x1e06   : > { %p5317_p11 = por %p5316_p10, %p5315_p9 }
0x1e07   : > { %p5313_p8 = pneg %p5312_p7 }
0x1e08   : > { %p5319_p13 = por %p5318_p12, %p5317_p11 }
0x1e0a   : > { %p5320_p0 = pnand %p5319_p13, %p5313_p8 }
0x1e0c   : > { %5323 = shalt.err (!%p5320_p0)
}
0x1e0d   : > { %5147 = dma.vmem_to_hbm [thread:$0]  (%p5457_p5), %s6301_s17, 16, %s6299_s10, %s4604_s9  }
0x1e0e PF: > { %p5153_p1 = scmp.ge.s32.totalorder %s5358_s30, 2  ;;  %s4628_s22 = sand.u32 1, %s5346_s27  }
0x1e0f   : > { %s4629_s25 = scalar_lea.sflag [#allocation3], %s4628_s22 }
0x1e10   : > { %p5150_p2 = pnand %p5153_p1, %p5461_p6 }
0x1e12   : > { %5341 = dma.done.wait (!%p5150_p2), %s4629_s25, 16  }
0x1e13   : > { %5343 = vsyncadd (!%p5150_p2), %s4629_s25, 4294967280  ;;  %p18_p3 = scmp.ge.s32.totalorder %s5444_s11, 4   ;;  %s6376_s27 = smov %s5350_s28 }
0x1e14   : > { %s6377_s28 = smov %s5354_s29  ;;  %s6378_s29 = smov %s5455_s14 }
0x1e15   : > { %s6379_s30 = smov %s5444_s11  ;;  %20 = sbr.rel (!%p18_p3) target bundleno = 3 (0x3), region = 87 }
0x1e1c   :  { %4633 = vsyncpa [#allocation3], 1 }
0x1e1d   :  { %4635 = vsyncpa [#allocation3 + $0x1], 1 }

</bundles_post_ra>
